<compile_context>
chip_gen: v5e
topology: v5e:2x2
jax: 0.10.0
libtpu: 0.0.40
codegen_flags: <defaults>
</compile_context>

<pallas_src>
import jax
import jax.numpy as jnp
from jax.experimental import pallas as pl
from jax.experimental.pallas import tpu as pltpu

HIDDEN = 256   # hidden_size from the original module
VOCAB = 64     # small vocabulary for the demo
SEQ = 8        # demo sequence length


def _gru_seq_kernel(toks_ref,    # scalar prefetch: (S,) int32 in SMEM
                    emb_ref,     # (V, H)  f32 embedding table, resident in VMEM
                    h0_ref,      # (1, H)  f32 initial hidden
                    wih_ref,     # (H, 3H) bf16 input->hidden weights (r,z,n), pre-transposed
                    whh_ref,     # (H, 3H) bf16 hidden->hidden weights (r,z,n), pre-transposed
                    bih_ref,     # (1, 3H) f32
                    bhh_ref,     # (1, 3H) f32
                    out_ref,     # (S, H)  f32 per-step GRU outputs (== hidden states)
                    x_scratch):  # (S, H)  f32 gathered embeddings
    S, H = out_ref.shape

    # Gather the embedded inputs for all S steps (token ids come from SMEM).
    for t in range(S):
        tok = toks_ref[t]
        x_scratch[t:t + 1, :] = emb_ref[pl.ds(tok, 1), :]

    # Hoisted x-side projection: one (S, H) x (H, 3H) bf16 GEMM, f32 accumulate.
    x = x_scratch[...].astype(jnp.bfloat16)
    gx = jnp.dot(x, wih_ref[...], preferred_element_type=jnp.float32) + bih_ref[...]

    # Serial GRU recurrence (gate order r, z, n, matching torch.nn.GRU):
    #   r  = sigmoid(W_ir x + b_ir + W_hr h + b_hr)
    #   z  = sigmoid(W_iz x + b_iz + W_hz h + b_hz)
    #   n  = tanh   (W_in x + b_in + r * (W_hn h + b_hn))
    #   h' = (1 - z) * n + z * h
    h = h0_ref[...].astype(jnp.float32)          # (1, H) f32 carry
    outs = []
    for t in range(S):
        gx_t = gx[t:t + 1, :]                    # (1, 3H) f32
        gh = jnp.dot(h.astype(jnp.bfloat16), whh_ref[...],
                     preferred_element_type=jnp.float32) + bhh_ref[...]
        r = jax.nn.sigmoid(gx_t[:, 0:H] + gh[:, 0:H])
        z = jax.nn.sigmoid(gx_t[:, H:2 * H] + gh[:, H:2 * H])
        n = jnp.tanh(gx_t[:, 2 * H:3 * H] + r * gh[:, 2 * H:3 * H])
        h = (1.0 - z) * n + z * h
        outs.append(h)

    # Single lane-dense store of all step outputs.
    out_ref[...] = jnp.concatenate(outs, axis=0).astype(out_ref.dtype)


def encoder_rnn_forward_seq(tokens, hidden, params):
    """Run the EncoderRNN over a token sequence in one pallas_call.

    tokens: (S,) int32 token ids
    hidden: (1, 1, H) float32 initial hidden state
    params: dict with 'embedding' (V, H), 'w_ih' (H, 3H), 'w_hh' (H, 3H),
            'b_ih' (1, 3H), 'b_hh' (1, 3H)   (gate order r, z, n)
    returns (outputs, hidden): outputs (S, 1, H), hidden (1, 1, H)
    """
    V, H = params["embedding"].shape
    toks = jnp.asarray(tokens, jnp.int32).reshape((-1,))
    S = int(toks.shape[0])
    h2d = hidden.reshape(1, H).astype(jnp.float32)

    emb = params["embedding"].astype(jnp.float32)     # kept f32: clean dynamic row gather
    wih = params["w_ih"].astype(jnp.bfloat16)         # bf16 MXU operands
    whh = params["w_hh"].astype(jnp.bfloat16)
    bih = params["b_ih"].astype(jnp.float32)
    bhh = params["b_hh"].astype(jnp.float32)

    outs2d = pl.pallas_call(
        _gru_seq_kernel,
        out_shape=jax.ShapeDtypeStruct((S, H), jnp.float32),
        grid_spec=pltpu.PrefetchScalarGridSpec(
            num_scalar_prefetch=1,
            grid=(1,),
            in_specs=[
                pl.BlockSpec((V, H), lambda i, toks: (0, 0)),        # embedding table
                pl.BlockSpec((1, H), lambda i, toks: (0, 0)),        # initial hidden
                pl.BlockSpec((H, 3 * H), lambda i, toks: (0, 0)),    # w_ih
                pl.BlockSpec((H, 3 * H), lambda i, toks: (0, 0)),    # w_hh
                pl.BlockSpec((1, 3 * H), lambda i, toks: (0, 0)),    # b_ih
                pl.BlockSpec((1, 3 * H), lambda i, toks: (0, 0)),    # b_hh
            ],
            out_specs=pl.BlockSpec((S, H), lambda i, toks: (0, 0)),
            scratch_shapes=[pltpu.VMEM((S, H), jnp.float32)],
        ),
        compiler_params=pltpu.CompilerParams(
            dimension_semantics=("arbitrary",)),
    )(toks, emb, h2d, wih, whh, bih, bhh)

    outputs = outs2d.reshape(S, 1, H)                 # per-step GRU outputs
    new_hidden = outs2d[S - 1:S].reshape(1, 1, H)     # final hidden == last output
    return outputs, new_hidden


def encoder_rnn_forward(token_idx, hidden, params):
    """Single-token forward, matching the torch module's forward(input, hidden)."""
    H = params["embedding"].shape[1]
    outs, new_hidden = encoder_rnn_forward_seq(
        jnp.asarray(token_idx, jnp.int32).reshape((1,)), hidden, params)
    return outs.reshape(1, 1, H), new_hidden


def init_params(key, vocab, hidden):
    """Deterministic parameter init mirroring torch defaults.

    nn.Embedding: N(0, 1).  nn.GRU: U(-1/sqrt(H), 1/sqrt(H)).
    GRU weights stored pre-transposed and gate-fused as (H, 3H), gate order
    (r, z, n) to match torch.nn.GRU's weight chunk ordering; biases as (1, 3H).
    """
    k_emb, k_wih, k_whh, k_bih, k_bhh = jax.random.split(key, 5)
    bound = 1.0 / jnp.sqrt(hidden)
    return {
        "embedding": jax.random.normal(k_emb, (vocab, hidden), jnp.float32),
        "w_ih": jax.random.uniform(k_wih, (hidden, 3 * hidden), jnp.float32,
                                   -bound, bound),
        "w_hh": jax.random.uniform(k_whh, (hidden, 3 * hidden), jnp.float32,
                                   -bound, bound),
        "b_ih": jax.random.uniform(k_bih, (1, 3 * hidden), jnp.float32,
                                   -bound, bound),
        "b_hh": jax.random.uniform(k_bhh, (1, 3 * hidden), jnp.float32,
                                   -bound, bound),
    }


def _reference_forward_seq(tokens, hidden, params):
    """Pure-JAX f32 reference: the per-token GRU step applied sequentially."""
    H = params["embedding"].shape[1]
    h = hidden.reshape(1, H)
    outs = []
    for tok in list(tokens):
        x = params["embedding"][tok].reshape(1, H)
        gx = x @ params["w_ih"] + params["b_ih"]
        gh = h @ params["w_hh"] + params["b_hh"]
        r = jax.nn.sigmoid(gx[:, 0:H] + gh[:, 0:H])
        z = jax.nn.sigmoid(gx[:, H:2 * H] + gh[:, H:2 * H])
        n = jnp.tanh(gx[:, 2 * H:3 * H] + r * gh[:, 2 * H:3 * H])
        h = (1.0 - z) * n + z * h
        outs.append(h)
    return jnp.stack(outs).reshape(len(tokens), 1, H), h.reshape(1, 1, H)


if __name__ == "__main__":
    key = jax.random.PRNGKey(0)
    params = init_params(key, VOCAB, HIDDEN)

    tok_key, _ = jax.random.split(key)
    tokens = jax.random.randint(tok_key, (SEQ,), 0, VOCAB, jnp.int32)
    hidden0 = jnp.zeros((1, 1, HIDDEN), jnp.float32)   # init_hidden()

    # Full-sequence path (entire recurrence inside one pallas_call invocation).
    outputs, new_hidden = encoder_rnn_forward_seq(tokens, hidden0, params)
    outputs = jax.block_until_ready(outputs)
    new_hidden = jax.block_until_ready(new_hidden)

    ref_out, ref_hid = _reference_forward_seq(tokens, hidden0, params)
    assert outputs.shape == (SEQ, 1, HIDDEN)
    assert new_hidden.shape == (1, 1, HIDDEN)
    # bf16 matmul operands with f32 accumulation -> loosened tolerance.
    assert jnp.allclose(outputs, ref_out, atol=2e-2, rtol=2e-2)
    assert jnp.allclose(new_hidden, ref_hid, atol=2e-2, rtol=2e-2)

    # Single-token path, matching the original module's forward(input, hidden).
    out1, hid1 = encoder_rnn_forward(tokens[0], hidden0, params)
    out1 = jax.block_until_ready(out1)
    hid1 = jax.block_until_ready(hid1)
    ref_out1, ref_hid1 = _reference_forward_seq(tokens[:1], hidden0, params)
    assert out1.shape == (1, 1, HIDDEN) and hid1.shape == (1, 1, HIDDEN)
    assert jnp.allclose(out1, ref_out1.reshape(1, 1, HIDDEN), atol=2e-2, rtol=2e-2)
    assert jnp.allclose(hid1, ref_hid1, atol=2e-2, rtol=2e-2)

    print("KERNEL_OK")
</pallas_src>

<mosaic_0001>
module attributes {stable_mosaic.version = 11 : i64} {
  func.func @_gru_seq_kernel(%arg0: i32, %arg1: memref<8xi32, #tpu.memory_space<smem>>, %arg2: memref<64x256xf32, #tpu.memory_space<vmem>>, %arg3: memref<1x256xf32, #tpu.memory_space<vmem>>, %arg4: memref<256x768xbf16, #tpu.memory_space<vmem>>, %arg5: memref<256x768xbf16, #tpu.memory_space<vmem>>, %arg6: memref<1x768xf32, #tpu.memory_space<vmem>>, %arg7: memref<1x768xf32, #tpu.memory_space<vmem>>, %arg8: memref<8x256xf32, #tpu.memory_space<vmem>>, %arg9: memref<8x256xf32, #tpu.memory_space<vmem>>) attributes {dimension_semantics = [#tpu.dimension_semantics<arbitrary>], iteration_bounds = array<i64: 1>, scalar_prefetch = 1 : i64, scratch_operands = 1 : i64, tpu.core_type = #tpu.core_type<tc>, window_params = [{pipeline_mode = #tpu.pipeline_mode<synchronous>, transform_indices = @transform_0, window_bounds = array<i64: 64, 256>}, {pipeline_mode = #tpu.pipeline_mode<synchronous>, transform_indices = @transform_1, window_bounds = array<i64: 1, 256>}, {pipeline_mode = #tpu.pipeline_mode<synchronous>, transform_indices = @transform_2, window_bounds = array<i64: 256, 768>}, {pipeline_mode = #tpu.pipeline_mode<synchronous>, transform_indices = @transform_3, window_bounds = array<i64: 256, 768>}, {pipeline_mode = #tpu.pipeline_mode<synchronous>, transform_indices = @transform_4, window_bounds = array<i64: 1, 768>}, {pipeline_mode = #tpu.pipeline_mode<synchronous>, transform_indices = @transform_5, window_bounds = array<i64: 1, 768>}, {pipeline_mode = #tpu.pipeline_mode<synchronous>, transform_indices = @transform_6, window_bounds = array<i64: 8, 256>}]} {
    %c0 = arith.constant 0 : index
    %0 = memref.load %arg1[%c0] : memref<8xi32, #tpu.memory_space<smem>>
    %1 = arith.index_cast %0 : i32 to index
    %c0_0 = arith.constant 0 : index
    %2 = vector.load %arg2[%1, %c0_0] : memref<64x256xf32, #tpu.memory_space<vmem>>, vector<1x256xf32>
    %c0_1 = arith.constant 0 : index
    %c0_2 = arith.constant 0 : index
    %3 = vector.load %arg9[%c0_1, %c0_2] : memref<8x256xf32, #tpu.memory_space<vmem>>, vector<1x256xf32>
    tpu.vector_store %arg9[%c0_1, %c0_2], %2 {strides = array<i32>} : memref<8x256xf32, #tpu.memory_space<vmem>>, vector<1x256xf32>,
    %c1 = arith.constant 1 : index
    %4 = memref.load %arg1[%c1] : memref<8xi32, #tpu.memory_space<smem>>
    %5 = arith.index_cast %4 : i32 to index
    %c0_3 = arith.constant 0 : index
    %6 = vector.load %arg2[%5, %c0_3] : memref<64x256xf32, #tpu.memory_space<vmem>>, vector<1x256xf32>
    %c1_4 = arith.constant 1 : index
    %c0_5 = arith.constant 0 : index
    %7 = vector.load %arg9[%c1_4, %c0_5] : memref<8x256xf32, #tpu.memory_space<vmem>>, vector<1x256xf32>
    tpu.vector_store %arg9[%c1_4, %c0_5], %6 {strides = array<i32>} : memref<8x256xf32, #tpu.memory_space<vmem>>, vector<1x256xf32>,
    %c2 = arith.constant 2 : index
    %8 = memref.load %arg1[%c2] : memref<8xi32, #tpu.memory_space<smem>>
    %9 = arith.index_cast %8 : i32 to index
    %c0_6 = arith.constant 0 : index
    %10 = vector.load %arg2[%9, %c0_6] : memref<64x256xf32, #tpu.memory_space<vmem>>, vector<1x256xf32>
    %c2_7 = arith.constant 2 : index
    %c0_8 = arith.constant 0 : index
    %11 = vector.load %arg9[%c2_7, %c0_8] : memref<8x256xf32, #tpu.memory_space<vmem>>, vector<1x256xf32>
    tpu.vector_store %arg9[%c2_7, %c0_8], %10 {strides = array<i32>} : memref<8x256xf32, #tpu.memory_space<vmem>>, vector<1x256xf32>,
    %c3 = arith.constant 3 : index
    %12 = memref.load %arg1[%c3] : memref<8xi32, #tpu.memory_space<smem>>
    %13 = arith.index_cast %12 : i32 to index
    %c0_9 = arith.constant 0 : index
    %14 = vector.load %arg2[%13, %c0_9] : memref<64x256xf32, #tpu.memory_space<vmem>>, vector<1x256xf32>
    %c3_10 = arith.constant 3 : index
    %c0_11 = arith.constant 0 : index
    %15 = vector.load %arg9[%c3_10, %c0_11] : memref<8x256xf32, #tpu.memory_space<vmem>>, vector<1x256xf32>
    tpu.vector_store %arg9[%c3_10, %c0_11], %14 {strides = array<i32>} : memref<8x256xf32, #tpu.memory_space<vmem>>, vector<1x256xf32>,
    %c4 = arith.constant 4 : index
    %16 = memref.load %arg1[%c4] : memref<8xi32, #tpu.memory_space<smem>>
    %17 = arith.index_cast %16 : i32 to index
    %c0_12 = arith.constant 0 : index
    %18 = vector.load %arg2[%17, %c0_12] : memref<64x256xf32, #tpu.memory_space<vmem>>, vector<1x256xf32>
    %c4_13 = arith.constant 4 : index
    %c0_14 = arith.constant 0 : index
    %19 = vector.load %arg9[%c4_13, %c0_14] : memref<8x256xf32, #tpu.memory_space<vmem>>, vector<1x256xf32>
    tpu.vector_store %arg9[%c4_13, %c0_14], %18 {strides = array<i32>} : memref<8x256xf32, #tpu.memory_space<vmem>>, vector<1x256xf32>,
    %c5 = arith.constant 5 : index
    %20 = memref.load %arg1[%c5] : memref<8xi32, #tpu.memory_space<smem>>
    %21 = arith.index_cast %20 : i32 to index
    %c0_15 = arith.constant 0 : index
    %22 = vector.load %arg2[%21, %c0_15] : memref<64x256xf32, #tpu.memory_space<vmem>>, vector<1x256xf32>
    %c5_16 = arith.constant 5 : index
    %c0_17 = arith.constant 0 : index
    %23 = vector.load %arg9[%c5_16, %c0_17] : memref<8x256xf32, #tpu.memory_space<vmem>>, vector<1x256xf32>
    tpu.vector_store %arg9[%c5_16, %c0_17], %22 {strides = array<i32>} : memref<8x256xf32, #tpu.memory_space<vmem>>, vector<1x256xf32>,
    %c6 = arith.constant 6 : index
    %24 = memref.load %arg1[%c6] : memref<8xi32, #tpu.memory_space<smem>>
    %25 = arith.index_cast %24 : i32 to index
    %c0_18 = arith.constant 0 : index
    %26 = vector.load %arg2[%25, %c0_18] : memref<64x256xf32, #tpu.memory_space<vmem>>, vector<1x256xf32>
    %c6_19 = arith.constant 6 : index
    %c0_20 = arith.constant 0 : index
    %27 = vector.load %arg9[%c6_19, %c0_20] : memref<8x256xf32, #tpu.memory_space<vmem>>, vector<1x256xf32>
    tpu.vector_store %arg9[%c6_19, %c0_20], %26 {strides = array<i32>} : memref<8x256xf32, #tpu.memory_space<vmem>>, vector<1x256xf32>,
    %c7 = arith.constant 7 : index
    %28 = memref.load %arg1[%c7] : memref<8xi32, #tpu.memory_space<smem>>
    %29 = arith.index_cast %28 : i32 to index
    %c0_21 = arith.constant 0 : index
    %30 = vector.load %arg2[%29, %c0_21] : memref<64x256xf32, #tpu.memory_space<vmem>>, vector<1x256xf32>
    %c7_22 = arith.constant 7 : index
    %c0_23 = arith.constant 0 : index
    %31 = vector.load %arg9[%c7_22, %c0_23] : memref<8x256xf32, #tpu.memory_space<vmem>>, vector<1x256xf32>
    tpu.vector_store %arg9[%c7_22, %c0_23], %30 {strides = array<i32>} : memref<8x256xf32, #tpu.memory_space<vmem>>, vector<1x256xf32>,
    %c0_24 = arith.constant 0 : index
    %c0_25 = arith.constant 0 : index
    %32 = vector.load %arg9[%c0_24, %c0_25] : memref<8x256xf32, #tpu.memory_space<vmem>>, vector<8x256xf32>
    %33 = arith.truncf %32 : vector<8x256xf32> to vector<8x256xbf16>
    %c0_26 = arith.constant 0 : index
    %c0_27 = arith.constant 0 : index
    %34 = vector.load %arg4[%c0_26, %c0_27] : memref<256x768xbf16, #tpu.memory_space<vmem>>, vector<256x768xbf16>
    %cst = arith.constant dense<0.000000e+00> : vector<8x768xf32>
    %35 = tpu.matmul %33, %34, %cst {dimension_numbers = #tpu.dot_dimension_numbers<[1], [0], [0], [1], [0, 0, 1, 1], [], []>} : vector<8x256xbf16>, vector<256x768xbf16>, vector<8x768xf32> -> vector<8x768xf32>
    %c0_28 = arith.constant 0 : index
    %c0_29 = arith.constant 0 : index
    %36 = vector.load %arg6[%c0_28, %c0_29] : memref<1x768xf32, #tpu.memory_space<vmem>>, vector<1x768xf32>
    %37 = vector.broadcast %36 : vector<1x768xf32> to vector<8x768xf32>
    %38 = arith.addf %35, %37 : vector<8x768xf32>
    %c0_30 = arith.constant 0 : index
    %c0_31 = arith.constant 0 : index
    %39 = vector.load %arg3[%c0_30, %c0_31] : memref<1x256xf32, #tpu.memory_space<vmem>>, vector<1x256xf32>
    %40 = vector.extract_strided_slice %38 {offsets = [0, 0], sizes = [1, 768], strides = [1, 1]} : vector<8x768xf32> to vector<1x768xf32>
    %41 = arith.truncf %39 : vector<1x256xf32> to vector<1x256xbf16>
    %c0_32 = arith.constant 0 : index
    %c0_33 = arith.constant 0 : index
    %42 = vector.load %arg5[%c0_32, %c0_33] : memref<256x768xbf16, #tpu.memory_space<vmem>>, vector<256x768xbf16>
    %cst_34 = arith.constant dense<0.000000e+00> : vector<1x768xf32>
    %43 = tpu.matmul %41, %42, %cst_34 {dimension_numbers = #tpu.dot_dimension_numbers<[1], [0], [0], [1], [0, 0, 1, 1], [], []>} : vector<1x256xbf16>, vector<256x768xbf16>, vector<1x768xf32> -> vector<1x768xf32>
    %c0_35 = arith.constant 0 : index
    %c0_36 = arith.constant 0 : index
    %44 = vector.load %arg7[%c0_35, %c0_36] : memref<1x768xf32, #tpu.memory_space<vmem>>, vector<1x768xf32>
    %45 = arith.addf %43, %44 : vector<1x768xf32>
    %46 = vector.extract_strided_slice %40 {offsets = [0, 0], sizes = [1, 256], strides = [1, 1]} : vector<1x768xf32> to vector<1x256xf32>
    %47 = vector.extract_strided_slice %45 {offsets = [0, 0], sizes = [1, 256], strides = [1, 1]} : vector<1x768xf32> to vector<1x256xf32>
    %48 = arith.addf %46, %47 : vector<1x256xf32>
    %49 = arith.negf %48 : vector<1x256xf32>
    %50 = math.exp %49 : vector<1x256xf32>
    %cst_37 = arith.constant 1.000000e+00 : f32
    %51 = vector.broadcast %cst_37 : f32 to vector<1x256xf32>
    %52 = arith.addf %51, %50 : vector<1x256xf32>
    %53 = arith.divf %51, %52 : vector<1x256xf32>
    %54 = vector.extract_strided_slice %40 {offsets = [0, 256], sizes = [1, 256], strides = [1, 1]} : vector<1x768xf32> to vector<1x256xf32>
    %55 = vector.extract_strided_slice %45 {offsets = [0, 256], sizes = [1, 256], strides = [1, 1]} : vector<1x768xf32> to vector<1x256xf32>
    %56 = arith.addf %54, %55 : vector<1x256xf32>
    %57 = arith.negf %56 : vector<1x256xf32>
    %58 = math.exp %57 : vector<1x256xf32>
    %cst_38 = arith.constant 1.000000e+00 : f32
    %59 = vector.broadcast %cst_38 : f32 to vector<1x256xf32>
    %60 = arith.addf %59, %58 : vector<1x256xf32>
    %61 = arith.divf %59, %60 : vector<1x256xf32>
    %62 = vector.extract_strided_slice %40 {offsets = [0, 512], sizes = [1, 256], strides = [1, 1]} : vector<1x768xf32> to vector<1x256xf32>
    %63 = vector.extract_strided_slice %45 {offsets = [0, 512], sizes = [1, 256], strides = [1, 1]} : vector<1x768xf32> to vector<1x256xf32>
    %64 = arith.mulf %53, %63 : vector<1x256xf32>
    %65 = arith.addf %62, %64 : vector<1x256xf32>
    %66 = math.tanh %65 : vector<1x256xf32>
    %cst_39 = arith.constant 1.000000e+00 : f32
    %67 = vector.broadcast %cst_39 : f32 to vector<1x256xf32>
    %68 = arith.subf %67, %61 : vector<1x256xf32>
    %69 = arith.mulf %68, %66 : vector<1x256xf32>
    %70 = arith.mulf %61, %39 : vector<1x256xf32>
    %71 = arith.addf %69, %70 : vector<1x256xf32>
    %72 = vector.extract_strided_slice %38 {offsets = [1, 0], sizes = [1, 768], strides = [1, 1]} : vector<8x768xf32> to vector<1x768xf32>
    %73 = arith.truncf %71 : vector<1x256xf32> to vector<1x256xbf16>
    %c0_40 = arith.constant 0 : index
    %c0_41 = arith.constant 0 : index
    %74 = vector.load %arg5[%c0_40, %c0_41] : memref<256x768xbf16, #tpu.memory_space<vmem>>, vector<256x768xbf16>
    %cst_42 = arith.constant dense<0.000000e+00> : vector<1x768xf32>
    %75 = tpu.matmul %73, %74, %cst_42 {dimension_numbers = #tpu.dot_dimension_numbers<[1], [0], [0], [1], [0, 0, 1, 1], [], []>} : vector<1x256xbf16>, vector<256x768xbf16>, vector<1x768xf32> -> vector<1x768xf32>
    %c0_43 = arith.constant 0 : index
    %c0_44 = arith.constant 0 : index
    %76 = vector.load %arg7[%c0_43, %c0_44] : memref<1x768xf32, #tpu.memory_space<vmem>>, vector<1x768xf32>
    %77 = arith.addf %75, %76 : vector<1x768xf32>
    %78 = vector.extract_strided_slice %72 {offsets = [0, 0], sizes = [1, 256], strides = [1, 1]} : vector<1x768xf32> to vector<1x256xf32>
    %79 = vector.extract_strided_slice %77 {offsets = [0, 0], sizes = [1, 256], strides = [1, 1]} : vector<1x768xf32> to vector<1x256xf32>
    %80 = arith.addf %78, %79 : vector<1x256xf32>
    %81 = arith.negf %80 : vector<1x256xf32>
    %82 = math.exp %81 : vector<1x256xf32>
    %cst_45 = arith.constant 1.000000e+00 : f32
    %83 = vector.broadcast %cst_45 : f32 to vector<1x256xf32>
    %84 = arith.addf %83, %82 : vector<1x256xf32>
    %85 = arith.divf %83, %84 : vector<1x256xf32>
    %86 = vector.extract_strided_slice %72 {offsets = [0, 256], sizes = [1, 256], strides = [1, 1]} : vector<1x768xf32> to vector<1x256xf32>
    %87 = vector.extract_strided_slice %77 {offsets = [0, 256], sizes = [1, 256], strides = [1, 1]} : vector<1x768xf32> to vector<1x256xf32>
    %88 = arith.addf %86, %87 : vector<1x256xf32>
    %89 = arith.negf %88 : vector<1x256xf32>
    %90 = math.exp %89 : vector<1x256xf32>
    %cst_46 = arith.constant 1.000000e+00 : f32
    %91 = vector.broadcast %cst_46 : f32 to vector<1x256xf32>
    %92 = arith.addf %91, %90 : vector<1x256xf32>
    %93 = arith.divf %91, %92 : vector<1x256xf32>
    %94 = vector.extract_strided_slice %72 {offsets = [0, 512], sizes = [1, 256], strides = [1, 1]} : vector<1x768xf32> to vector<1x256xf32>
    %95 = vector.extract_strided_slice %77 {offsets = [0, 512], sizes = [1, 256], strides = [1, 1]} : vector<1x768xf32> to vector<1x256xf32>
    %96 = arith.mulf %85, %95 : vector<1x256xf32>
    %97 = arith.addf %94, %96 : vector<1x256xf32>
    %98 = math.tanh %97 : vector<1x256xf32>
    %cst_47 = arith.constant 1.000000e+00 : f32
    %99 = vector.broadcast %cst_47 : f32 to vector<1x256xf32>
    %100 = arith.subf %99, %93 : vector<1x256xf32>
    %101 = arith.mulf %100, %98 : vector<1x256xf32>
    %102 = arith.mulf %93, %71 : vector<1x256xf32>
    %103 = arith.addf %101, %102 : vector<1x256xf32>
    %104 = vector.extract_strided_slice %38 {offsets = [2, 0], sizes = [1, 768], strides = [1, 1]} : vector<8x768xf32> to vector<1x768xf32>
    %105 = arith.truncf %103 : vector<1x256xf32> to vector<1x256xbf16>
    %c0_48 = arith.constant 0 : index
    %c0_49 = arith.constant 0 : index
    %106 = vector.load %arg5[%c0_48, %c0_49] : memref<256x768xbf16, #tpu.memory_space<vmem>>, vector<256x768xbf16>
    %cst_50 = arith.constant dense<0.000000e+00> : vector<1x768xf32>
    %107 = tpu.matmul %105, %106, %cst_50 {dimension_numbers = #tpu.dot_dimension_numbers<[1], [0], [0], [1], [0, 0, 1, 1], [], []>} : vector<1x256xbf16>, vector<256x768xbf16>, vector<1x768xf32> -> vector<1x768xf32>
    %c0_51 = arith.constant 0 : index
    %c0_52 = arith.constant 0 : index
    %108 = vector.load %arg7[%c0_51, %c0_52] : memref<1x768xf32, #tpu.memory_space<vmem>>, vector<1x768xf32>
    %109 = arith.addf %107, %108 : vector<1x768xf32>
    %110 = vector.extract_strided_slice %104 {offsets = [0, 0], sizes = [1, 256], strides = [1, 1]} : vector<1x768xf32> to vector<1x256xf32>
    %111 = vector.extract_strided_slice %109 {offsets = [0, 0], sizes = [1, 256], strides = [1, 1]} : vector<1x768xf32> to vector<1x256xf32>
    %112 = arith.addf %110, %111 : vector<1x256xf32>
    %113 = arith.negf %112 : vector<1x256xf32>
    %114 = math.exp %113 : vector<1x256xf32>
    %cst_53 = arith.constant 1.000000e+00 : f32
    %115 = vector.broadcast %cst_53 : f32 to vector<1x256xf32>
    %116 = arith.addf %115, %114 : vector<1x256xf32>
    %117 = arith.divf %115, %116 : vector<1x256xf32>
    %118 = vector.extract_strided_slice %104 {offsets = [0, 256], sizes = [1, 256], strides = [1, 1]} : vector<1x768xf32> to vector<1x256xf32>
    %119 = vector.extract_strided_slice %109 {offsets = [0, 256], sizes = [1, 256], strides = [1, 1]} : vector<1x768xf32> to vector<1x256xf32>
    %120 = arith.addf %118, %119 : vector<1x256xf32>
    %121 = arith.negf %120 : vector<1x256xf32>
    %122 = math.exp %121 : vector<1x256xf32>
    %cst_54 = arith.constant 1.000000e+00 : f32
    %123 = vector.broadcast %cst_54 : f32 to vector<1x256xf32>
    %124 = arith.addf %123, %122 : vector<1x256xf32>
    %125 = arith.divf %123, %124 : vector<1x256xf32>
    %126 = vector.extract_strided_slice %104 {offsets = [0, 512], sizes = [1, 256], strides = [1, 1]} : vector<1x768xf32> to vector<1x256xf32>
    %127 = vector.extract_strided_slice %109 {offsets = [0, 512], sizes = [1, 256], strides = [1, 1]} : vector<1x768xf32> to vector<1x256xf32>
    %128 = arith.mulf %117, %127 : vector<1x256xf32>
    %129 = arith.addf %126, %128 : vector<1x256xf32>
    %130 = math.tanh %129 : vector<1x256xf32>
    %cst_55 = arith.constant 1.000000e+00 : f32
    %131 = vector.broadcast %cst_55 : f32 to vector<1x256xf32>
    %132 = arith.subf %131, %125 : vector<1x256xf32>
    %133 = arith.mulf %132, %130 : vector<1x256xf32>
    %134 = arith.mulf %125, %103 : vector<1x256xf32>
    %135 = arith.addf %133, %134 : vector<1x256xf32>
    %136 = vector.extract_strided_slice %38 {offsets = [3, 0], sizes = [1, 768], strides = [1, 1]} : vector<8x768xf32> to vector<1x768xf32>
    %137 = arith.truncf %135 : vector<1x256xf32> to vector<1x256xbf16>
    %c0_56 = arith.constant 0 : index
    %c0_57 = arith.constant 0 : index
    %138 = vector.load %arg5[%c0_56, %c0_57] : memref<256x768xbf16, #tpu.memory_space<vmem>>, vector<256x768xbf16>
    %cst_58 = arith.constant dense<0.000000e+00> : vector<1x768xf32>
    %139 = tpu.matmul %137, %138, %cst_58 {dimension_numbers = #tpu.dot_dimension_numbers<[1], [0], [0], [1], [0, 0, 1, 1], [], []>} : vector<1x256xbf16>, vector<256x768xbf16>, vector<1x768xf32> -> vector<1x768xf32>
    %c0_59 = arith.constant 0 : index
    %c0_60 = arith.constant 0 : index
    %140 = vector.load %arg7[%c0_59, %c0_60] : memref<1x768xf32, #tpu.memory_space<vmem>>, vector<1x768xf32>
    %141 = arith.addf %139, %140 : vector<1x768xf32>
    %142 = vector.extract_strided_slice %136 {offsets = [0, 0], sizes = [1, 256], strides = [1, 1]} : vector<1x768xf32> to vector<1x256xf32>
    %143 = vector.extract_strided_slice %141 {offsets = [0, 0], sizes = [1, 256], strides = [1, 1]} : vector<1x768xf32> to vector<1x256xf32>
    %144 = arith.addf %142, %143 : vector<1x256xf32>
    %145 = arith.negf %144 : vector<1x256xf32>
    %146 = math.exp %145 : vector<1x256xf32>
    %cst_61 = arith.constant 1.000000e+00 : f32
    %147 = vector.broadcast %cst_61 : f32 to vector<1x256xf32>
    %148 = arith.addf %147, %146 : vector<1x256xf32>
    %149 = arith.divf %147, %148 : vector<1x256xf32>
    %150 = vector.extract_strided_slice %136 {offsets = [0, 256], sizes = [1, 256], strides = [1, 1]} : vector<1x768xf32> to vector<1x256xf32>
    %151 = vector.extract_strided_slice %141 {offsets = [0, 256], sizes = [1, 256], strides = [1, 1]} : vector<1x768xf32> to vector<1x256xf32>
    %152 = arith.addf %150, %151 : vector<1x256xf32>
    %153 = arith.negf %152 : vector<1x256xf32>
    %154 = math.exp %153 : vector<1x256xf32>
    %cst_62 = arith.constant 1.000000e+00 : f32
    %155 = vector.broadcast %cst_62 : f32 to vector<1x256xf32>
    %156 = arith.addf %155, %154 : vector<1x256xf32>
    %157 = arith.divf %155, %156 : vector<1x256xf32>
    %158 = vector.extract_strided_slice %136 {offsets = [0, 512], sizes = [1, 256], strides = [1, 1]} : vector<1x768xf32> to vector<1x256xf32>
    %159 = vector.extract_strided_slice %141 {offsets = [0, 512], sizes = [1, 256], strides = [1, 1]} : vector<1x768xf32> to vector<1x256xf32>
    %160 = arith.mulf %149, %159 : vector<1x256xf32>
    %161 = arith.addf %158, %160 : vector<1x256xf32>
    %162 = math.tanh %161 : vector<1x256xf32>
    %cst_63 = arith.constant 1.000000e+00 : f32
    %163 = vector.broadcast %cst_63 : f32 to vector<1x256xf32>
    %164 = arith.subf %163, %157 : vector<1x256xf32>
    %165 = arith.mulf %164, %162 : vector<1x256xf32>
    %166 = arith.mulf %157, %135 : vector<1x256xf32>
    %167 = arith.addf %165, %166 : vector<1x256xf32>
    %168 = vector.extract_strided_slice %38 {offsets = [4, 0], sizes = [1, 768], strides = [1, 1]} : vector<8x768xf32> to vector<1x768xf32>
    %169 = arith.truncf %167 : vector<1x256xf32> to vector<1x256xbf16>
    %c0_64 = arith.constant 0 : index
    %c0_65 = arith.constant 0 : index
    %170 = vector.load %arg5[%c0_64, %c0_65] : memref<256x768xbf16, #tpu.memory_space<vmem>>, vector<256x768xbf16>
    %cst_66 = arith.constant dense<0.000000e+00> : vector<1x768xf32>
    %171 = tpu.matmul %169, %170, %cst_66 {dimension_numbers = #tpu.dot_dimension_numbers<[1], [0], [0], [1], [0, 0, 1, 1], [], []>} : vector<1x256xbf16>, vector<256x768xbf16>, vector<1x768xf32> -> vector<1x768xf32>
    %c0_67 = arith.constant 0 : index
    %c0_68 = arith.constant 0 : index
    %172 = vector.load %arg7[%c0_67, %c0_68] : memref<1x768xf32, #tpu.memory_space<vmem>>, vector<1x768xf32>
    %173 = arith.addf %171, %172 : vector<1x768xf32>
    %174 = vector.extract_strided_slice %168 {offsets = [0, 0], sizes = [1, 256], strides = [1, 1]} : vector<1x768xf32> to vector<1x256xf32>
    %175 = vector.extract_strided_slice %173 {offsets = [0, 0], sizes = [1, 256], strides = [1, 1]} : vector<1x768xf32> to vector<1x256xf32>
    %176 = arith.addf %174, %175 : vector<1x256xf32>
    %177 = arith.negf %176 : vector<1x256xf32>
    %178 = math.exp %177 : vector<1x256xf32>
    %cst_69 = arith.constant 1.000000e+00 : f32
    %179 = vector.broadcast %cst_69 : f32 to vector<1x256xf32>
    %180 = arith.addf %179, %178 : vector<1x256xf32>
    %181 = arith.divf %179, %180 : vector<1x256xf32>
    %182 = vector.extract_strided_slice %168 {offsets = [0, 256], sizes = [1, 256], strides = [1, 1]} : vector<1x768xf32> to vector<1x256xf32>
    %183 = vector.extract_strided_slice %173 {offsets = [0, 256], sizes = [1, 256], strides = [1, 1]} : vector<1x768xf32> to vector<1x256xf32>
    %184 = arith.addf %182, %183 : vector<1x256xf32>
    %185 = arith.negf %184 : vector<1x256xf32>
    %186 = math.exp %185 : vector<1x256xf32>
    %cst_70 = arith.constant 1.000000e+00 : f32
    %187 = vector.broadcast %cst_70 : f32 to vector<1x256xf32>
    %188 = arith.addf %187, %186 : vector<1x256xf32>
    %189 = arith.divf %187, %188 : vector<1x256xf32>
    %190 = vector.extract_strided_slice %168 {offsets = [0, 512], sizes = [1, 256], strides = [1, 1]} : vector<1x768xf32> to vector<1x256xf32>
    %191 = vector.extract_strided_slice %173 {offsets = [0, 512], sizes = [1, 256], strides = [1, 1]} : vector<1x768xf32> to vector<1x256xf32>
    %192 = arith.mulf %181, %191 : vector<1x256xf32>
    %193 = arith.addf %190, %192 : vector<1x256xf32>
    %194 = math.tanh %193 : vector<1x256xf32>
    %cst_71 = arith.constant 1.000000e+00 : f32
    %195 = vector.broadcast %cst_71 : f32 to vector<1x256xf32>
    %196 = arith.subf %195, %189 : vector<1x256xf32>
    %197 = arith.mulf %196, %194 : vector<1x256xf32>
    %198 = arith.mulf %189, %167 : vector<1x256xf32>
    %199 = arith.addf %197, %198 : vector<1x256xf32>
    %200 = vector.extract_strided_slice %38 {offsets = [5, 0], sizes = [1, 768], strides = [1, 1]} : vector<8x768xf32> to vector<1x768xf32>
    %201 = arith.truncf %199 : vector<1x256xf32> to vector<1x256xbf16>
    %c0_72 = arith.constant 0 : index
    %c0_73 = arith.constant 0 : index
    %202 = vector.load %arg5[%c0_72, %c0_73] : memref<256x768xbf16, #tpu.memory_space<vmem>>, vector<256x768xbf16>
    %cst_74 = arith.constant dense<0.000000e+00> : vector<1x768xf32>
    %203 = tpu.matmul %201, %202, %cst_74 {dimension_numbers = #tpu.dot_dimension_numbers<[1], [0], [0], [1], [0, 0, 1, 1], [], []>} : vector<1x256xbf16>, vector<256x768xbf16>, vector<1x768xf32> -> vector<1x768xf32>
    %c0_75 = arith.constant 0 : index
    %c0_76 = arith.constant 0 : index
    %204 = vector.load %arg7[%c0_75, %c0_76] : memref<1x768xf32, #tpu.memory_space<vmem>>, vector<1x768xf32>
    %205 = arith.addf %203, %204 : vector<1x768xf32>
    %206 = vector.extract_strided_slice %200 {offsets = [0, 0], sizes = [1, 256], strides = [1, 1]} : vector<1x768xf32> to vector<1x256xf32>
    %207 = vector.extract_strided_slice %205 {offsets = [0, 0], sizes = [1, 256], strides = [1, 1]} : vector<1x768xf32> to vector<1x256xf32>
    %208 = arith.addf %206, %207 : vector<1x256xf32>
    %209 = arith.negf %208 : vector<1x256xf32>
    %210 = math.exp %209 : vector<1x256xf32>
    %cst_77 = arith.constant 1.000000e+00 : f32
    %211 = vector.broadcast %cst_77 : f32 to vector<1x256xf32>
    %212 = arith.addf %211, %210 : vector<1x256xf32>
    %213 = arith.divf %211, %212 : vector<1x256xf32>
    %214 = vector.extract_strided_slice %200 {offsets = [0, 256], sizes = [1, 256], strides = [1, 1]} : vector<1x768xf32> to vector<1x256xf32>
    %215 = vector.extract_strided_slice %205 {offsets = [0, 256], sizes = [1, 256], strides = [1, 1]} : vector<1x768xf32> to vector<1x256xf32>
    %216 = arith.addf %214, %215 : vector<1x256xf32>
    %217 = arith.negf %216 : vector<1x256xf32>
    %218 = math.exp %217 : vector<1x256xf32>
    %cst_78 = arith.constant 1.000000e+00 : f32
    %219 = vector.broadcast %cst_78 : f32 to vector<1x256xf32>
    %220 = arith.addf %219, %218 : vector<1x256xf32>
    %221 = arith.divf %219, %220 : vector<1x256xf32>
    %222 = vector.extract_strided_slice %200 {offsets = [0, 512], sizes = [1, 256], strides = [1, 1]} : vector<1x768xf32> to vector<1x256xf32>
    %223 = vector.extract_strided_slice %205 {offsets = [0, 512], sizes = [1, 256], strides = [1, 1]} : vector<1x768xf32> to vector<1x256xf32>
    %224 = arith.mulf %213, %223 : vector<1x256xf32>
    %225 = arith.addf %222, %224 : vector<1x256xf32>
    %226 = math.tanh %225 : vector<1x256xf32>
    %cst_79 = arith.constant 1.000000e+00 : f32
    %227 = vector.broadcast %cst_79 : f32 to vector<1x256xf32>
    %228 = arith.subf %227, %221 : vector<1x256xf32>
    %229 = arith.mulf %228, %226 : vector<1x256xf32>
    %230 = arith.mulf %221, %199 : vector<1x256xf32>
    %231 = arith.addf %229, %230 : vector<1x256xf32>
    %232 = vector.extract_strided_slice %38 {offsets = [6, 0], sizes = [1, 768], strides = [1, 1]} : vector<8x768xf32> to vector<1x768xf32>
    %233 = arith.truncf %231 : vector<1x256xf32> to vector<1x256xbf16>
    %c0_80 = arith.constant 0 : index
    %c0_81 = arith.constant 0 : index
    %234 = vector.load %arg5[%c0_80, %c0_81] : memref<256x768xbf16, #tpu.memory_space<vmem>>, vector<256x768xbf16>
    %cst_82 = arith.constant dense<0.000000e+00> : vector<1x768xf32>
    %235 = tpu.matmul %233, %234, %cst_82 {dimension_numbers = #tpu.dot_dimension_numbers<[1], [0], [0], [1], [0, 0, 1, 1], [], []>} : vector<1x256xbf16>, vector<256x768xbf16>, vector<1x768xf32> -> vector<1x768xf32>
    %c0_83 = arith.constant 0 : index
    %c0_84 = arith.constant 0 : index
    %236 = vector.load %arg7[%c0_83, %c0_84] : memref<1x768xf32, #tpu.memory_space<vmem>>, vector<1x768xf32>
    %237 = arith.addf %235, %236 : vector<1x768xf32>
    %238 = vector.extract_strided_slice %232 {offsets = [0, 0], sizes = [1, 256], strides = [1, 1]} : vector<1x768xf32> to vector<1x256xf32>
    %239 = vector.extract_strided_slice %237 {offsets = [0, 0], sizes = [1, 256], strides = [1, 1]} : vector<1x768xf32> to vector<1x256xf32>
    %240 = arith.addf %238, %239 : vector<1x256xf32>
    %241 = arith.negf %240 : vector<1x256xf32>
    %242 = math.exp %241 : vector<1x256xf32>
    %cst_85 = arith.constant 1.000000e+00 : f32
    %243 = vector.broadcast %cst_85 : f32 to vector<1x256xf32>
    %244 = arith.addf %243, %242 : vector<1x256xf32>
    %245 = arith.divf %243, %244 : vector<1x256xf32>
    %246 = vector.extract_strided_slice %232 {offsets = [0, 256], sizes = [1, 256], strides = [1, 1]} : vector<1x768xf32> to vector<1x256xf32>
    %247 = vector.extract_strided_slice %237 {offsets = [0, 256], sizes = [1, 256], strides = [1, 1]} : vector<1x768xf32> to vector<1x256xf32>
    %248 = arith.addf %246, %247 : vector<1x256xf32>
    %249 = arith.negf %248 : vector<1x256xf32>
    %250 = math.exp %249 : vector<1x256xf32>
    %cst_86 = arith.constant 1.000000e+00 : f32
    %251 = vector.broadcast %cst_86 : f32 to vector<1x256xf32>
    %252 = arith.addf %251, %250 : vector<1x256xf32>
    %253 = arith.divf %251, %252 : vector<1x256xf32>
    %254 = vector.extract_strided_slice %232 {offsets = [0, 512], sizes = [1, 256], strides = [1, 1]} : vector<1x768xf32> to vector<1x256xf32>
    %255 = vector.extract_strided_slice %237 {offsets = [0, 512], sizes = [1, 256], strides = [1, 1]} : vector<1x768xf32> to vector<1x256xf32>
    %256 = arith.mulf %245, %255 : vector<1x256xf32>
    %257 = arith.addf %254, %256 : vector<1x256xf32>
    %258 = math.tanh %257 : vector<1x256xf32>
    %cst_87 = arith.constant 1.000000e+00 : f32
    %259 = vector.broadcast %cst_87 : f32 to vector<1x256xf32>
    %260 = arith.subf %259, %253 : vector<1x256xf32>
    %261 = arith.mulf %260, %258 : vector<1x256xf32>
    %262 = arith.mulf %253, %231 : vector<1x256xf32>
    %263 = arith.addf %261, %262 : vector<1x256xf32>
    %264 = vector.extract_strided_slice %38 {offsets = [7, 0], sizes = [1, 768], strides = [1, 1]} : vector<8x768xf32> to vector<1x768xf32>
    %265 = arith.truncf %263 : vector<1x256xf32> to vector<1x256xbf16>
    %c0_88 = arith.constant 0 : index
    %c0_89 = arith.constant 0 : index
    %266 = vector.load %arg5[%c0_88, %c0_89] : memref<256x768xbf16, #tpu.memory_space<vmem>>, vector<256x768xbf16>
    %cst_90 = arith.constant dense<0.000000e+00> : vector<1x768xf32>
    %267 = tpu.matmul %265, %266, %cst_90 {dimension_numbers = #tpu.dot_dimension_numbers<[1], [0], [0], [1], [0, 0, 1, 1], [], []>} : vector<1x256xbf16>, vector<256x768xbf16>, vector<1x768xf32> -> vector<1x768xf32>
    %c0_91 = arith.constant 0 : index
    %c0_92 = arith.constant 0 : index
    %268 = vector.load %arg7[%c0_91, %c0_92] : memref<1x768xf32, #tpu.memory_space<vmem>>, vector<1x768xf32>
    %269 = arith.addf %267, %268 : vector<1x768xf32>
    %270 = vector.extract_strided_slice %264 {offsets = [0, 0], sizes = [1, 256], strides = [1, 1]} : vector<1x768xf32> to vector<1x256xf32>
    %271 = vector.extract_strided_slice %269 {offsets = [0, 0], sizes = [1, 256], strides = [1, 1]} : vector<1x768xf32> to vector<1x256xf32>
    %272 = arith.addf %270, %271 : vector<1x256xf32>
    %273 = arith.negf %272 : vector<1x256xf32>
    %274 = math.exp %273 : vector<1x256xf32>
    %cst_93 = arith.constant 1.000000e+00 : f32
    %275 = vector.broadcast %cst_93 : f32 to vector<1x256xf32>
    %276 = arith.addf %275, %274 : vector<1x256xf32>
    %277 = arith.divf %275, %276 : vector<1x256xf32>
    %278 = vector.extract_strided_slice %264 {offsets = [0, 256], sizes = [1, 256], strides = [1, 1]} : vector<1x768xf32> to vector<1x256xf32>
    %279 = vector.extract_strided_slice %269 {offsets = [0, 256], sizes = [1, 256], strides = [1, 1]} : vector<1x768xf32> to vector<1x256xf32>
    %280 = arith.addf %278, %279 : vector<1x256xf32>
    %281 = arith.negf %280 : vector<1x256xf32>
    %282 = math.exp %281 : vector<1x256xf32>
    %cst_94 = arith.constant 1.000000e+00 : f32
    %283 = vector.broadcast %cst_94 : f32 to vector<1x256xf32>
    %284 = arith.addf %283, %282 : vector<1x256xf32>
    %285 = arith.divf %283, %284 : vector<1x256xf32>
    %286 = vector.extract_strided_slice %264 {offsets = [0, 512], sizes = [1, 256], strides = [1, 1]} : vector<1x768xf32> to vector<1x256xf32>
    %287 = vector.extract_strided_slice %269 {offsets = [0, 512], sizes = [1, 256], strides = [1, 1]} : vector<1x768xf32> to vector<1x256xf32>
    %288 = arith.mulf %277, %287 : vector<1x256xf32>
    %289 = arith.addf %286, %288 : vector<1x256xf32>
    %290 = math.tanh %289 : vector<1x256xf32>
    %cst_95 = arith.constant 1.000000e+00 : f32
    %291 = vector.broadcast %cst_95 : f32 to vector<1x256xf32>
    %292 = arith.subf %291, %285 : vector<1x256xf32>
    %293 = arith.mulf %292, %290 : vector<1x256xf32>
    %294 = arith.mulf %285, %263 : vector<1x256xf32>
    %295 = arith.addf %293, %294 : vector<1x256xf32>
    %296 = tpu.concatenate %71, %103, %135, %167, %199, %231, %263, %295 in 0 : vector<1x256xf32>, vector<1x256xf32>, vector<1x256xf32>, vector<1x256xf32>, vector<1x256xf32>, vector<1x256xf32>, vector<1x256xf32>, vector<1x256xf32> -> vector<8x256xf32>
    %c0_96 = arith.constant 0 : index
    %c0_97 = arith.constant 0 : index
    %297 = vector.load %arg8[%c0_96, %c0_97] : memref<8x256xf32, #tpu.memory_space<vmem>>, vector<8x256xf32>
    tpu.vector_store %arg8[%c0_96, %c0_97], %296 {strides = array<i32>} : memref<8x256xf32, #tpu.memory_space<vmem>>, vector<8x256xf32>,
    return
  }
  func.func @transform_0(%arg0: i32, %arg1: memref<8xi32, #tpu.memory_space<smem>>) -> (i32, i32) {
    %c0_i32 = arith.constant 0 : i32
    %c0_i32_0 = arith.constant 0 : i32
    %c0_i32_1 = arith.constant 0 : i32
    return %c0_i32, %c0_i32_0 : i32, i32
  }
  func.func @transform_1(%arg0: i32, %arg1: memref<8xi32, #tpu.memory_space<smem>>) -> (i32, i32) {
    %c0_i32 = arith.constant 0 : i32
    %c0_i32_0 = arith.constant 0 : i32
    %c0_i32_1 = arith.constant 0 : i32
    return %c0_i32, %c0_i32_0 : i32, i32
  }
  func.func @transform_2(%arg0: i32, %arg1: memref<8xi32, #tpu.memory_space<smem>>) -> (i32, i32) {
    %c0_i32 = arith.constant 0 : i32
    %c0_i32_0 = arith.constant 0 : i32
    %c0_i32_1 = arith.constant 0 : i32
    return %c0_i32, %c0_i32_0 : i32, i32
  }
  func.func @transform_3(%arg0: i32, %arg1: memref<8xi32, #tpu.memory_space<smem>>) -> (i32, i32) {
    %c0_i32 = arith.constant 0 : i32
    %c0_i32_0 = arith.constant 0 : i32
    %c0_i32_1 = arith.constant 0 : i32
    return %c0_i32, %c0_i32_0 : i32, i32
  }
  func.func @transform_4(%arg0: i32, %arg1: memref<8xi32, #tpu.memory_space<smem>>) -> (i32, i32) {
    %c0_i32 = arith.constant 0 : i32
    %c0_i32_0 = arith.constant 0 : i32
    %c0_i32_1 = arith.constant 0 : i32
    return %c0_i32, %c0_i32_0 : i32, i32
  }
  func.func @transform_5(%arg0: i32, %arg1: memref<8xi32, #tpu.memory_space<smem>>) -> (i32, i32) {
    %c0_i32 = arith.constant 0 : i32
    %c0_i32_0 = arith.constant 0 : i32
    %c0_i32_1 = arith.constant 0 : i32
    return %c0_i32, %c0_i32_0 : i32, i32
  }
  func.func @transform_6(%arg0: i32, %arg1: memref<8xi32, #tpu.memory_space<smem>>) -> (i32, i32) {
    %c0_i32 = arith.constant 0 : i32
    %c0_i32_0 = arith.constant 0 : i32
    %c0_i32_1 = arith.constant 0 : i32
    return %c0_i32, %c0_i32_0 : i32, i32
  }
}

</mosaic_0001>

<bundles_post_ra>
// kernel: tpu_custom_call.1
= control target key start
LH: loop header
LB: loop body
LE: loop exit
PB: predicated region body
PF: predicated region fallthrough
CT: control target
= control target key end

     0   :  { %s5258_s27 = smov [#allocation4]   ;;  %s6681_s0 = inlined_call_operand.hbm [shape: s32[8], index: 0, kind: input, shape index: {}]   ;;  %s6682_s1 = inlined_call_operand.hbm [shape: f32[64,256], index: 1, kind: input, shape index: {}]   ;;  %s6683_s2 = inlined_call_operand.hbm [shape: f32[1,256], index: 2, kind: input, shape index: {}]   ;;  %s6684_s3 = inlined_call_operand.hbm [shape: bf16[256,768], index: 3, kind: input, shape index: {}]   ;;  %s6685_s4 = inlined_call_operand.hbm [shape: bf16[256,768], index: 4, kind: input, shape index: {}]   ;;  %s6686_s5 = inlined_call_operand.hbm [shape: f32[1,768], index: 5, kind: input, shape index: {}]   ;;  %s6687_s6 = inlined_call_operand.hbm [shape: f32[1,768], index: 6, kind: input, shape index: {}]   ;;  %s6688_s7 = inlined_call_operand.hbm [shape: f32[8,256], index: 7, kind: output, shape index: {}]  }
   0x1   :  { %s13_s26 = sshll.u32 %s6681_s0, 4  ;;  %s14_s26 = int_to_ptr.hbm [resolvable:$true] %s13_s26 }
   0x2   :  { %16 = dma.hbm_to_smem %s14_s26, 16, %s5258_s27, [#allocation3] }
   0x3   :  { %5246 = dma.done.wait [#allocation3], 16 }
   0x4   :  { %5247 = vsyncadd [#allocation3], 4294967280 }
   0x5   :  { %19 = sfence }
   0x6   :  { %20 = vsyncpa [#allocation6], 0 }
   0x7   :  { %21 = vsyncpa [#allocation9], 0 }
   0x8   :  { %22 = vsyncpa [#allocation12], 0 }
   0x9   :  { %23 = vsyncpa [#allocation15], 0  ;;  %s43_s30 = sshll.u32 %s6683_s2, 4  ;;  %s44_s30 = int_to_ptr.hbm [resolvable:$true] %s43_s30 }
   0xa   :  { %24 = vsyncpa [#allocation7], 0  ;;  %s5259_s8 = smov [#allocation8]   ;;  %s66_s11 = sshll.u32 %s6685_s4, 4  ;;  %s67_s11 = int_to_ptr.hbm [resolvable:$true] %s66_s11 }
   0xb   :  { %s45_s9 = sshll.u32 %s5259_s8, 4  ;;  %s5260_s12 = smov [#allocation11]   ;;  %s46_s9 = int_to_ptr.vmem [resolvable:$true] %s45_s9 }
   0xc   :  { %48 = dma.hbm_to_vmem [thread:$0]  %s44_s30, 32, %s46_s9, [#allocation9]  }
   0xd   :  { %s68_s13 = sshll.u32 %s5260_s12, 4  ;;  %s29_s16 = sshll.u32 %s6682_s1, 4  ;;  %s69_s13 = int_to_ptr.vmem [resolvable:$true] %s68_s13  ;;  %s30_s16 = int_to_ptr.hbm [resolvable:$true] %s29_s16 }
   0xe   :  { %s5261_s2 = smov 384   ;;  %s5262_s17 = smov 24  }
   0xf   :  { %74 = dma.hbm_to_vmem [thread:$0]  %s67_s11, 12288, %s69_s13, [#allocation12], %s5261_s2, %s5261_s2, %s5262_s17  }
  0x10   :  { %s5263_s18 = smov [#allocation5]   ;;  %s53_s22 = sshll.u32 %s6684_s3, 4  ;;  %s54_s22 = int_to_ptr.hbm [resolvable:$true] %s53_s22 }
  0x11   :  { %s31_s19 = sshll.u32 %s5263_s18, 4  ;;  %s5264_s4 = smov 256   ;;  %s32_s19 = int_to_ptr.vmem [resolvable:$true] %s31_s19 }
  0x12   :  { %s5265_s23 = smov 16   ;;  %s5266_s24 = smov [#allocation10]  }
  0x13   :  { %37 = dma.hbm_to_vmem [thread:$0]  %s30_s16, 2048, %s32_s19, [#allocation6], %s5264_s4, %s5264_s4, %s5265_s23  }
  0x14   :  { %s55_s25 = sshll.u32 %s5266_s24, 4  ;;  %s80_s27 = sshll.u32 %s6686_s5, 4  ;;  %s56_s25 = int_to_ptr.vmem [resolvable:$true] %s55_s25  ;;  %s81_s27 = int_to_ptr.hbm [resolvable:$true] %s80_s27 }
  0x15   :  { %61 = dma.hbm_to_vmem [thread:$0]  %s54_s22, 12288, %s56_s25, [#allocation9], %s5261_s2, %s5261_s2, %s5262_s17  }
  0x16   :  { %s91_s30 = sshll.u32 %s6687_s6, 4  ;;  %s5267_s8 = smov [#allocation13]   ;;  %s92_s30 = int_to_ptr.hbm [resolvable:$true] %s91_s30 }
  0x17   :  { %s82_s9 = sshll.u32 %s5267_s8, 4  ;;  %s5268_s3 = smov [#allocation14]   ;;  %s83_s9 = int_to_ptr.vmem [resolvable:$true] %s82_s9 }
  0x18   :  { %85 = dma.hbm_to_vmem [thread:$0]  %s81_s27, 96, %s83_s9, [#allocation12]  }
  0x19   :  { %s93_s0 = sshll.u32 %s5268_s3, 4  ;;  %s94_s0 = int_to_ptr.vmem [resolvable:$true] %s93_s0 }
  0x1a   :  { %96 = dma.hbm_to_vmem [thread:$0]  %s92_s30, 96, %s94_s0, [#allocation15]  }
  0x1b   :  { %5248 = dma.done.wait [#allocation6], 2048  }
  0x1c   :  { %5249 = vsyncadd [#allocation6], 4294965248 }
  0x1d   :  { %5250 = dma.done.wait [#allocation9], 12320  }
  0x1e   :  { %5251 = vsyncadd [#allocation9], 4294954976 }
  0x1f   :  { %5252 = dma.done.wait [#allocation12], 12384  }
  0x20   :  { %5253 = vsyncadd [#allocation12], 4294954912 }
  0x21   :  { %5254 = dma.done.wait [#allocation15], 96  }
  0x22   :  { %5255 = vsyncadd [#allocation15], 4294967200  ;;  %v4064_v0 = vld [vmem:[#allocation10 + $0x150] sm:$0xf]  ;;  %v4747_v1 = vld [vmem:[#allocation10 + $0x164] sm:$0xf0] }
  0x23   :  { %v4256_v2 = vld [vmem:[#allocation10 + $0x2d0] sm:$0xf]  ;;  %v4065_v3 = vor.u32 %v4747_v1, %v4064_v0  ;;  %v4795_v4 = vld [vmem:[#allocation10 + $0x2e4] sm:$0xf0]  ;;  %v4744_v5 = vld [vmem:[#allocation10 + $0x154] sm:$0xf] }
  0x24   :  { %v4066_v6 = vld [vmem:[#allocation10 + $0x168] sm:$0xf0]  ;;  %v4257_v7 = vor.u32 %v4795_v4, %v4256_v2  ;;  %v4792_v9 = vld [vmem:[#allocation10 + $0x2d4] sm:$0xf]  ;;  %v4040_v11 = vld [vmem:[#allocation10 + $0x120] sm:$0xf] }
  0x25   :  { %v4069_v8 = vor.u32 %v4744_v5, %v4066_v6  ;;  %v4258_v10 = vld [vmem:[#allocation10 + $0x2e8] sm:$0xf0]  ;;  %822 = vmatpush.bf16.msra.mxu0 %v4065_v3  ;;  %v4741_v13 = vld [vmem:[#allocation10 + $0x134] sm:$0xf0]  ;;  %v4232_v14 = vld [vmem:[#allocation10 + $0x2a0] sm:$0xf] }
  0x26   :  { %v4261_v12 = vor.u32 %v4792_v9, %v4258_v10  ;;  %v4789_v15 = vld [vmem:[#allocation10 + $0x2b4] sm:$0xf0]  ;;  %835 = vmatpush.bf16.msra.mxu1 %v4257_v7  ;;  %v4041_v16 = vor.u32 %v4741_v13, %v4040_v11  ;;  %v4738_v18 = vld [vmem:[#allocation10 + $0x124] sm:$0xf]  ;;  %v4042_v19 = vld [vmem:[#allocation10 + $0x138] sm:$0xf0] }
  0x27   :  { %848 = vmatpush.bf16.msra.mxu2 %v4069_v8  ;;  %v4233_v17 = vor.u32 %v4789_v15, %v4232_v14  ;;  %v4786_v20 = vld [vmem:[#allocation10 + $0x2a4] sm:$0xf]  ;;  %v4045_v21 = vor.u32 %v4738_v18, %v4042_v19  ;;  %v4234_v22 = vld [vmem:[#allocation10 + $0x2b8] sm:$0xf0]  ;;  %v4016_v23 = vld [vmem:[#allocation10 + $0xf0] sm:$0xf] }
  0x28   :  { %861 = vmatpush.bf16.msra.mxu3 %v4261_v12  ;;  %v4735_v24 = vld [vmem:[#allocation10 + $0x104] sm:$0xf0]  ;;  %v4237_v25 = vor.u32 %v4786_v20, %v4234_v22  ;;  %v4208_v26 = vld [vmem:[#allocation10 + $0x270] sm:$0xf]  ;;  %v4732_v28 = vld [vmem:[#allocation10 + $0xf4] sm:$0xf] }
  0x29   :  { %v4783_v27 = vld [vmem:[#allocation10 + $0x284] sm:$0xf0]  ;;  %823 = vmatpush.bf16.msra.mxu0 %v4041_v16  ;;  %v4017_v29 = vor.u32 %v4735_v24, %v4016_v23  ;;  %v4018_v30 = vld [vmem:[#allocation10 + $0x108] sm:$0xf0]  ;;  %v4780_v31 = vld [vmem:[#allocation10 + $0x274] sm:$0xf] }
  0x2a   :  { %v4210_v32 = vld [vmem:[#allocation10 + $0x288] sm:$0xf0]  ;;  %836 = vmatpush.bf16.msra.mxu1 %v4233_v17  ;;  %v4209_v33 = vor.u32 %v4783_v27, %v4208_v26  ;;  %v4021_v34 = vor.u32 %v4732_v28, %v4018_v30  ;;  %v3992_v35 = vld [vmem:[#allocation10 + $0xc0] sm:$0xf]  ;;  %v4729_v36 = vld [vmem:[#allocation10 + $0xd4] sm:$0xf0] }
  0x2b   :  { %849 = vmatpush.bf16.msra.mxu2 %v4045_v21  ;;  %v4184_v37 = vld [vmem:[#allocation10 + $0x240] sm:$0xf]  ;;  %v4213_v38 = vor.u32 %v4780_v31, %v4210_v32  ;;  %v4777_v39 = vld [vmem:[#allocation10 + $0x254] sm:$0xf0]  ;;  %v4726_v40 = vld [vmem:[#allocation10 + $0xc4] sm:$0xf]  ;;  %v3993_v44 = vor.u32 %v4729_v36, %v3992_v35 }
  0x2c   :  { %862 = vmatpush.bf16.msra.mxu3 %v4237_v25  ;;  %v3994_v41 = vld [vmem:[#allocation10 + $0xd8] sm:$0xf0]  ;;  %v4774_v42 = vld [vmem:[#allocation10 + $0x244] sm:$0xf]  ;;  %v4185_v45 = vor.u32 %v4777_v39, %v4184_v37  ;;  %v3968_v47 = vld [vmem:[#allocation10 + $0x90] sm:$0xf] }
  0x2d   :  { %v4186_v43 = vld [vmem:[#allocation10 + $0x258] sm:$0xf0]  ;;  %824 = vmatpush.bf16.msra.mxu0 %v4017_v29  ;;  %v3997_v46 = vor.u32 %v4726_v40, %v3994_v41  ;;  %v4723_v48 = vld [vmem:[#allocation10 + $0xa4] sm:$0xf0]  ;;  %v4160_v49 = vld [vmem:[#allocation10 + $0x210] sm:$0xf] }
  0x2e   :  { %837 = vmatpush.bf16.msra.mxu1 %v4209_v33  ;;  %v4189_v50 = vor.u32 %v4774_v42, %v4186_v43  ;;  %v4771_v51 = vld [vmem:[#allocation10 + $0x224] sm:$0xf0]  ;;  %v4720_v52 = vld [vmem:[#allocation10 + $0x94] sm:$0xf]  ;;  %v3970_v53 = vld [vmem:[#allocation10 + $0xa8] sm:$0xf0]  ;;  %v3969_v56 = vor.u32 %v4723_v48, %v3968_v47 }
  0x2f   :  { %850 = vmatpush.bf16.msra.mxu2 %v4021_v34  ;;  %v4768_v54 = vld [vmem:[#allocation10 + $0x214] sm:$0xf]  ;;  %v4162_v55 = vld [vmem:[#allocation10 + $0x228] sm:$0xf0]  ;;  %v4161_v57 = vor.u32 %v4771_v51, %v4160_v49  ;;  %v3973_v58 = vor.u32 %v4720_v52, %v3970_v53  ;;  %v3944_v59 = vld [vmem:[#allocation10 + $0x60] sm:$0xf] }
  0x30   :  { %863 = vmatpush.bf16.msra.mxu3 %v4213_v38  ;;  %v4717_v60 = vld [vmem:[#allocation10 + $0x74] sm:$0xf0]  ;;  %v4136_v61 = vld [vmem:[#allocation10 + $0x1e0] sm:$0xf]  ;;  %v4165_v62 = vor.u32 %v4768_v54, %v4162_v55  ;;  %v4714_v0 = vld [vmem:[#allocation10 + $0x64] sm:$0xf] }
  0x31   :  { %825 = vmatpush.bf16.msra.mxu0 %v3993_v44  ;;  %v4765_v63 = vld [vmem:[#allocation10 + $0x1f4] sm:$0xf0]  ;;  %v3946_v1 = vld [vmem:[#allocation10 + $0x78] sm:$0xf0]  ;;  %v4762_v2 = vld [vmem:[#allocation10 + $0x1e4] sm:$0xf]  ;;  %v3945_v4 = vor.u32 %v4717_v60, %v3944_v59 }
  0x32   :  { %838 = vmatpush.bf16.msra.mxu1 %v4185_v45  ;;  %v4138_v3 = vld [vmem:[#allocation10 + $0x1f8] sm:$0xf0]  ;;  %v4137_v5 = vor.u32 %v4765_v63, %v4136_v61  ;;  %v3949_v6 = vor.u32 %v4714_v0, %v3946_v1  ;;  %v3920_v7 = vld [vmem:[#allocation10 + $0x30] sm:$0xf]  ;;  %v4711_v8 = vld [vmem:[#allocation10 + $0x44] sm:$0xf0]  ;;  %v131_v63 = vlaneseq }
  0x33   :  { %851 = vmatpush.bf16.msra.mxu2 %v3997_v46  ;;  %v4112_v9 = vld [vmem:[#allocation10 + $0x1b0] sm:$0xf]  ;;  %v4141_v10 = vor.u32 %v4762_v2, %v4138_v3  ;;  %v4759_v11 = vld [vmem:[#allocation10 + $0x1c4] sm:$0xf0]  ;;  %v4708_v12 = vld [vmem:[#allocation10 + $0x34] sm:$0xf]  ;;  %v3921_v16 = vor.u32 %v4711_v8, %v3920_v7 }
  0x34   :  { %864 = vmatpush.bf16.msra.mxu3 %v4189_v50  ;;  %v3922_v13 = vld [vmem:[#allocation10 + $0x48] sm:$0xf0]  ;;  %v4756_v14 = vld [vmem:[#allocation10 + $0x1b4] sm:$0xf]  ;;  %s5331_s5 = sld [smem:[#allocation4]]  ;;  %v4113_v19 = vor.u32 %v4759_v11, %v4112_v9  ;;  %vm5346_vm0 = vcmp.lt.s32.totalorder %v131_v63, 256 }
  0x35   :  { %826 = vmatpush.bf16.msra.mxu0 %v3969_v56  ;;  %v4114_v15 = vld [vmem:[#allocation10 + $0x1c8] sm:$0xf0]  ;;  %v3896_v17 = vld [vmem:[#allocation10] sm:$0xf]  ;;  %v4705_v18 = vld [vmem:[#allocation10 + $0x14] sm:$0xf0]  ;;  %v3925_v20 = vor.u32 %v4708_v12, %v3922_v13 }
  0x36   :  { %839 = vmatpush.bf16.msra.mxu1 %v4161_v57  ;;  %s5333_s6 = sld [smem:[#allocation4 + $0x1]]  ;;  %v4088_v21 = vld [vmem:[#allocation10 + $0x180] sm:$0xf]  ;;  %v4753_v22 = vld [vmem:[#allocation10 + $0x194] sm:$0xf0]  ;;  %v4117_v24 = vor.u32 %v4756_v14, %v4114_v15  ;;  %v3897_v31 = vor.u32 %v4705_v18, %v3896_v17 }
  0x37   :  { %852 = vmatpush.bf16.msra.mxu2 %v3973_v58  ;;  %v4702_v23 = vld [vmem:[#allocation10 + $0x4] sm:$0xf]  ;;  %v3898_v25 = vld [vmem:[#allocation10 + $0x18] sm:$0xf0]  ;;  %v4072_v28 = vld [vmem:[#allocation10 + $0x158] sm:$0xf]  ;;  %v4089_v35 = vor.u32 %v4753_v22, %v4088_v21 }
  0x38   :  { %865 = vmatpush.bf16.msra.mxu3 %v4165_v62  ;;  %v4750_v26 = vld [vmem:[#allocation10 + $0x184] sm:$0xf]  ;;  %v4090_v27 = vld [vmem:[#allocation10 + $0x198] sm:$0xf0]  ;;  %v4748_v29 = vld [vmem:[#allocation10 + $0x16c] sm:$0xf0]  ;;  %v3901_v36 = vor.u32 %v4702_v23, %v3898_v25 }
  0x39   :  { %827 = vmatpush.bf16.msra.mxu0 %v3945_v4  ;;  %v4264_v30 = vld [vmem:[#allocation10 + $0x2d8] sm:$0xf]  ;;  %v4796_v32 = vld [vmem:[#allocation10 + $0x2ec] sm:$0xf0]  ;;  %v4745_v33 = vld [vmem:[#allocation10 + $0x15c] sm:$0xf]  ;;  %v4093_v39 = vor.u32 %v4750_v26, %v4090_v27  ;;  %v4073_v40 = vor.u32 %v4748_v29, %v4072_v28 }
  0x3a   :  { %840 = vmatpush.bf16.msra.mxu1 %v4137_v5  ;;  %v4074_v34 = vld [vmem:[#allocation10 + $0x170] sm:$0xf0]  ;;  %v4793_v37 = vld [vmem:[#allocation10 + $0x2dc] sm:$0xf]  ;;  %s5335_s10 = sld [smem:[#allocation4 + $0x2]]  ;;  %v4265_v41 = vor.u32 %v4796_v32, %v4264_v30  ;;  %s122_s14 = sshra.s32 %s5331_s5, 3 }
  0x3b   :  { %853 = vmatpush.bf16.msra.mxu2 %v3949_v6  ;;  %v4266_v38 = vld [vmem:[#allocation10 + $0x2f0] sm:$0xf0]  ;;  %s5337_s11 = sld [smem:[#allocation4 + $0x3]]  ;;  %v4077_v42 = vor.u32 %v4745_v33, %v4074_v34  ;;  %v4048_v43 = vld [vmem:[#allocation10 + $0x128] sm:$0xf]  ;;  %s125_s15 = sand.u32 7, %s5331_s5 }
  0x3c   :  { %866 = vmatpush.bf16.msra.mxu3 %v4141_v10  ;;  %v4742_v44 = vld [vmem:[#allocation10 + $0x13c] sm:$0xf0]  ;;  %v4240_v45 = vld [vmem:[#allocation10 + $0x2a8] sm:$0xf]  ;;  %v4269_v46 = vor.u32 %v4793_v37, %v4266_v38  ;;  %v4739_v48 = vld [vmem:[#allocation10 + $0x12c] sm:$0xf] }
  0x3d   :  { %828 = vmatpush.bf16.msra.mxu0 %v3921_v16  ;;  %v4790_v47 = vld [vmem:[#allocation10 + $0x2bc] sm:$0xf0]  ;;  %v4050_v49 = vld [vmem:[#allocation10 + $0x140] sm:$0xf0]  ;;  %v4787_v50 = vld [vmem:[#allocation10 + $0x2ac] sm:$0xf]  ;;  %v4049_v52 = vor.u32 %v4742_v44, %v4048_v43 }
  0x3e   :  { %841 = vmatpush.bf16.msra.mxu1 %v4113_v19  ;;  %v4242_v51 = vld [vmem:[#allocation10 + $0x2c0] sm:$0xf0]  ;;  %s5339_s12 = sld [smem:[#allocation4 + $0x4]]  ;;  %v4024_v53 = vld [vmem:[#allocation10 + $0xf8] sm:$0xf]  ;;  %v4241_v54 = vor.u32 %v4790_v47, %v4240_v45  ;;  %v4053_v55 = vor.u32 %v4739_v48, %v4050_v49  ;;  %s4694_s16 = sshll.u32 %s122_s14, 4 }
  0x3f   :  { %854 = vmatpush.bf16.msra.mxu2 %v3925_v20  ;;  %s5341_s13 = sld [smem:[#allocation4 + $0x5]]  ;;  %v4736_v56 = vld [vmem:[#allocation10 + $0x10c] sm:$0xf0]  ;;  %v4216_v57 = vld [vmem:[#allocation10 + $0x278] sm:$0xf]  ;;  %v4245_v59 = vor.u32 %v4787_v50, %v4242_v51  ;;  %s138_s2 = sshra.s32 %s5333_s6, 3 }
  0x40   :  { %867 = vmatpush.bf16.msra.mxu3 %v4117_v24  ;;  %v4784_v58 = vld [vmem:[#allocation10 + $0x28c] sm:$0xf0]  ;;  %v4733_v60 = vld [vmem:[#allocation10 + $0xfc] sm:$0xf]  ;;  %v4026_v61 = vld [vmem:[#allocation10 + $0x110] sm:$0xf0]  ;;  %v4025_v3 = vor.u32 %v4736_v56, %v4024_v53  ;;  %s128_s17 = sadd.s32 %s4694_s16, %s125_s15 }
  0x41   :  { %829 = vmatpush.bf16.msra.mxu0 %v3897_v31  ;;  %v4781_v62 = vld [vmem:[#allocation10 + $0x27c] sm:$0xf]  ;;  %v4218_v0 = vld [vmem:[#allocation10 + $0x290] sm:$0xf0]  ;;  %v4000_v1 = vld [vmem:[#allocation10 + $0xc8] sm:$0xf]  ;;  %v4217_v6 = vor.u32 %v4784_v58, %v4216_v57  ;;  %v4029_v7 = vor.u32 %v4733_v60, %v4026_v61 }
  0x42   :  { %842 = vmatpush.bf16.msra.mxu1 %v4089_v35  ;;  %v4730_v2 = vld [vmem:[#allocation10 + $0xdc] sm:$0xf0]  ;;  %v4192_v4 = vld [vmem:[#allocation10 + $0x248] sm:$0xf]  ;;  %v4727_v8 = vld [vmem:[#allocation10 + $0xcc] sm:$0xf]  ;;  %v4221_v10 = vor.u32 %v4781_v62, %v4218_v0 }
  0x43   :  { %855 = vmatpush.bf16.msra.mxu2 %v3901_v36  ;;  %v4778_v5 = vld [vmem:[#allocation10 + $0x25c] sm:$0xf0]  ;;  %v4002_v9 = vld [vmem:[#allocation10 + $0xe0] sm:$0xf0]  ;;  %v4775_v11 = vld [vmem:[#allocation10 + $0x24c] sm:$0xf]  ;;  %v4001_v16 = vor.u32 %v4730_v2, %v4000_v1 }
  0x44   :  { %868 = vmatpush.bf16.msra.mxu3 %v4093_v39  ;;  %v4194_v12 = vld [vmem:[#allocation10 + $0x260] sm:$0xf0]  ;;  %s141_s18 = sand.u32 7, %s5333_s6  ;;  %v3976_v14 = vld [vmem:[#allocation10 + $0x98] sm:$0xf]  ;;  %s4695_s19 = sshll.u32 %s138_s2, 4  ;;  %v4193_v22 = vor.u32 %v4778_v5, %v4192_v4  ;;  %v4005_v23 = vor.u32 %v4727_v8, %v4002_v9 }
  0x45   :  { %874 = vmatpush.bf16.msrb.mxu0 %v4073_v40  ;;  %v4724_v15 = vld [vmem:[#allocation10 + $0xac] sm:$0xf0]  ;;  %v4168_v17 = vld [vmem:[#allocation10 + $0x218] sm:$0xf]  ;;  %v4721_v19 = vld [vmem:[#allocation10 + $0x9c] sm:$0xf]  ;;  %s144_s21 = sadd.s32 %s4695_s19, %s141_s18  ;;  %v4197_v26 = vor.u32 %v4775_v11, %v4194_v12 }
  0x46   :  { %887 = vmatpush.bf16.msrb.mxu1 %v4265_v41  ;;  %v4772_v18 = vld [vmem:[#allocation10 + $0x22c] sm:$0xf0]  ;;  %v3978_v20 = vld [vmem:[#allocation10 + $0xb0] sm:$0xf0]  ;;  %s129_s20 = scalar_lea.vmem [#allocation5], %s128_s17  ;;  %s151_s22 = sshra.s32 %s5335_s10, 3  ;;  %v3977_v30 = vor.u32 %v4724_v15, %v3976_v14 }
  0x47   :  { %900 = vmatpush.bf16.msrb.mxu2 %v4077_v42  ;;  %v130_v21 = vld [vmem:[%s129_s20] ss:$8 sm:$0x3]  ;;  %v4769_v24 = vld [vmem:[#allocation10 + $0x21c] sm:$0xf]  ;;  %s154_s4 = sand.u32 7, %s5335_s10  ;;  %v4169_v35 = vor.u32 %v4772_v18, %v4168_v17  ;;  %v3981_v36 = vor.u32 %v4721_v19, %v3978_v20 }
  0x48   :  { %913 = vmatpush.bf16.msrb.mxu3 %v4269_v46  ;;  %v4170_v25 = vld [vmem:[#allocation10 + $0x230] sm:$0xf0]  ;;  %135 = vst.msk [vmem:[#allocation2] ss:$8 sm:$0x3] %vm5346_vm0, %v130_v21  ;;  %s145_s23 = scalar_lea.vmem [#allocation5], %s144_s21 }
  0x49   :  { %875 = vmatpush.bf16.msrb.mxu0 %v4049_v52  ;;  %v146_v27 = vld [vmem:[%s145_s23] ss:$8 sm:$0x3]  ;;  %s4696_s24 = sshll.u32 %s151_s22, 4  ;;  %s164_s25 = sshra.s32 %s5337_s11, 3  ;;  %v4173_v40 = vor.u32 %v4769_v24, %v4170_v25 }
  0x4a   :  { %888 = vmatpush.bf16.msrb.mxu1 %v4241_v54  ;;  %v3952_v28 = vld [vmem:[#allocation10 + $0x68] sm:$0xf]  ;;  %v4718_v29 = vld [vmem:[#allocation10 + $0x7c] sm:$0xf0]  ;;  %s157_s26 = sadd.s32 %s4696_s24, %s154_s4  ;;  %s167_s1 = sand.u32 7, %s5337_s11 }
  0x4b   :  { %901 = vmatpush.bf16.msrb.mxu2 %v4053_v55  ;;  %148 = vst.msk [vmem:[#allocation2 + $0x1] ss:$8 sm:$0x3] %vm5346_vm0, %v146_v27  ;;  %v4144_v31 = vld [vmem:[#allocation10 + $0x1e8] sm:$0xf]  ;;  %s4697_s27 = sshll.u32 %s164_s25, 4  ;;  %v3953_v44 = vor.u32 %v4718_v29, %v3952_v28 }
  0x4c   :  { %914 = vmatpush.bf16.msrb.mxu3 %v4245_v59  ;;  %v4766_v32 = vld [vmem:[#allocation10 + $0x1fc] sm:$0xf0]  ;;  %v4715_v33 = vld [vmem:[#allocation10 + $0x6c] sm:$0xf]  ;;  %v3954_v34 = vld [vmem:[#allocation10 + $0x80] sm:$0xf0]  ;;  %s170_s29 = sadd.s32 %s4697_s27, %s167_s1 }
  0x4d   :  { %876 = vmatpush.bf16.msrb.mxu0 %v4025_v3  ;;  %v4763_v37 = vld [vmem:[#allocation10 + $0x1ec] sm:$0xf]  ;;  %v4146_v38 = vld [vmem:[#allocation10 + $0x200] sm:$0xf0]  ;;  %s158_s28 = scalar_lea.vmem [#allocation5], %s157_s26  ;;  %s177_s30 = sshra.s32 %s5339_s12, 3  ;;  %v4145_v48 = vor.u32 %v4766_v32, %v4144_v31  ;;  %v3957_v49 = vor.u32 %v4715_v33, %v3954_v34 }
  0x4e   :  { %889 = vmatpush.bf16.msrb.mxu1 %v4217_v6  ;;  %v159_v39 = vld [vmem:[%s158_s28] ss:$8 sm:$0x3]  ;;  %s180_s8 = sand.u32 7, %s5339_s12  ;;  %s171_s9 = scalar_lea.vmem [#allocation5], %s170_s29  ;;  %v4149_v52 = vor.u32 %v4763_v37, %v4146_v38 }
  0x4f   :  { %902 = vmatpush.bf16.msrb.mxu2 %v4029_v7  ;;  %161 = vst.msk [vmem:[#allocation2 + $0x2] ss:$8 sm:$0x3] %vm5346_vm0, %v159_v39  ;;  %v172_v41 = vld [vmem:[%s171_s9] ss:$8 sm:$0x3] }
  0x50   :  { %915 = vmatpush.bf16.msrb.mxu3 %v4221_v10  ;;  %s4698_s3 = sshll.u32 %s177_s30, 4  ;;  %s190_s0 = sshra.s32 %s5341_s13, 3  ;;  %v3928_v42 = vld [vmem:[#allocation10 + $0x38] sm:$0xf]  ;;  %v4712_v43 = vld [vmem:[#allocation10 + $0x4c] sm:$0xf0] }
  0x51   :  { %877 = vmatpush.bf16.msrb.mxu0 %v4001_v16  ;;  %174 = vst.msk [vmem:[#allocation2 + $0x3] ss:$8 sm:$0x3] %vm5346_vm0, %v172_v41  ;;  %s183_s5 = sadd.s32 %s4698_s3, %s180_s8  ;;  %s193_s6 = sand.u32 7, %s5341_s13  ;;  %v4120_v45 = vld [vmem:[#allocation10 + $0x1b8] sm:$0xf]  ;;  %v3929_v55 = vor.u32 %v4712_v43, %v3928_v42 }
  0x52   :  { %890 = vmatpush.bf16.msrb.mxu1 %v4193_v22  ;;  %v4760_v46 = vld [vmem:[#allocation10 + $0x1cc] sm:$0xf0]  ;;  %v4709_v47 = vld [vmem:[#allocation10 + $0x3c] sm:$0xf]  ;;  %s4699_s10 = sshll.u32 %s190_s0, 4  ;;  %s184_s11 = scalar_lea.vmem [#allocation5], %s183_s5 }
  0x53   :  { %903 = vmatpush.bf16.msrb.mxu2 %v4005_v23  ;;  %v3930_v50 = vld [vmem:[#allocation10 + $0x50] sm:$0xf0]  ;;  %v4757_v51 = vld [vmem:[#allocation10 + $0x1bc] sm:$0xf]  ;;  %s196_s12 = sadd.s32 %s4699_s10, %s193_s6  ;;  %s5367_s14 = sld [smem:[#allocation4 + $0x6]]  ;;  %v4121_v57 = vor.u32 %v4760_v46, %v4120_v45 }
  0x54   :  { %916 = vmatpush.bf16.msrb.mxu3 %v4197_v26  ;;  %v185_v53 = vld [vmem:[%s184_s11] ss:$8 sm:$0x3]  ;;  %s5371_s13 = sld [smem:[#allocation4 + $0x7]]  ;;  %s197_s15 = scalar_lea.vmem [#allocation5], %s196_s12  ;;  %v3933_v58 = vor.u32 %v4709_v47, %v3930_v50 }
  0x55   :  { %878 = vmatpush.bf16.msrb.mxu0 %v3977_v30  ;;  %187 = vst.msk [vmem:[#allocation2 + $0x4] ss:$8 sm:$0x3] %vm5346_vm0, %v185_v53  ;;  %v198_v54 = vld [vmem:[%s197_s15] ss:$8 sm:$0x3] }
  0x56   :  { %891 = vmatpush.bf16.msrb.mxu1 %v4169_v35  ;;  %v4122_v56 = vld [vmem:[#allocation10 + $0x1d0] sm:$0xf0]  ;;  %200 = vst.msk [vmem:[#allocation2 + $0x5] ss:$8 sm:$0x3] %vm5346_vm0, %v198_v54  ;;  %s5269_s24 = smov [#allocation16]  }
  0x57   :  { %904 = vmatpush.bf16.msrb.mxu2 %v3981_v36  ;;  %v3904_v59 = vld [vmem:[#allocation10 + $0x8] sm:$0xf]  ;;  %v4125_v60 = vor.u32 %v4757_v51, %v4122_v56  ;;  %v4706_v61 = vld [vmem:[#allocation10 + $0x1c] sm:$0xf0]  ;;  %v4703_v0 = vld [vmem:[#allocation10 + $0xc] sm:$0xf] }
  0x58   :  { %917 = vmatpush.bf16.msrb.mxu3 %v4173_v40  ;;  %v4096_v62 = vld [vmem:[#allocation10 + $0x188] sm:$0xf]  ;;  %v4754_v63 = vld [vmem:[#allocation10 + $0x19c] sm:$0xf0]  ;;  %v3906_v1 = vld [vmem:[#allocation10 + $0x20] sm:$0xf0]  ;;  %v3905_v3 = vor.u32 %v4706_v61, %v3904_v59 }
  0x59   :  { %879 = vmatpush.bf16.msrb.mxu0 %v3953_v44  ;;  %v4751_v2 = vld [vmem:[#allocation10 + $0x18c] sm:$0xf]  ;;  %s203_s16 = sshra.s32 %s5367_s14, 3  ;;  %s206_s2 = sand.u32 7, %s5367_s14  ;;  %v4098_v4 = vld [vmem:[#allocation10 + $0x1a0] sm:$0xf0]  ;;  %v4097_v5 = vor.u32 %v4754_v63, %v4096_v62  ;;  %v3909_v6 = vor.u32 %v4703_v0, %v3906_v1 }
  0x5a   :  { %892 = vmatpush.bf16.msrb.mxu1 %v4145_v48  ;;  %s4700_s17 = sshll.u32 %s203_s16, 4  ;;  %s216_s18 = sshra.s32 %s5371_s13, 3  ;;  %v4101_v7 = vor.u32 %v4751_v2, %v4098_v4  ;;  %v4080_v10 = vld [vmem:[#allocation10 + $0x160] sm:$0xf]  ;;  %v4749_v11 = vld [vmem:[#allocation10 + $0x174] sm:$0xf0] }
  0x5b   :  { %905 = vmatpush.bf16.msrb.mxu2 %v3957_v49  ;;  %s209_s19 = sadd.s32 %s4700_s17, %s206_s2  ;;  %s219_s20 = sand.u32 7, %s5371_s13  ;;  %v4272_v12 = vld [vmem:[#allocation10 + $0x2e0] sm:$0xf]  ;;  %v4797_v14 = vld [vmem:[#allocation10 + $0x2f4] sm:$0xf0]  ;;  %v4081_v23 = vor.u32 %v4749_v11, %v4080_v10 }
  0x5c   :  { %918 = vmatpush.bf16.msrb.mxu3 %v4149_v52  ;;  %s4701_s21 = sshll.u32 %s216_s18, 4  ;;  %s210_s22 = scalar_lea.vmem [#allocation5], %s209_s19  ;;  %v4746_v15 = vld [vmem:[#allocation10 + $0x164] sm:$0xf]  ;;  %v4082_v16 = vld [vmem:[#allocation10 + $0x178] sm:$0xf0]  ;;  %v4273_v24 = vor.u32 %v4797_v14, %v4272_v12 }
  0x5d   :  { %880 = vmatpush.bf16.msrb.mxu0 %v3929_v55  ;;  %v211_v8 = vld [vmem:[%s210_s22] ss:$8 sm:$0x3]  ;;  %s222_s4 = sadd.s32 %s4701_s21, %s219_s20  ;;  %v4794_v17 = vld [vmem:[#allocation10 + $0x2e4] sm:$0xf]  ;;  %v4085_v13 = vor.u32 %v4746_v15, %v4082_v16  ;;  %s3832_s25 = sshll.u32 %s5269_s24, 4  ;;  %s3833_s25 = int_to_ptr.vmem [resolvable:$true] %s3832_s25 }
  0x5e   :  { %893 = vmatpush.bf16.msrb.mxu1 %v4121_v57  ;;  %213 = vst.msk [vmem:[#allocation2 + $0x6] ss:$8 sm:$0x3] %vm5346_vm0, %v211_v8  ;;  %s223_s23 = scalar_lea.vmem [#allocation5], %s222_s4  ;;  %v4274_v18 = vld [vmem:[#allocation10 + $0x2f8] sm:$0xf0] }
  0x5f   :  { %906 = vmatpush.bf16.msrb.mxu2 %v3933_v58  ;;  %v224_v9 = vld [vmem:[%s223_s23] ss:$8 sm:$0x3]  ;;  %v4056_v25 = vld [vmem:[#allocation10 + $0x130] sm:$0xf]  ;;  %v4277_v27 = vor.u32 %v4794_v17, %v4274_v18  ;;  %s3834_s27 = sshll.u32 %s6688_s7, 4  ;;  %s3835_s27 = int_to_ptr.hbm [resolvable:$true] %s3834_s27 }
  0x60   :  { %919 = vmatpush.bf16.msrb.mxu3 %v4125_v60  ;;  %226 = vst.msk [vmem:[#allocation2 + $0x7] ss:$8 sm:$0x3] %vm5346_vm0, %v224_v9  ;;  %v4743_v26 = vld [vmem:[#allocation10 + $0x144] sm:$0xf0] }
  0x61   :  { %881 = vmatpush.bf16.msrb.mxu0 %v3905_v3  ;;  %v4248_v28 = vld [vmem:[#allocation10 + $0x2b0] sm:$0xf]  ;;  %v4791_v29 = vld [vmem:[#allocation10 + $0x2c4] sm:$0xf0]  ;;  %v4740_v30 = vld [vmem:[#allocation10 + $0x134] sm:$0xf]  ;;  %v4057_v34 = vor.u32 %v4743_v26, %v4056_v25 }
  0x62   :  { %894 = vmatpush.bf16.msrb.mxu1 %v4097_v5  ;;  %v4058_v31 = vld [vmem:[#allocation10 + $0x148] sm:$0xf0]  ;;  %v4788_v32 = vld [vmem:[#allocation10 + $0x2b4] sm:$0xf]  ;;  %v4249_v35 = vor.u32 %v4791_v29, %v4248_v28  ;;  %v4032_v36 = vld [vmem:[#allocation10 + $0x100] sm:$0xf] }
  0x63   :  { %907 = vmatpush.bf16.msrb.mxu2 %v3909_v6  ;;  %v4250_v33 = vld [vmem:[#allocation10 + $0x2c8] sm:$0xf0]  ;;  %v4737_v37 = vld [vmem:[#allocation10 + $0x114] sm:$0xf0]  ;;  %v4061_v38 = vor.u32 %v4740_v30, %v4058_v31  ;;  %v4224_v40 = vld [vmem:[#allocation10 + $0x280] sm:$0xf] }
  0x64   :  { %920 = vmatpush.bf16.msrb.mxu3 %v4101_v7  ;;  %v4253_v39 = vor.u32 %v4788_v32, %v4250_v33  ;;  %v4785_v41 = vld [vmem:[#allocation10 + $0x294] sm:$0xf0]  ;;  %v4734_v42 = vld [vmem:[#allocation10 + $0x104] sm:$0xf]  ;;  %v4034_v43 = vld [vmem:[#allocation10 + $0x118] sm:$0xf0]  ;;  %v4033_v46 = vor.u32 %v4737_v37, %v4032_v36 }
  0x65   :  { %v4782_v44 = vld [vmem:[#allocation10 + $0x284] sm:$0xf]  ;;  %v4226_v45 = vld [vmem:[#allocation10 + $0x298] sm:$0xf0]  ;;  %v4225_v47 = vor.u32 %v4785_v41, %v4224_v40  ;;  %v4008_v48 = vld [vmem:[#allocation10 + $0xd0] sm:$0xf]  ;;  %v4037_v50 = vor.u32 %v4734_v42, %v4034_v43 }
  0x66   :  { %v4731_v49 = vld [vmem:[#allocation10 + $0xe4] sm:$0xf0]  ;;  %v4229_v51 = vor.u32 %v4782_v44, %v4226_v45  ;;  %v4200_v52 = vld [vmem:[#allocation10 + $0x250] sm:$0xf]  ;;  %v4728_v54 = vld [vmem:[#allocation10 + $0xd4] sm:$0xf] }
  0x67   :  { %v228_v19 = vld [vmem:[#allocation2] sm:$0xff]  ;;  %v229_v20 = vld [vmem:[#allocation2 + $0x8] sm:$0xff]  ;;  %v4779_v53 = vld [vmem:[#allocation10 + $0x264] sm:$0xf0]  ;;  %v4009_v58 = vor.u32 %v4731_v49, %v4008_v48 }
  0x68   :  { %v5383_v21 = vpack.c.bf16 %v228_v19, %v228_v19  ;;  %v5385_v22 = vpack.c.bf16 %v229_v20, %v229_v20  ;;  %v4010_v55 = vld [vmem:[#allocation10 + $0xe8] sm:$0xf0]  ;;  %v4776_v56 = vld [vmem:[#allocation10 + $0x254] sm:$0xf]  ;;  %v4201_v59 = vor.u32 %v4779_v53, %v4200_v52  ;;  %v3984_v60 = vld [vmem:[#allocation10 + $0xa0] sm:$0xf] }
  0x69   :  { %v4202_v57 = vld [vmem:[#allocation10 + $0x268] sm:$0xf0]  ;;  %v4725_v61 = vld [vmem:[#allocation10 + $0xb4] sm:$0xf0]  ;;  %v4013_v62 = vor.u32 %v4728_v54, %v4010_v55  ;;  %v4176_v0 = vld [vmem:[#allocation10 + $0x220] sm:$0xf] }
  0x6a   :  { %856 = vmatmul.bf16.vlgmr.msra.gmra.mxu2 %v5383_v21  ;;  %869 = vmatmul.bf16.vlgmr.msra.gmra.mxu3 %v5385_v22  ;;  %v4205_v63 = vor.u32 %v4776_v56, %v4202_v57  ;;  %v4773_v1 = vld [vmem:[#allocation10 + $0x234] sm:$0xf0]  ;;  %v4722_v2 = vld [vmem:[#allocation10 + $0xa4] sm:$0xf]  ;;  %v3986_v3 = vld [vmem:[#allocation10 + $0xb8] sm:$0xf0]  ;;  %v3985_v6 = vor.u32 %v4725_v61, %v3984_v60 }
  0x6b   :  { %830 = vmatmul.bf16.vlgmr.msra.gmra.mxu0 %v5383_v21  ;;  %843 = vmatmul.bf16.vlgmr.msra.gmra.mxu1 %v5385_v22  ;;  %v4770_v4 = vld [vmem:[#allocation10 + $0x224] sm:$0xf]  ;;  %v4178_v5 = vld [vmem:[#allocation10 + $0x238] sm:$0xf0]  ;;  %v4177_v7 = vor.u32 %v4773_v1, %v4176_v0  ;;  %v3960_v8 = vld [vmem:[#allocation10 + $0x70] sm:$0xf]  ;;  %v3989_v10 = vor.u32 %v4722_v2, %v3986_v3 }
  0x6c   :  { %926 = vmatpush.bf16.msra.mxu0 %v4081_v23  ;;  %939 = vmatpush.bf16.msra.mxu1 %v4273_v24  ;;  %v4719_v9 = vld [vmem:[#allocation10 + $0x84] sm:$0xf0]  ;;  %v4181_v11 = vor.u32 %v4770_v4, %v4178_v5  ;;  %v4152_v12 = vld [vmem:[#allocation10 + $0x1f0] sm:$0xf]  ;;  %v4716_v15 = vld [vmem:[#allocation10 + $0x74] sm:$0xf] }
  0x6d   :  { %952 = vmatpush.bf16.msra.mxu2 %v4085_v13  ;;  %965 = vmatpush.bf16.msra.mxu3 %v4277_v27  ;;  %v4767_v14 = vld [vmem:[#allocation10 + $0x204] sm:$0xf0]  ;;  %v3962_v16 = vld [vmem:[#allocation10 + $0x88] sm:$0xf0]  ;;  %v4764_v17 = vld [vmem:[#allocation10 + $0x1f4] sm:$0xf]  ;;  %v3961_v19 = vor.u32 %v4719_v9, %v3960_v8 }
  0x6e   :  { %v4154_v18 = vld [vmem:[#allocation10 + $0x208] sm:$0xf0]  ;;  %v4153_v20 = vor.u32 %v4767_v14, %v4152_v12  ;;  %v3936_v23 = vld [vmem:[#allocation10 + $0x40] sm:$0xf]  ;;  %v4713_v24 = vld [vmem:[#allocation10 + $0x54] sm:$0xf0]  ;;  %v3965_v25 = vor.u32 %v4716_v15, %v3962_v16 }
  0x6f   :  { %v4157_v26 = vor.u32 %v4764_v17, %v4154_v18  ;;  %v4128_v13 = vld [vmem:[#allocation10 + $0x1c0] sm:$0xf]  ;;  %v4761_v27 = vld [vmem:[#allocation10 + $0x1d4] sm:$0xf0]  ;;  %v4710_v28 = vld [vmem:[#allocation10 + $0x44] sm:$0xf]  ;;  %v3937_v33 = vor.u32 %v4713_v24, %v3936_v23 }
  0x70   :  { %927 = vmatpush.bf16.msra.mxu0 %v4057_v34  ;;  %940 = vmatpush.bf16.msra.mxu1 %v4249_v35  ;;  %v3938_v29 = vld [vmem:[#allocation10 + $0x58] sm:$0xf0]  ;;  %v4758_v30 = vld [vmem:[#allocation10 + $0x1c4] sm:$0xf]  ;;  %v3912_v32 = vld [vmem:[#allocation10 + $0x10] sm:$0xf]  ;;  %v4129_v34 = vor.u32 %v4761_v27, %v4128_v13 }
  0x71   :  { %953 = vmatpush.bf16.msra.mxu2 %v4061_v38  ;;  %966 = vmatpush.bf16.msra.mxu3 %v4253_v39  ;;  %v4130_v31 = vld [vmem:[#allocation10 + $0x1d8] sm:$0xf0]  ;;  %v4707_v35 = vld [vmem:[#allocation10 + $0x24] sm:$0xf0]  ;;  %v4104_v36 = vld [vmem:[#allocation10 + $0x190] sm:$0xf]  ;;  %v3941_v38 = vor.u32 %v4710_v28, %v3938_v29 }
  0x72   :  { %v4755_v37 = vld [vmem:[#allocation10 + $0x1a4] sm:$0xf0]  ;;  %v4133_v39 = vor.u32 %v4758_v30, %v4130_v31  ;;  %v4704_v40 = vld [vmem:[#allocation10 + $0x14] sm:$0xf]  ;;  %v3914_v41 = vld [vmem:[#allocation10 + $0x28] sm:$0xf0]  ;;  %v3913_v49 = vor.u32 %v4707_v35, %v3912_v32 }
  0x73   :  { %v4752_v42 = vld [vmem:[#allocation10 + $0x194] sm:$0xf]  ;;  %v4106_v43 = vld [vmem:[#allocation10 + $0x1a8] sm:$0xf0]  ;;  %v4448_v44 = vld [vmem:[#allocation11 + $0x150] sm:$0xf]  ;;  %v3917_v54 = vor.u32 %v4704_v40, %v3914_v41 }
  0x74   :  { %928 = vmatpush.bf16.msra.mxu0 %v4033_v46  ;;  %941 = vmatpush.bf16.msra.mxu1 %v4225_v47  ;;  %v4843_v45 = vld [vmem:[#allocation11 + $0x164] sm:$0xf0]  ;;  %v4640_v46 = vld [vmem:[#allocation11 + $0x2d0] sm:$0xf]  ;;  %v4840_v48 = vld [vmem:[#allocation11 + $0x154] sm:$0xf]  ;;  %v4109_v55 = vor.u32 %v4752_v42, %v4106_v43 }
  0x75   :  { %954 = vmatpush.bf16.msra.mxu2 %v4037_v50  ;;  %967 = vmatpush.bf16.msra.mxu3 %v4229_v51  ;;  %v4891_v47 = vld [vmem:[#allocation11 + $0x2e4] sm:$0xf0]  ;;  %v4105_v50 = vor.u32 %v4755_v37, %v4104_v36  ;;  %v4450_v51 = vld [vmem:[#allocation11 + $0x168] sm:$0xf0]  ;;  %v4888_v52 = vld [vmem:[#allocation11 + $0x2d4] sm:$0xf]  ;;  %v5395_v56 = vor.u32 %v4843_v45, %v4448_v44 }
  0x76   :  { %v4642_v53 = vld [vmem:[#allocation11 + $0x2e8] sm:$0xf0]  ;;  %v5397_v57 = vor.u32 %v4891_v47, %v4640_v46  ;;  %v5399_v60 = vor.u32 %v4840_v48, %v4450_v51  ;;  %v4834_v0 = vld [vmem:[#allocation11 + $0x124] sm:$0xf]  ;;  %v4426_v1 = vld [vmem:[#allocation11 + $0x138] sm:$0xf0] }
  0x77   :  { %v5401_v61 = vor.u32 %v4888_v52, %v4642_v53  ;;  %v4882_v2 = vld [vmem:[#allocation11 + $0x2a4] sm:$0xf]  ;;  %v4618_v3 = vld [vmem:[#allocation11 + $0x2b8] sm:$0xf0]  ;;  %v5411_v8 = vor.u32 %v4834_v0, %v4426_v1  ;;  %v4828_v12 = vld [vmem:[#allocation11 + $0xf4] sm:$0xf] }
  0x78   :  { %929 = vmatpush.bf16.msra.mxu0 %v4009_v58  ;;  %942 = vmatpush.bf16.msra.mxu1 %v4201_v59  ;;  %6887 = vst [vmem:[#allocation23_spill] sm:$0xff] %v5397_v57  ;;  %v4424_v58 = vld [vmem:[#allocation11 + $0x120] sm:$0xf]  ;;  %v4837_v59 = vld [vmem:[#allocation11 + $0x134] sm:$0xf0]  ;;  %v5413_v9 = vor.u32 %v4882_v2, %v4618_v3 }
  0x79   :  { %955 = vmatpush.bf16.msra.mxu2 %v4013_v62  ;;  %968 = vmatpush.bf16.msra.mxu3 %v4205_v63  ;;  %6888 = vst [vmem:[#allocation24_spill] sm:$0xff] %v5401_v61  ;;  %v4616_v62 = vld [vmem:[#allocation11 + $0x2a0] sm:$0xf]  ;;  %v4885_v63 = vld [vmem:[#allocation11 + $0x2b4] sm:$0xf0]  ;;  %v5405_v4 = vor.u32 %v4837_v59, %v4424_v58 }
  0x7a   :  { %908 = vmatmul.bf16.vlgmr.msrb.gmra.mxu2 %v5383_v21  ;;  %921 = vmatmul.bf16.vlgmr.msrb.gmra.mxu3 %v5385_v22  ;;  %v5407_v5 = vor.u32 %v4885_v63, %v4616_v62  ;;  %6891 = vst [vmem:[#allocation27_spill] sm:$0xff] %v5411_v8  ;;  %v4402_v14 = vld [vmem:[#allocation11 + $0x108] sm:$0xf0]  ;;  %v4876_v15 = vld [vmem:[#allocation11 + $0x274] sm:$0xf] }
  0x7b   :  { %882 = vmatmul.bf16.vlgmr.msrb.gmra.mxu0 %v5383_v21  ;;  %895 = vmatmul.bf16.vlgmr.msrb.gmra.mxu1 %v5385_v22  ;;  %6889 = vst [vmem:[#allocation25_spill] sm:$0xff] %v5405_v4  ;;  %v4594_v16 = vld [vmem:[#allocation11 + $0x288] sm:$0xf0]  ;;  %v5427_v23 = vor.u32 %v4828_v12, %v4402_v14  ;;  %v4568_v24 = vld [vmem:[#allocation11 + $0x240] sm:$0xf] }
  0x7c   :  { %930 = vmatpush.bf16.msra.mxu0 %v3985_v6  ;;  %943 = vmatpush.bf16.msra.mxu1 %v4177_v7  ;;  %6890 = vst [vmem:[#allocation26_spill] sm:$0xff] %v5407_v5  ;;  %v4400_v6 = vld [vmem:[#allocation11 + $0xf0] sm:$0xf]  ;;  %v4831_v7 = vld [vmem:[#allocation11 + $0x104] sm:$0xf0] }
  0x7d   :  { %956 = vmatpush.bf16.msra.mxu2 %v3989_v10  ;;  %969 = vmatpush.bf16.msra.mxu3 %v4181_v11  ;;  %6892 = vst [vmem:[#allocation28_spill] sm:$0xff] %v5413_v9  ;;  %v4592_v10 = vld [vmem:[#allocation11 + $0x270] sm:$0xf]  ;;  %v4879_v11 = vld [vmem:[#allocation11 + $0x284] sm:$0xf0]  ;;  %v5421_v17 = vor.u32 %v4831_v7, %v4400_v6 }
  0x7e   :  { %v5423_v18 = vor.u32 %v4879_v11, %v4592_v10  ;;  %6895 = vst [vmem:[#allocation31_spill] sm:$0xff] %v5427_v23  ;;  %v4870_v13 = vld [vmem:[#allocation11 + $0x244] sm:$0xf]  ;;  %v4570_v27 = vld [vmem:[#allocation11 + $0x258] sm:$0xf0] }
  0x7f   :  { %6893 = vst [vmem:[#allocation29_spill] sm:$0xff] %v5421_v17  ;;  %v4352_v30 = vld [vmem:[#allocation11 + $0x90] sm:$0xf]  ;;  %v4819_v31 = vld [vmem:[#allocation11 + $0xa4] sm:$0xf0] }
  0x80   :  { %931 = vmatpush.bf16.msra.mxu0 %v3961_v19  ;;  %944 = vmatpush.bf16.msra.mxu1 %v4153_v20  ;;  %6894 = vst [vmem:[#allocation30_spill] sm:$0xff] %v5423_v18  ;;  %v4376_v19 = vld [vmem:[#allocation11 + $0xc0] sm:$0xf]  ;;  %v4825_v20 = vld [vmem:[#allocation11 + $0xd4] sm:$0xf0]  ;;  %v5445_v40 = vor.u32 %v4819_v31, %v4352_v30 }
  0x81   :  { %957 = vmatpush.bf16.msra.mxu2 %v3965_v25  ;;  %970 = vmatpush.bf16.msra.mxu3 %v4157_v26  ;;  %v4822_v25 = vld [vmem:[#allocation11 + $0xc4] sm:$0xf]  ;;  %v4378_v26 = vld [vmem:[#allocation11 + $0xd8] sm:$0xf0]  ;;  %v5433_v28 = vor.u32 %v4825_v20, %v4376_v19  ;;  %v4867_v35 = vld [vmem:[#allocation11 + $0x224] sm:$0xf0] }
  0x82   :  { %v5439_v32 = vor.u32 %v4822_v25, %v4378_v26  ;;  %v4816_v36 = vld [vmem:[#allocation11 + $0x94] sm:$0xf]  ;;  %v4354_v37 = vld [vmem:[#allocation11 + $0xa8] sm:$0xf0]  ;;  %6901 = vst [vmem:[#allocation37_spill] sm:$0xff] %v5445_v40 }
  0x83   :  { %6897 = vst [vmem:[#allocation33_spill] sm:$0xff] %v5433_v28  ;;  %v4328_v42 = vld [vmem:[#allocation11 + $0x60] sm:$0xf]  ;;  %v4813_v43 = vld [vmem:[#allocation11 + $0x74] sm:$0xf0]  ;;  %v5451_v44 = vor.u32 %v4816_v36, %v4354_v37 }
  0x84   :  { %932 = vmatpush.bf16.msra.mxu0 %v3937_v33  ;;  %945 = vmatpush.bf16.msra.mxu1 %v4129_v34  ;;  %6899 = vst [vmem:[#allocation35_spill] sm:$0xff] %v5439_v32  ;;  %v5441_v33 = vor.u32 %v4870_v13, %v4570_v27  ;;  %v4544_v34 = vld [vmem:[#allocation11 + $0x210] sm:$0xf]  ;;  %v4520_v46 = vld [vmem:[#allocation11 + $0x1e0] sm:$0xf]  ;;  %v5457_v52 = vor.u32 %v4813_v43, %v4328_v42 }
  0x85   :  { %958 = vmatpush.bf16.msra.mxu2 %v3941_v38  ;;  %971 = vmatpush.bf16.msra.mxu3 %v4133_v39  ;;  %v4864_v38 = vld [vmem:[#allocation11 + $0x214] sm:$0xf]  ;;  %v4546_v39 = vld [vmem:[#allocation11 + $0x228] sm:$0xf0]  ;;  %v5447_v41 = vor.u32 %v4867_v35, %v4544_v34  ;;  %6903 = vst [vmem:[#allocation39_spill] sm:$0xff] %v5451_v44 }
  0x86   :  { %6900 = vst [vmem:[#allocation36_spill] sm:$0xff] %v5441_v33  ;;  %v5453_v45 = vor.u32 %v4864_v38, %v4546_v39  ;;  %v4861_v47 = vld [vmem:[#allocation11 + $0x1f4] sm:$0xf0]  ;;  %v4810_v48 = vld [vmem:[#allocation11 + $0x64] sm:$0xf] }
  0x87   :  { %6902 = vst [vmem:[#allocation38_spill] sm:$0xff] %v5447_v41  ;;  %v4522_v51 = vld [vmem:[#allocation11 + $0x1f8] sm:$0xf0]  ;;  %v5459_v53 = vor.u32 %v4861_v47, %v4520_v46  ;;  %v4496_v62 = vld [vmem:[#allocation11 + $0x1b0] sm:$0xf] }
  0x88   :  { %933 = vmatpush.bf16.msra.mxu0 %v3913_v49  ;;  %946 = vmatpush.bf16.msra.mxu1 %v4105_v50  ;;  %6904 = vst [vmem:[#allocation40_spill] sm:$0xff] %v5453_v45  ;;  %v4330_v49 = vld [vmem:[#allocation11 + $0x78] sm:$0xf0]  ;;  %v4858_v50 = vld [vmem:[#allocation11 + $0x1e4] sm:$0xf] }
  0x89   :  { %959 = vmatpush.bf16.msra.mxu2 %v3917_v54  ;;  %972 = vmatpush.bf16.msra.mxu3 %v4109_v55  ;;  %6905 = vst [vmem:[#allocation41_spill] sm:$0xff] %v5457_v52  ;;  %v4304_v54 = vld [vmem:[#allocation11 + $0x30] sm:$0xf]  ;;  %v4807_v55 = vld [vmem:[#allocation11 + $0x44] sm:$0xf0]  ;;  %v5463_v58 = vor.u32 %v4810_v48, %v4330_v49  ;;  %v5465_v59 = vor.u32 %v4858_v50, %v4522_v51 }
  0x8a   :  { %6906 = vst [vmem:[#allocation42_spill] sm:$0xff] %v5459_v53  ;;  %v4855_v63 = vld [vmem:[#allocation11 + $0x1c4] sm:$0xf0]  ;;  %v4804_v0 = vld [vmem:[#allocation11 + $0x34] sm:$0xf]  ;;  %v5469_v11 = vor.u32 %v4807_v55, %v4304_v54 }
  0x8b   :  { %934 = vmatmul.bf16.vlgmr.msra.gmra.mxu0 %v5383_v21  ;;  %947 = vmatmul.bf16.vlgmr.msra.gmra.mxu1 %v5385_v22  ;;  %6907 = vst [vmem:[#allocation43_spill] sm:$0xff] %v5463_v58  ;;  %v4306_v1 = vld [vmem:[#allocation11 + $0x48] sm:$0xf0]  ;;  %v4852_v2 = vld [vmem:[#allocation11 + $0x1b4] sm:$0xf]  ;;  %v5471_v12 = vor.u32 %v4855_v63, %v4496_v62 }
  0x8c   :  { %1576 = vmatpush.bf16.msrb.mxu0 %v5395_v56  ;;  %1589 = vmatpush.bf16.msrb.mxu1 %v5397_v57  ;;  %6908 = vst [vmem:[#allocation44_spill] sm:$0xff] %v5465_v59  ;;  %v4498_v3 = vld [vmem:[#allocation11 + $0x1c8] sm:$0xf0]  ;;  %v4280_v6 = vld [vmem:[#allocation11] sm:$0xf]  ;;  %v5475_v19 = vor.u32 %v4804_v0, %v4306_v1 }
  0x8d   :  { %1602 = vmatpush.bf16.msrb.mxu2 %v5399_v60  ;;  %1615 = vmatpush.bf16.msrb.mxu3 %v5401_v61  ;;  %v4801_v7 = vld [vmem:[#allocation11 + $0x14] sm:$0xf0]  ;;  %v4472_v10 = vld [vmem:[#allocation11 + $0x180] sm:$0xf]  ;;  %6909 = vst [vmem:[#allocation45_spill] sm:$0xff] %v5469_v11  ;;  %v5477_v20 = vor.u32 %v4852_v2, %v4498_v3 }
  0x8e   :  { %960 = vmatmul.bf16.vlgmr.msra.gmra.mxu2 %v5383_v21  ;;  %973 = vmatmul.bf16.vlgmr.msra.gmra.mxu3 %v5385_v22  ;;  %v5429_v21 = vor.u32 %v4876_v15, %v4594_v16  ;;  %v4873_v22 = vld [vmem:[#allocation11 + $0x254] sm:$0xf0]  ;;  %6910 = vst [vmem:[#allocation46_spill] sm:$0xff] %v5471_v12  ;;  %v4798_v15 = vld [vmem:[#allocation11 + $0x4] sm:$0xf]  ;;  %v5481_v35 = vor.u32 %v4801_v7, %v4280_v6 }
  0x8f   :  { %v5435_v29 = vor.u32 %v4873_v22, %v4568_v24  ;;  %v4849_v14 = vld [vmem:[#allocation11 + $0x194] sm:$0xf0]  ;;  %v4282_v16 = vld [vmem:[#allocation11 + $0x18] sm:$0xf0]  ;;  %6911 = vst [vmem:[#allocation47_spill] sm:$0xff] %v5475_v19 }
  0x90   :  { %1577 = vmatpush.bf16.msrb.mxu0 %v5405_v4  ;;  %1590 = vmatpush.bf16.msrb.mxu1 %v5407_v5  ;;  %6896 = vst [vmem:[#allocation32_spill] sm:$0xff] %v5429_v21  ;;  %v4846_v24 = vld [vmem:[#allocation11 + $0x184] sm:$0xf]  ;;  %v4474_v22 = vld [vmem:[#allocation11 + $0x198] sm:$0xf0]  ;;  %v5483_v36 = vor.u32 %v4849_v14, %v4472_v10  ;;  %v5489_v42 = vor.u32 %v4798_v15, %v4282_v16 }
  0x91   :  { %1603 = vmatpush.bf16.msrb.mxu2 %v5411_v8  ;;  %1616 = vmatpush.bf16.msrb.mxu3 %v5413_v9  ;;  %6898 = vst [vmem:[#allocation34_spill] sm:$0xff] %v5435_v29  ;;  %v978_v25 = vld [vmem:[#allocation8] sm:$0x3]  ;;  %v4456_v26 = vld [vmem:[#allocation11 + $0x158] sm:$0xf]  ;;  %v5491_v43 = vor.u32 %v4846_v24, %v4474_v22 }
  0x92   :  { %6912 = vst [vmem:[#allocation48_spill] sm:$0xff] %v5477_v20  ;;  %v4844_v13 = vld [vmem:[#allocation11 + $0x16c] sm:$0xf0]  ;;  %v4648_v27 = vld [vmem:[#allocation11 + $0x2d8] sm:$0xf]  ;;  %v5485_v39 = vperm.slane %v978_v25, 0 }
  0x93   :  { %v4892_v30 = vld [vmem:[#allocation11 + $0x2ec] sm:$0xf0]  ;;  %v4841_v31 = vld [vmem:[#allocation11 + $0x15c] sm:$0xf]  ;;  %v4458_v34 = vld [vmem:[#allocation11 + $0x170] sm:$0xf0]  ;;  %v5495_v47 = vor.u32 %v4844_v13, %v4456_v26 }
  0x94   :  { %1578 = vmatpush.bf16.msrb.mxu0 %v5421_v17  ;;  %1591 = vmatpush.bf16.msrb.mxu1 %v5423_v18  ;;  %6913 = vst [vmem:[#allocation49_spill] sm:$0xff] %v5481_v35  ;;  %v4889_v37 = vld [vmem:[#allocation11 + $0x2dc] sm:$0xf]  ;;  %v4650_v38 = vld [vmem:[#allocation11 + $0x2f0] sm:$0xf0]  ;;  %v5493_v46 = vperm.slane %v978_v25, 1  ;;  %v5497_v48 = vor.u32 %v4892_v30, %v4648_v27  ;;  %v5499_v51 = vor.u32 %v4841_v31, %v4458_v34 }
  0x95   :  { %1604 = vmatpush.bf16.msrb.mxu2 %v5427_v23  ;;  %1617 = vmatpush.bf16.msrb.mxu3 %v5429_v21  ;;  %6914 = vst [vmem:[#allocation50_spill] sm:$0xff] %v5483_v36  ;;  %v4432_v49 = vld [vmem:[#allocation11 + $0x128] sm:$0xf]  ;;  %v4838_v50 = vld [vmem:[#allocation11 + $0x13c] sm:$0xf0]  ;;  %v5501_v54 = vor.u32 %v4889_v37, %v4650_v38  ;;  %v5507_v0 = vpack.c.bf16 %v5485_v39, %v5485_v39 }
  0x96   :  { %6915 = vst [vmem:[#allocation51_spill] sm:$0xff] %v5485_v39  ;;  %v4624_v55 = vld [vmem:[#allocation11 + $0x2a8] sm:$0xf]  ;;  %v4886_v62 = vld [vmem:[#allocation11 + $0x2bc] sm:$0xf0]  ;;  %v5513_v6 = vpack.c.bf16 %v5493_v46, %v5493_v46  ;;  %v5517_v7 = vor.u32 %v4838_v50, %v4432_v49 }
  0x97   :  { %6916 = vst [vmem:[#allocation52_spill] sm:$0xff] %v5489_v42  ;;  %v4835_v63 = vld [vmem:[#allocation11 + $0x12c] sm:$0xf]  ;;  %v4434_v1 = vld [vmem:[#allocation11 + $0x140] sm:$0xf0]  ;;  %v5519_v10 = vor.u32 %v4886_v62, %v4624_v55 }
  0x98   :  { %1579 = vmatpush.bf16.msrb.mxu0 %v5433_v28  ;;  %1592 = vmatpush.bf16.msrb.mxu1 %v5435_v29  ;;  %6917 = vst [vmem:[#allocation53_spill] sm:$0xff] %v5491_v43  ;;  %v4883_v2 = vld [vmem:[#allocation11 + $0x2ac] sm:$0xf]  ;;  %v4626_v3 = vld [vmem:[#allocation11 + $0x2c0] sm:$0xf0]  ;;  %v5523_v16 = vor.u32 %v4835_v63, %v4434_v1 }
  0x99   :  { %1605 = vmatpush.bf16.msrb.mxu2 %v5439_v32  ;;  %1618 = vmatpush.bf16.msrb.mxu3 %v5441_v33  ;;  %6918 = vst [vmem:[#allocation54_spill] sm:$0xff] %v5493_v46  ;;  %v4408_v14 = vld [vmem:[#allocation11 + $0xf8] sm:$0xf]  ;;  %v4832_v15 = vld [vmem:[#allocation11 + $0x10c] sm:$0xf0]  ;;  %v5525_v24 = vor.u32 %v4883_v2, %v4626_v3 }
  0x9a   :  { %6919 = vst [vmem:[#allocation55_spill] sm:$0xff] %v5495_v47  ;;  %v4600_v22 = vld [vmem:[#allocation11 + $0x278] sm:$0xf]  ;;  %v4880_v25 = vld [vmem:[#allocation11 + $0x28c] sm:$0xf0]  ;;  %v5533_v31 = vor.u32 %v4832_v15, %v4408_v14 }
  0x9b   :  { %6920 = vst [vmem:[#allocation56_spill] sm:$0xff] %v5497_v48  ;;  %v4829_v26 = vld [vmem:[#allocation11 + $0xfc] sm:$0xf]  ;;  %v4410_v13 = vld [vmem:[#allocation11 + $0x110] sm:$0xf0]  ;;  %v5535_v34 = vor.u32 %v4880_v25, %v4600_v22 }
  0x9c   :  { %1580 = vmatpush.bf16.msrb.mxu0 %v5445_v40  ;;  %1593 = vmatpush.bf16.msrb.mxu1 %v5447_v41  ;;  %6921 = vst [vmem:[#allocation57_spill] sm:$0xff] %v5499_v51  ;;  %v4877_v27 = vld [vmem:[#allocation11 + $0x27c] sm:$0xf]  ;;  %v4602_v30 = vld [vmem:[#allocation11 + $0x290] sm:$0xf0]  ;;  %v5539_v49 = vor.u32 %v4829_v26, %v4410_v13 }
  0x9d   :  { %1606 = vmatpush.bf16.msrb.mxu2 %v5451_v44  ;;  %1619 = vmatpush.bf16.msrb.mxu3 %v5453_v45  ;;  %6922 = vst [vmem:[#allocation58_spill] sm:$0xff] %v5501_v54  ;;  %v4384_v37 = vld [vmem:[#allocation11 + $0xc8] sm:$0xf]  ;;  %v4826_v38 = vld [vmem:[#allocation11 + $0xdc] sm:$0xf0]  ;;  %v5541_v50 = vor.u32 %v4877_v27, %v4602_v30 }
  0x9e   :  { %6923 = vst [vmem:[#allocation59_spill] sm:$0xff] %v5517_v7  ;;  %v4576_v55 = vld [vmem:[#allocation11 + $0x248] sm:$0xf]  ;;  %v4874_v62 = vld [vmem:[#allocation11 + $0x25c] sm:$0xf0]  ;;  %v5545_v14 = vor.u32 %v4826_v38, %v4384_v37 }
  0x9f   :  { %6924 = vst [vmem:[#allocation60_spill] sm:$0xff] %v5519_v10  ;;  %v4823_v63 = vld [vmem:[#allocation11 + $0xcc] sm:$0xf]  ;;  %v4386_v1 = vld [vmem:[#allocation11 + $0xe0] sm:$0xf0]  ;;  %v5547_v15 = vor.u32 %v4874_v62, %v4576_v55 }
  0xa0   :  { %1581 = vmatpush.bf16.msrb.mxu0 %v5457_v52  ;;  %1594 = vmatpush.bf16.msrb.mxu1 %v5459_v53  ;;  %6925 = vst [vmem:[#allocation61_spill] sm:$0xff] %v5523_v16  ;;  %v4871_v2 = vld [vmem:[#allocation11 + $0x24c] sm:$0xf]  ;;  %v4578_v3 = vld [vmem:[#allocation11 + $0x260] sm:$0xf0]  ;;  %v5551_v26 = vor.u32 %v4823_v63, %v4386_v1 }
  0xa1   :  { %1607 = vmatpush.bf16.msrb.mxu2 %v5463_v58  ;;  %1620 = vmatpush.bf16.msrb.mxu3 %v5465_v59  ;;  %6926 = vst [vmem:[#allocation62_spill] sm:$0xff] %v5525_v24  ;;  %v4360_v22 = vld [vmem:[#allocation11 + $0x98] sm:$0xf]  ;;  %v4820_v25 = vld [vmem:[#allocation11 + $0xac] sm:$0xf0]  ;;  %v5553_v13 = vor.u32 %v4871_v2, %v4578_v3 }
  0xa2   :  { %6927 = vst [vmem:[#allocation63_spill] sm:$0xff] %v5533_v31  ;;  %v4552_v27 = vld [vmem:[#allocation11 + $0x218] sm:$0xf]  ;;  %v4868_v30 = vld [vmem:[#allocation11 + $0x22c] sm:$0xf0]  ;;  %v5557_v37 = vor.u32 %v4820_v25, %v4360_v22 }
  0xa3   :  { %6928 = vst [vmem:[#allocation64_spill] sm:$0xff] %v5535_v34  ;;  %v4817_v46 = vld [vmem:[#allocation11 + $0x9c] sm:$0xf]  ;;  %v4362_v39 = vld [vmem:[#allocation11 + $0xb0] sm:$0xf0]  ;;  %v5559_v38 = vor.u32 %v4868_v30, %v4552_v27 }
  0xa4   :  { %1582 = vmatpush.bf16.msrb.mxu0 %v5469_v11  ;;  %1595 = vmatpush.bf16.msrb.mxu1 %v5471_v12  ;;  %6929 = vst [vmem:[#allocation65_spill] sm:$0xff] %v5539_v49  ;;  %v4336_v55 = vld [vmem:[#allocation11 + $0x68] sm:$0xf]  ;;  %v4814_v62 = vld [vmem:[#allocation11 + $0x7c] sm:$0xf0]  ;;  %v5563_v63 = vor.u32 %v4817_v46, %v4362_v39 }
  0xa5   :  { %1608 = vmatpush.bf16.msrb.mxu2 %v5475_v19  ;;  %1621 = vmatpush.bf16.msrb.mxu3 %v5477_v20  ;;  %6930 = vst [vmem:[#allocation66_spill] sm:$0xff] %v5541_v50  ;;  %v4528_v2 = vld [vmem:[#allocation11 + $0x1e8] sm:$0xf]  ;;  %v4862_v3 = vld [vmem:[#allocation11 + $0x1fc] sm:$0xf0]  ;;  %v5569_v22 = vor.u32 %v4814_v62, %v4336_v55 }
  0xa6   :  { %6931 = vst [vmem:[#allocation67_spill] sm:$0xff] %v5545_v14  ;;  %v5571_v25 = vor.u32 %v4862_v3, %v4528_v2  ;;  %v4312_v27 = vld [vmem:[#allocation11 + $0x38] sm:$0xf]  ;;  %v4808_v30 = vld [vmem:[#allocation11 + $0x4c] sm:$0xf0] }
  0xa7   :  { %6932 = vst [vmem:[#allocation68_spill] sm:$0xff] %v5547_v15  ;;  %v4288_v55 = vld [vmem:[#allocation11 + $0x8] sm:$0xf]  ;;  %v5581_v62 = vor.u32 %v4808_v30, %v4312_v27  ;;  %v4802_v3 = vld [vmem:[#allocation11 + $0x1c] sm:$0xf0] }
  0xa8   :  { %1583 = vmatpush.bf16.msrb.mxu0 %v5481_v35  ;;  %1596 = vmatpush.bf16.msrb.mxu1 %v5483_v36  ;;  %6933 = vst [vmem:[#allocation69_spill] sm:$0xff] %v5551_v26  ;;  %v4845_v27 = vld [vmem:[#allocation11 + $0x174] sm:$0xf0]  ;;  %v4656_v30 = vld [vmem:[#allocation11 + $0x2e0] sm:$0xf] }
  0xa9   :  { %1609 = vmatpush.bf16.msrb.mxu2 %v5489_v42  ;;  %1622 = vmatpush.bf16.msrb.mxu3 %v5491_v43  ;;  %6934 = vst [vmem:[#allocation70_spill] sm:$0xff] %v5553_v13 }
  0xaa   :  { %6935 = vst [vmem:[#allocation71_spill] sm:$0xff] %v5557_v37 }
  0xab   :  { %1584 = vmatmul.bf16.vlgmr.msrb.gmra.mxu0 %v5507_v0  ;;  %1597 = vmatmul.bf16.vlgmr.msrb.gmra.mxu1 %v5513_v6  ;;  %6936 = vst [vmem:[#allocation72_spill] sm:$0xff] %v5559_v38 }
  0xac   :  { %1628 = vmatpush.bf16.msra.mxu0 %v5495_v47  ;;  %1641 = vmatpush.bf16.msra.mxu1 %v5497_v48  ;;  %6937 = vst [vmem:[#allocation73_spill] sm:$0xff] %v5563_v63 }
  0xad   :  { %1654 = vmatpush.bf16.msra.mxu2 %v5499_v51  ;;  %1667 = vmatpush.bf16.msra.mxu3 %v5501_v54  ;;  %6939 = vst [vmem:[#allocation75_spill] sm:$0xff] %v5569_v22  ;;  %v4836_v54 = vld [vmem:[#allocation11 + $0x134] sm:$0xf] }
  0xae   :  { %1610 = vmatmul.bf16.vlgmr.msrb.gmra.mxu2 %v5507_v0  ;;  %1623 = vmatmul.bf16.vlgmr.msrb.gmra.mxu3 %v5513_v6  ;;  %6940 = vst [vmem:[#allocation76_spill] sm:$0xff] %v5571_v25 }
  0xaf   :  { %6943 = vst [vmem:[#allocation79_spill] sm:$0xff] %v5581_v62 }
  0xb0   :  { %1629 = vmatpush.bf16.msra.mxu0 %v5517_v7  ;;  %1642 = vmatpush.bf16.msra.mxu1 %v5519_v10  ;;  %v4887_v7 = vld [vmem:[#allocation11 + $0x2c4] sm:$0xf0] }
  0xb1   :  { %1655 = vmatpush.bf16.msra.mxu2 %v5523_v16  ;;  %1668 = vmatpush.bf16.msra.mxu3 %v5525_v24  ;;  %v4482_v24 = vld [vmem:[#allocation11 + $0x1a0] sm:$0xf0] }
  0xb4   :  { %1630 = vmatpush.bf16.msra.mxu0 %v5533_v31  ;;  %1643 = vmatpush.bf16.msra.mxu1 %v5535_v34  ;;  %v4865_v31 = vld [vmem:[#allocation11 + $0x21c] sm:$0xf]  ;;  %v4554_v34 = vld [vmem:[#allocation11 + $0x230] sm:$0xf0] }
  0xb5   :  { %1656 = vmatpush.bf16.msra.mxu2 %v5539_v49  ;;  %1669 = vmatpush.bf16.msra.mxu3 %v5541_v50  ;;  %v5565_v1 = vor.u32 %v4865_v31, %v4554_v34  ;;  %v4811_v50 = vld [vmem:[#allocation11 + $0x6c] sm:$0xf]  ;;  %v4504_v31 = vld [vmem:[#allocation11 + $0x1b8] sm:$0xf]  ;;  %v4856_v34 = vld [vmem:[#allocation11 + $0x1cc] sm:$0xf0] }
  0xb6   :  { %v4859_v49 = vld [vmem:[#allocation11 + $0x1ec] sm:$0xf]  ;;  %v5583_v2 = vor.u32 %v4856_v34, %v4504_v31  ;;  %v4893_v31 = vld [vmem:[#allocation11 + $0x2f4] sm:$0xf0]  ;;  %v4842_v34 = vld [vmem:[#allocation11 + $0x164] sm:$0xf] }
  0xb7   :  { %6938 = vst [vmem:[#allocation74_spill] sm:$0xff] %v5565_v1 }
  0xb8   :  { %1631 = vmatpush.bf16.msra.mxu0 %v5545_v14  ;;  %1644 = vmatpush.bf16.msra.mxu1 %v5547_v15  ;;  %v4338_v14 = vld [vmem:[#allocation11 + $0x80] sm:$0xf0]  ;;  %6944 = vst [vmem:[#allocation80_spill] sm:$0xff] %v5583_v2 }
  0xb9   :  { %1657 = vmatpush.bf16.msra.mxu2 %v5551_v26  ;;  %1670 = vmatpush.bf16.msra.mxu3 %v5553_v13  ;;  %v4530_v15 = vld [vmem:[#allocation11 + $0x200] sm:$0xf0]  ;;  %v5575_v39 = vor.u32 %v4811_v50, %v4338_v14  ;;  %v4805_v13 = vld [vmem:[#allocation11 + $0x3c] sm:$0xf]  ;;  %v4480_v50 = vld [vmem:[#allocation11 + $0x188] sm:$0xf] }
  0xba   :  { %v5577_v46 = vor.u32 %v4859_v49, %v4530_v15  ;;  %v4853_v26 = vld [vmem:[#allocation11 + $0x1bc] sm:$0xf]  ;;  %v4850_v14 = vld [vmem:[#allocation11 + $0x19c] sm:$0xf0] }
  0xbb   :  { %6941 = vst [vmem:[#allocation77_spill] sm:$0xff] %v5575_v39 }
  0xbc   :  { %1632 = vmatpush.bf16.msra.mxu0 %v5557_v37  ;;  %1645 = vmatpush.bf16.msra.mxu1 %v5559_v38  ;;  %6942 = vst [vmem:[#allocation78_spill] sm:$0xff] %v5577_v46  ;;  %v4314_v37 = vld [vmem:[#allocation11 + $0x50] sm:$0xf0] }
  0xbd   :  { %1658 = vmatpush.bf16.msra.mxu2 %v5563_v63  ;;  %1671 = vmatpush.bf16.msra.mxu3 %v5565_v1  ;;  %v4506_v38 = vld [vmem:[#allocation11 + $0x1d0] sm:$0xf0]  ;;  %v5587_v49 = vor.u32 %v4805_v13, %v4314_v37  ;;  %v4799_v1 = vld [vmem:[#allocation11 + $0xc] sm:$0xf]  ;;  %v4290_v63 = vld [vmem:[#allocation11 + $0x20] sm:$0xf0] }
  0xbe   :  { %v5589_v15 = vor.u32 %v4853_v26, %v4506_v38  ;;  %v4466_v13 = vld [vmem:[#allocation11 + $0x178] sm:$0xf0]  ;;  %v4890_v26 = vld [vmem:[#allocation11 + $0x2e4] sm:$0xf]  ;;  %v5599_v38 = vor.u32 %v4799_v1, %v4290_v63  ;;  %v4442_v63 = vld [vmem:[#allocation11 + $0x148] sm:$0xf0] }
  0xbf   :  { %6945 = vst [vmem:[#allocation81_spill] sm:$0xff] %v5587_v49  ;;  %v4658_v37 = vld [vmem:[#allocation11 + $0x2f8] sm:$0xf0]  ;;  %v4634_v1 = vld [vmem:[#allocation11 + $0x2c8] sm:$0xf0] }
  0xc0   :  { %1633 = vmatpush.bf16.msra.mxu0 %v5569_v22  ;;  %1646 = vmatpush.bf16.msra.mxu1 %v5571_v25  ;;  %6946 = vst [vmem:[#allocation82_spill] sm:$0xff] %v5589_v15  ;;  %v4847_v22 = vld [vmem:[#allocation11 + $0x18c] sm:$0xf]  ;;  %v4464_v25 = vld [vmem:[#allocation11 + $0x160] sm:$0xf] }
  0xc1   :  { %1659 = vmatpush.bf16.msra.mxu2 %v5575_v39  ;;  %1672 = vmatpush.bf16.msra.mxu3 %v5577_v46  ;;  %v5593_v39 = vor.u32 %v4802_v3, %v4288_v55  ;;  %v5595_v46 = vor.u32 %v4850_v14, %v4480_v50  ;;  %6949 = vst [vmem:[#allocation85_spill] sm:$0xff] %v5599_v38  ;;  %v4839_v55 = vld [vmem:[#allocation11 + $0x144] sm:$0xf0]  ;;  %v4632_v14 = vld [vmem:[#allocation11 + $0x2b0] sm:$0xf] }
  0xc2   :  { %v5601_v10 = vor.u32 %v4847_v22, %v4482_v24  ;;  %v5603_v16 = vor.u32 %v4845_v27, %v4464_v25  ;;  %v5607_v3 = vor.u32 %v4842_v34, %v4466_v13  ;;  %v5609_v50 = vor.u32 %v4890_v26, %v4658_v37  ;;  %v4884_v24 = vld [vmem:[#allocation11 + $0x2b4] sm:$0xf]  ;;  %v4416_v27 = vld [vmem:[#allocation11 + $0x100] sm:$0xf]  ;;  %v4881_v26 = vld [vmem:[#allocation11 + $0x294] sm:$0xf0] }
  0xc3   :  { %6947 = vst [vmem:[#allocation83_spill] sm:$0xff] %v5593_v39  ;;  %v5619_v25 = vor.u32 %v4887_v7, %v4632_v14  ;;  %v5625_v34 = vor.u32 %v4884_v24, %v4634_v1  ;;  %v4608_v13 = vld [vmem:[#allocation11 + $0x280] sm:$0xf]  ;;  %v4830_v37 = vld [vmem:[#allocation11 + $0x104] sm:$0xf] }
  0xc4   :  { %1634 = vmatpush.bf16.msra.mxu0 %v5581_v62  ;;  %1647 = vmatpush.bf16.msra.mxu1 %v5583_v2  ;;  %6948 = vst [vmem:[#allocation84_spill] sm:$0xff] %v5595_v46  ;;  %v5605_v62 = vor.u32 %v4893_v31, %v4656_v30  ;;  %v4440_v2 = vld [vmem:[#allocation11 + $0x130] sm:$0xf]  ;;  %v4833_v30 = vld [vmem:[#allocation11 + $0x114] sm:$0xf0]  ;;  %v5623_v31 = vor.u32 %v4836_v54, %v4442_v63 }
  0xc5   :  { %1660 = vmatpush.bf16.msra.mxu2 %v5587_v49  ;;  %1673 = vmatpush.bf16.msra.mxu3 %v5589_v15  ;;  %6950 = vst [vmem:[#allocation86_spill] sm:$0xff] %v5601_v10  ;;  %v5617_v22 = vor.u32 %v4839_v55, %v4440_v2  ;;  %v4418_v2 = vld [vmem:[#allocation11 + $0x118] sm:$0xf0]  ;;  %v4878_v7 = vld [vmem:[#allocation11 + $0x284] sm:$0xf]  ;;  %v5633_v54 = vor.u32 %v4833_v30, %v4416_v27 }
  0xc6   :  { %6951 = vst [vmem:[#allocation87_spill] sm:$0xff] %v5603_v16  ;;  %v4610_v55 = vld [vmem:[#allocation11 + $0x298] sm:$0xf0]  ;;  %v5635_v14 = vor.u32 %v4881_v26, %v4608_v13  ;;  %v4392_v63 = vld [vmem:[#allocation11 + $0xd0] sm:$0xf]  ;;  %v5639_v1 = vor.u32 %v4830_v37, %v4418_v2 }
  0xc7   :  { %6952 = vst [vmem:[#allocation88_spill] sm:$0xff] %v5605_v62  ;;  %v4827_v24 = vld [vmem:[#allocation11 + $0xe4] sm:$0xf0]  ;;  %v4368_v13 = vld [vmem:[#allocation11 + $0xa0] sm:$0xf] }
  0xc8   :  { %6953 = vst [vmem:[#allocation89_spill] sm:$0xff] %v5607_v3  ;;  %1635 = vmatpush.bf16.msra.mxu0 %v5593_v39  ;;  %1648 = vmatpush.bf16.msra.mxu1 %v5595_v46  ;;  %v5645_v27 = vor.u32 %v4827_v24, %v4392_v63  ;;  %v4821_v26 = vld [vmem:[#allocation11 + $0xb4] sm:$0xf0]  ;;  %v4344_v63 = vld [vmem:[#allocation11 + $0x70] sm:$0xf] }
  0xc9   :  { %6954 = vst [vmem:[#allocation90_spill] sm:$0xff] %v5609_v50  ;;  %1661 = vmatpush.bf16.msra.mxu2 %v5599_v38  ;;  %1674 = vmatpush.bf16.msra.mxu3 %v5601_v10  ;;  %v4872_v10 = vld [vmem:[#allocation11 + $0x254] sm:$0xf]  ;;  %v4815_v24 = vld [vmem:[#allocation11 + $0x84] sm:$0xf0] }
  0xca   :  { %6955 = vst [vmem:[#allocation91_spill] sm:$0xff] %v5617_v22 }
  0xcb   :  { %6956 = vst [vmem:[#allocation92_spill] sm:$0xff] %v5619_v25  ;;  %1636 = vmatmul.bf16.vlgmr.msra.gmra.mxu0 %v5507_v0  ;;  %1649 = vmatmul.bf16.vlgmr.msra.gmra.mxu1 %v5513_v6 }
  0xcc   :  { %1680 = vmatpush.bf16.msrb.mxu0 %v5603_v16  ;;  %1693 = vmatpush.bf16.msrb.mxu1 %v5605_v62  ;;  %6957 = vst [vmem:[#allocation93_spill] sm:$0xff] %v5623_v31  ;;  %v4584_v62 = vld [vmem:[#allocation11 + $0x250] sm:$0xf]  ;;  %v4824_v16 = vld [vmem:[#allocation11 + $0xd4] sm:$0xf] }
  0xcd   :  { %1706 = vmatpush.bf16.msrb.mxu2 %v5607_v3  ;;  %1719 = vmatpush.bf16.msrb.mxu3 %v5609_v50  ;;  %6958 = vst [vmem:[#allocation94_spill] sm:$0xff] %v5625_v34  ;;  %v5641_v50 = vor.u32 %v4878_v7, %v4610_v55  ;;  %v4875_v3 = vld [vmem:[#allocation11 + $0x264] sm:$0xf0]  ;;  %v4560_v7 = vld [vmem:[#allocation11 + $0x220] sm:$0xf] }
  0xce   :  { %1662 = vmatmul.bf16.vlgmr.msra.gmra.mxu2 %v5507_v0  ;;  %1675 = vmatmul.bf16.vlgmr.msra.gmra.mxu3 %v5513_v6  ;;  %6959 = vst [vmem:[#allocation95_spill] sm:$0xff] %v5633_v54  ;;  %v5647_v30 = vor.u32 %v4875_v3, %v4584_v62  ;;  %v4869_v55 = vld [vmem:[#allocation11 + $0x234] sm:$0xf0]  ;;  %v5657_v62 = vor.u32 %v4821_v26, %v4368_v13 }
  0xcf   :  { %6960 = vst [vmem:[#allocation96_spill] sm:$0xff] %v5635_v14  ;;  %v5659_v3 = vor.u32 %v4869_v55, %v4560_v7  ;;  %v5669_v13 = vor.u32 %v4815_v24, %v4344_v63  ;;  %v4320_v7 = vld [vmem:[#allocation11 + $0x40] sm:$0xf]  ;;  %v4809_v55 = vld [vmem:[#allocation11 + $0x54] sm:$0xf0] }
  0xd0   :  { %1681 = vmatpush.bf16.msrb.mxu0 %v5617_v22  ;;  %1694 = vmatpush.bf16.msrb.mxu1 %v5619_v25  ;;  %6961 = vst [vmem:[#allocation97_spill] sm:$0xff] %v5639_v1  ;;  %v4394_v22 = vld [vmem:[#allocation11 + $0xe8] sm:$0xf0]  ;;  %v5681_v63 = vor.u32 %v4809_v55, %v4320_v7 }
  0xd1   :  { %1707 = vmatpush.bf16.msrb.mxu2 %v5623_v31  ;;  %1720 = vmatpush.bf16.msrb.mxu3 %v5625_v34  ;;  %6962 = vst [vmem:[#allocation98_spill] sm:$0xff] %v5641_v50  ;;  %v4586_v25 = vld [vmem:[#allocation11 + $0x268] sm:$0xf0]  ;;  %v5651_v37 = vor.u32 %v4824_v16, %v4394_v22  ;;  %v4818_v34 = vld [vmem:[#allocation11 + $0xa4] sm:$0xf] }
  0xd2   :  { %6963 = vst [vmem:[#allocation99_spill] sm:$0xff] %v5645_v27  ;;  %v5653_v2 = vor.u32 %v4872_v10, %v4586_v25  ;;  %v4866_v31 = vld [vmem:[#allocation11 + $0x224] sm:$0xf]  ;;  %v4536_v22 = vld [vmem:[#allocation11 + $0x1f0] sm:$0xf] }
  0xd3   :  { %6964 = vst [vmem:[#allocation100_spill] sm:$0xff] %v5647_v30  ;;  %v4863_v25 = vld [vmem:[#allocation11 + $0x204] sm:$0xf0] }
  0xd4   :  { %1682 = vmatpush.bf16.msrb.mxu0 %v5633_v54  ;;  %1695 = vmatpush.bf16.msrb.mxu1 %v5635_v14  ;;  %6965 = vst [vmem:[#allocation101_spill] sm:$0xff] %v5651_v37  ;;  %v4370_v54 = vld [vmem:[#allocation11 + $0xb8] sm:$0xf0]  ;;  %v5671_v26 = vor.u32 %v4863_v25, %v4536_v22  ;;  %v4296_v22 = vld [vmem:[#allocation11 + $0x10] sm:$0xf] }
  0xd5   :  { %1708 = vmatpush.bf16.msrb.mxu2 %v5639_v1  ;;  %1721 = vmatpush.bf16.msrb.mxu3 %v5641_v50  ;;  %6966 = vst [vmem:[#allocation102_spill] sm:$0xff] %v5653_v2  ;;  %v4562_v14 = vld [vmem:[#allocation11 + $0x238] sm:$0xf0]  ;;  %v5663_v10 = vor.u32 %v4818_v34, %v4370_v54  ;;  %v4812_v50 = vld [vmem:[#allocation11 + $0x74] sm:$0xf] }
  0xd6   :  { %6967 = vst [vmem:[#allocation103_spill] sm:$0xff] %v5657_v62  ;;  %v5665_v16 = vor.u32 %v4866_v31, %v4562_v14  ;;  %v4860_v1 = vld [vmem:[#allocation11 + $0x1f4] sm:$0xf]  ;;  %v4512_v54 = vld [vmem:[#allocation11 + $0x1c0] sm:$0xf] }
  0xd7   :  { %6968 = vst [vmem:[#allocation104_spill] sm:$0xff] %v5659_v3  ;;  %v4857_v14 = vld [vmem:[#allocation11 + $0x1d4] sm:$0xf0]  ;;  %v4803_v25 = vld [vmem:[#allocation11 + $0x24] sm:$0xf0] }
  0xd8   :  { %1683 = vmatpush.bf16.msrb.mxu0 %v5645_v27  ;;  %1696 = vmatpush.bf16.msrb.mxu1 %v5647_v30  ;;  %6969 = vst [vmem:[#allocation105_spill] sm:$0xff] %v5663_v10  ;;  %v4346_v27 = vld [vmem:[#allocation11 + $0x88] sm:$0xf0]  ;;  %v5683_v24 = vor.u32 %v4857_v14, %v4512_v54  ;;  %v5693_v7 = vor.u32 %v4803_v25, %v4296_v22 }
  0xd9   :  { %1709 = vmatpush.bf16.msrb.mxu2 %v5651_v37  ;;  %1722 = vmatpush.bf16.msrb.mxu3 %v5653_v2  ;;  %6970 = vst [vmem:[#allocation106_spill] sm:$0xff] %v5665_v16  ;;  %v4538_v30 = vld [vmem:[#allocation11 + $0x208] sm:$0xf0]  ;;  %v5675_v31 = vor.u32 %v4812_v50, %v4346_v27  ;;  %v4806_v2 = vld [vmem:[#allocation11 + $0x44] sm:$0xf] }
  0xda   :  { %6971 = vst [vmem:[#allocation107_spill] sm:$0xff] %v5669_v13  ;;  %v5677_v34 = vor.u32 %v4860_v1, %v4538_v30  ;;  %v4854_v37 = vld [vmem:[#allocation11 + $0x1c4] sm:$0xf]  ;;  %v4488_v27 = vld [vmem:[#allocation11 + $0x190] sm:$0xf] }
  0xdb   :  { %6972 = vst [vmem:[#allocation108_spill] sm:$0xff] %v5671_v26  ;;  %v4851_v30 = vld [vmem:[#allocation11 + $0x1a4] sm:$0xf0] }
  0xdc   :  { %1684 = vmatpush.bf16.msrb.mxu0 %v5657_v62  ;;  %1697 = vmatpush.bf16.msrb.mxu1 %v5659_v3  ;;  %v4322_v62 = vld [vmem:[#allocation11 + $0x58] sm:$0xf0]  ;;  %v5695_v55 = vor.u32 %v4851_v30, %v4488_v27 }
  0xdd   :  { %1710 = vmatpush.bf16.msrb.mxu2 %v5663_v10  ;;  %1723 = vmatpush.bf16.msrb.mxu3 %v5665_v16  ;;  %v4514_v3 = vld [vmem:[#allocation11 + $0x1d8] sm:$0xf0]  ;;  %v5687_v50 = vor.u32 %v4806_v2, %v4322_v62  ;;  %v4800_v16 = vld [vmem:[#allocation11 + $0x14] sm:$0xf]  ;;  %v5705_v62 = vld [vmem:[#allocation13] sm:$0x3f] }
  0xde   :  { %v5689_v1 = vor.u32 %v4854_v37, %v4514_v3  ;;  %v4848_v10 = vld [vmem:[#allocation11 + $0x194] sm:$0xf]  ;;  %6974 = vst [vmem:[#allocation110_spill] sm:$0xff] %v5695_v55  ;;  %v330_v3 = vperm.slane %v5705_v62, 0 }
  0xe0   :  { %1685 = vmatpush.bf16.msrb.mxu0 %v5669_v13  ;;  %1698 = vmatpush.bf16.msrb.mxu1 %v5671_v26  ;;  %6973 = vst [vmem:[#allocation109_spill] sm:$0xff] %v5689_v1  ;;  %v4298_v13 = vld [vmem:[#allocation11 + $0x28] sm:$0xf0] }
  0xe1   :  { %1711 = vmatpush.bf16.msrb.mxu2 %v5675_v31  ;;  %1724 = vmatpush.bf16.msrb.mxu3 %v5677_v34  ;;  %v4490_v26 = vld [vmem:[#allocation11 + $0x1a8] sm:$0xf0]  ;;  %v5699_v37 = vor.u32 %v4800_v16, %v4298_v13 }
  0xe2   :  { %v5701_v2 = vor.u32 %v4848_v10, %v4490_v26  ;;  %v331_v26 = vperm.slane %v5705_v62, 1 }
  0xe4   :  { %1686 = vmatpush.bf16.msrb.mxu0 %v5681_v63  ;;  %1699 = vmatpush.bf16.msrb.mxu1 %v5683_v24  ;;  %6975 = vst [vmem:[#allocation111_spill] sm:$0xff] %v5701_v2 }
  0xe5   :  { %1712 = vmatpush.bf16.msrb.mxu2 %v5687_v50  ;;  %1725 = vmatpush.bf16.msrb.mxu3 %v5689_v1 }
  0xe8   :  { %1687 = vmatpush.bf16.msrb.mxu0 %v5693_v7  ;;  %1700 = vmatpush.bf16.msrb.mxu1 %v5695_v55  ;;  %v831_v10 = vpop.f32.mrf.mxu0  ;;  %v844_v16 = vpop.f32.mrf.mxu1 }
  0xe9   :  { %1713 = vmatpush.bf16.msrb.mxu2 %v5699_v37  ;;  %1726 = vmatpush.bf16.msrb.mxu3 %v5701_v2  ;;  %v832_v13 = vadd.f32 %v831_v10, %v330_v3  ;;  %v332_v10 = vperm.slane %v5705_v62, 2 }
  0xeb   :  { %1688 = vmatmul.bf16.vlgmr.msrb.gmra.mxu0 %v5507_v0  ;;  %1701 = vmatmul.bf16.vlgmr.msrb.gmra.mxu1 %v5513_v6  ;;  %v5721_v54 = vadd.f32 %v844_v16, %v832_v13 }
  0xec   :  { %1828 = vmatpush.bf16.msra.mxu0 %v5395_v56  ;;  %1714 = vmatmul.bf16.vlgmr.msrb.gmra.mxu2 %v5507_v0 }
  0xed   :  { %1854 = vmatpush.bf16.msra.mxu2 %v5399_v60  ;;  %1727 = vmatmul.bf16.vlgmr.msrb.gmra.mxu3 %v5513_v6  ;;  %6976 = vst [vmem:[#allocation112_spill] sm:$0xff] %v5721_v54  ;;  %v857_v0 = vpop.f32.mrf.mxu2  ;;  %v870_v6 = vpop.f32.mrf.mxu3 }
  0xee   :  { %1841 = vmatpush.bf16.msra.mxu1 %v5397_v57  ;;  %1867 = vmatpush.bf16.msra.mxu3 %v5401_v61  ;;  %v858_v14 = vadd.f32 %v857_v0, %v331_v26  ;;  %v333_v0 = vperm.slane %v5705_v62, 3 }
  0xf0   :  { %1829 = vmatpush.bf16.msra.mxu0 %v5405_v4  ;;  %v5729_v22 = vadd.f32 %v870_v6, %v858_v14  ;;  %v833_v25 = vpop.f32.mrf.mxu0  ;;  %v846_v27 = vpop.f32.mrf.mxu1 }
  0xf1   :  { %1855 = vmatpush.bf16.msra.mxu2 %v5411_v8 }
  0xf2   :  { %1842 = vmatpush.bf16.msra.mxu1 %v5407_v5  ;;  %1868 = vmatpush.bf16.msra.mxu3 %v5413_v9  ;;  %6977 = vst [vmem:[#allocation113_spill] sm:$0xff] %v5729_v22 }
  0xf4   :  { %1830 = vmatpush.bf16.msra.mxu0 %v5421_v17 }
  0xf5   :  { %1856 = vmatpush.bf16.msra.mxu2 %v5427_v23  ;;  %v859_v30 = vpop.f32.mrf.mxu2  ;;  %v872_v3 = vpop.f32.mrf.mxu3 }
  0xf6   :  { %1843 = vmatpush.bf16.msra.mxu1 %v5423_v18  ;;  %1869 = vmatpush.bf16.msra.mxu3 %v5429_v21 }
  0xf8   :  { %1831 = vmatpush.bf16.msra.mxu0 %v5433_v28  ;;  %v883_v16 = vpop.f32.mrf.mxu0  ;;  %v896_v13 = vpop.f32.mrf.mxu1 }
  0xf9   :  { %1857 = vmatpush.bf16.msra.mxu2 %v5439_v32  ;;  %v884_v26 = vadd.f32 %v883_v16, %v332_v10  ;;  %v6980_v16 = vld [vmem:[#allocation58_spill] sm:$0xff] }
  0xfa   :  { %1844 = vmatpush.bf16.msra.mxu1 %v5435_v29  ;;  %1870 = vmatpush.bf16.msra.mxu3 %v5441_v33 }
  0xfb   :  { %v5743_v6 = vadd.f32 %v896_v13, %v884_v26 }
  0xfc   :  { %1832 = vmatpush.bf16.msra.mxu0 %v5445_v40 }
  0xfd   :  { %1858 = vmatpush.bf16.msra.mxu2 %v5451_v44  ;;  %6978 = vst [vmem:[#allocation114_spill] sm:$0xff] %v5743_v6  ;;  %v909_v14 = vpop.f32.mrf.mxu2  ;;  %v922_v25 = vpop.f32.mrf.mxu3 }
  0xfe   :  { %1845 = vmatpush.bf16.msra.mxu1 %v5447_v41  ;;  %1871 = vmatpush.bf16.msra.mxu3 %v5453_v45  ;;  %v910_v27 = vadd.f32 %v909_v14, %v333_v0  ;;  %v6981_v0 = vld [vmem:[#allocation59_spill] sm:$0xff]  ;;  %v6982_v14 = vld [vmem:[#allocation61_spill] sm:$0xff] }
 0x100   :  { %1833 = vmatpush.bf16.msra.mxu0 %v5457_v52  ;;  %v5751_v30 = vadd.f32 %v922_v25, %v910_v27  ;;  %v885_v3 = vpop.f32.mrf.mxu0  ;;  %v898_v10 = vpop.f32.mrf.mxu1  ;;  %v334_v25 = vperm.slane %v5705_v62, 4  ;;  %v6983_v27 = vld [vmem:[#allocation60_spill] sm:$0xff] }
 0x101   :  { %1859 = vmatpush.bf16.msra.mxu2 %v5463_v58  ;;  %v6984_v3 = vld [vmem:[#allocation62_spill] sm:$0xff] }
 0x102   :  { %1846 = vmatpush.bf16.msra.mxu1 %v5459_v53  ;;  %1872 = vmatpush.bf16.msra.mxu3 %v5465_v59  ;;  %6979 = vst [vmem:[#allocation115_spill] sm:$0xff] %v5751_v30 }
 0x104   :  { %1834 = vmatpush.bf16.msra.mxu0 %v5469_v11 }
 0x105   :  { %1860 = vmatpush.bf16.msra.mxu2 %v5475_v19  ;;  %v911_v13 = vpop.f32.mrf.mxu2  ;;  %v924_v26 = vpop.f32.mrf.mxu3 }
 0x106   :  { %1847 = vmatpush.bf16.msra.mxu1 %v5471_v12  ;;  %1873 = vmatpush.bf16.msra.mxu3 %v5477_v20  ;;  %v335_v13 = vperm.slane %v5705_v62, 5  ;;  %v6988_v26 = vld [vmem:[#allocation64_spill] sm:$0xff] }
 0x108   :  { %1835 = vmatpush.bf16.msra.mxu0 %v5481_v35  ;;  %v935_v10 = vpop.f32.mrf.mxu0  ;;  %v948_v20 = vpop.f32.mrf.mxu1 }
 0x109   :  { %1861 = vmatpush.bf16.msra.mxu2 %v5489_v42 }
 0x10a   :  { %1848 = vmatpush.bf16.msra.mxu1 %v5483_v36  ;;  %1874 = vmatpush.bf16.msra.mxu3 %v5491_v43  ;;  %v6985_v36 = vld [vmem:[#allocation63_spill] sm:$0xff]  ;;  %v6986_v43 = vld [vmem:[#allocation65_spill] sm:$0xff] }
 0x10c   :  { %1880 = vmatpush.bf16.msrb.mxu0 %v5495_v47 }
 0x10d   :  { %1906 = vmatpush.bf16.msrb.mxu2 %v5499_v51 }
 0x10e   :  { %1893 = vmatpush.bf16.msrb.mxu1 %v5497_v48  ;;  %1919 = vmatpush.bf16.msrb.mxu3 %v6980_v16  ;;  %v936_v48 = vadd.f32 %v935_v10, %v334_v25 }
 0x110   :  { %1881 = vmatpush.bf16.msrb.mxu0 %v6981_v0  ;;  %v5768_v16 = vadd.f32 %v948_v20, %v936_v48  ;;  %v6990_v0 = vld [vmem:[#allocation67_spill] sm:$0xff]  ;;  %v937_v25 = vpop.f32.mrf.mxu0  ;;  %v6995_v48 = vld [vmem:[#allocation73_spill] sm:$0xff]  ;;  %v950_v10 = vpop.f32.mrf.mxu1 }
 0x111   :  { %1907 = vmatpush.bf16.msrb.mxu2 %v6982_v14  ;;  %v6989_v14 = vld [vmem:[#allocation66_spill] sm:$0xff]  ;;  %v974_v51 = vpop.f32.mrf.mxu3  ;;  %v6994_v20 = vld [vmem:[#allocation71_spill] sm:$0xff] }
 0x112   :  { %1894 = vmatpush.bf16.msrb.mxu1 %v6983_v27  ;;  %1920 = vmatpush.bf16.msrb.mxu3 %v6984_v3  ;;  %6987 = vst [vmem:[#allocation116_spill] sm:$0xff] %v5768_v16  ;;  %v6991_v27 = vld [vmem:[#allocation69_spill] sm:$0xff]  ;;  %v961_v3 = vpop.f32.mrf.mxu2  ;;  %v7001_v25 = vld [vmem:[#allocation78_spill] sm:$0xff] }
 0x113   :  { %v962_v12 = vadd.f32 %v961_v3, %v335_v13  ;;  %v6999_v3 = vld [vmem:[#allocation77_spill] sm:$0xff] }
 0x114   :  { %1882 = vmatpush.bf16.msrb.mxu0 %v6985_v36  ;;  %v6992_v36 = vld [vmem:[#allocation68_spill] sm:$0xff] }
 0x115   :  { %1908 = vmatpush.bf16.msrb.mxu2 %v6986_v43  ;;  %v6993_v43 = vld [vmem:[#allocation70_spill] sm:$0xff]  ;;  %v5779_v62 = vadd.f32 %v974_v51, %v962_v12  ;;  %v7003_v12 = vld [vmem:[#allocation80_spill] sm:$0xff] }
 0x116   :  { %1895 = vmatpush.bf16.msrb.mxu1 %v6988_v26  ;;  %1921 = vmatpush.bf16.msrb.mxu3 %v6989_v14  ;;  %v6996_v14 = vld [vmem:[#allocation72_spill] sm:$0xff]  ;;  %v6997_v26 = vld [vmem:[#allocation74_spill] sm:$0xff] }
 0x117   :  { %v7004_v51 = vld [vmem:[#allocation86_spill] sm:$0xff] }
 0x118   :  { %1883 = vmatpush.bf16.msrb.mxu0 %v6990_v0  ;;  %v7000_v0 = vld [vmem:[#allocation76_spill] sm:$0xff] }
 0x119   :  { %1909 = vmatpush.bf16.msrb.mxu2 %v6991_v27  ;;  %v6998_v27 = vld [vmem:[#allocation75_spill] sm:$0xff] }
 0x11a   :  { %1896 = vmatpush.bf16.msrb.mxu1 %v6992_v36  ;;  %1922 = vmatpush.bf16.msrb.mxu3 %v6993_v43  ;;  %v963_v13 = vpop.f32.mrf.mxu2  ;;  %v976_v36 = vpop.f32.mrf.mxu3  ;;  %v7002_v43 = vld [vmem:[#allocation79_spill] sm:$0xff] }
 0x11b   :  { %v5795_v36 = vld [vmem:[#allocation14] sm:$0x3f] }
 0x11c   :  { %1884 = vmatpush.bf16.msrb.mxu0 %v6994_v20  ;;  %v5798_v13 = vperm.slane %v5795_v36, 0 }
 0x11d   :  { %1910 = vmatpush.bf16.msrb.mxu2 %v6995_v48 }
 0x11e   :  { %1897 = vmatpush.bf16.msrb.mxu1 %v6996_v14  ;;  %1923 = vmatpush.bf16.msrb.mxu3 %v6997_v26  ;;  %7005 = vst [vmem:[#allocation117_spill] sm:$0xff] %v5798_v13 }
 0x120   :  { %1885 = vmatpush.bf16.msrb.mxu0 %v6998_v27 }
 0x121   :  { %1911 = vmatpush.bf16.msrb.mxu2 %v6999_v3 }
 0x122   :  { %1898 = vmatpush.bf16.msrb.mxu1 %v7000_v0  ;;  %1924 = vmatpush.bf16.msrb.mxu3 %v7001_v25 }
 0x124   :  { %1886 = vmatpush.bf16.msrb.mxu0 %v7002_v43 }
 0x125   :  { %1912 = vmatpush.bf16.msrb.mxu2 %v5587_v49 }
 0x126   :  { %1899 = vmatpush.bf16.msrb.mxu1 %v7003_v12  ;;  %1925 = vmatpush.bf16.msrb.mxu3 %v5589_v15 }
 0x128   :  { %1887 = vmatpush.bf16.msrb.mxu0 %v5593_v39  ;;  %v1585_v10 = vpop.f32.mrf.mxu0  ;;  %v1598_v25 = vpop.f32.mrf.mxu1  ;;  %v5802_v39 = vperm.slane %v5795_v36, 1 }
 0x129   :  { %1913 = vmatpush.bf16.msrb.mxu2 %v5599_v38  ;;  %v1586_v0 = vadd.f32 %v1585_v10, %v5798_v13 }
 0x12a   :  { %1900 = vmatpush.bf16.msrb.mxu1 %v5595_v46  ;;  %1926 = vmatpush.bf16.msrb.mxu3 %v7004_v51  ;;  %7006 = vst [vmem:[#allocation118_spill] sm:$0xff] %v5802_v39 }
 0x12b   :  { %v1599_v43 = vadd.f32 %v1598_v25, %v1586_v0 }
 0x12d   :  { %v1732_v46 = vadd.f32 %v1599_v43, %v5721_v54 }
 0x12f   :  { %v4662_v3 = vmul.f32 -1.442695, %v1732_v46 }
 0x130   :  { %v1587_v15 = vpop.f32.mrf.mxu0  ;;  %v1600_v38 = vpop.f32.mrf.mxu1 }
 0x131   :  { %v1611_v12 = vpop.f32.mrf.mxu2  ;;  %v1624_v49 = vpop.f32.mrf.mxu3  ;;  %4906 = vpow2.f32 %v4662_v3  ;;  %v5808_v15 = vperm.slane %v5795_v36, 2 }
 0x132   :  { %v1612_v51 = vadd.f32 %v1611_v12, %v5802_v39 }
 0x133   :  { %7007 = vst [vmem:[#allocation119_spill] sm:$0xff] %v5808_v15 }
 0x134   :  { %v1625_v27 = vadd.f32 %v1624_v49, %v1612_v51 }
 0x136   :  { %v1733_v48 = vadd.f32 %v1625_v27, %v5729_v22 }
 0x137   :  { %v4907_v13 = vpop.eup %4906 }
 0x138   :  { %v4663_v10 = vmul.f32 -1.442695, %v1733_v48  ;;  %v1740_v0 = vadd.f32 1.0, %v4907_v13 }
 0x139   :  { %v1613_v26 = vpop.f32.mrf.mxu2  ;;  %v1626_v14 = vpop.f32.mrf.mxu3 }
 0x13a   :  { %4908 = vpow2.f32 %v4663_v10  ;;  %v5812_v26 = vperm.slane %v5795_v36, 3  ;;  %vm1747_vm2 = vweird.f32 %v1740_v0 }
 0x13b   :  { %4910 = vrcp.f32 %v1740_v0 }
 0x13c   :  { %7008 = vst [vmem:[#allocation120_spill] sm:$0xff] %v5812_v26 }
 0x140   :  { %v4909_v46 = vpop.eup %4908 }
 0x141   :  { %v5816_v12 = vadd.f32 1.0, %v4909_v46 }
 0x143   :  { %vm1762_vm7 = vweird.f32 %v5816_v12 }
 0x148   :  { %v1637_v25 = vpop.f32.mrf.mxu0  ;;  %v1650_v43 = vpop.f32.mrf.mxu1 }
 0x149   :  { %v1638_v38 = vadd.f32 %v1637_v25, %v5808_v15  ;;  %v4911_v25 = vpop.eup %4910 }
 0x14a   :  { %v1743_v15 = vmul.f32 %v4911_v25, %v1740_v0  ;;  %vm1748_vm1 = vweird.f32 %v4911_v25 }
 0x14b   :  { %v1651_v54 = vadd.f32 %v1650_v43, %v1638_v38  ;;  %vm1749_vm3 = vmor %vm1747_vm2, %vm1748_vm1 }
 0x14d   :  { %v1772_v49 = vadd.f32 %v1651_v54, %v5743_v6 }
 0x14f   :  { %v4664_v27 = vmul.f32 -1.442695, %v1772_v49 }
 0x150   :  { %v1639_v51 = vpop.f32.mrf.mxu0  ;;  %v1652_v10 = vpop.f32.mrf.mxu1 }
 0x151   :  { %v1663_v14 = vpop.f32.mrf.mxu2  ;;  %v1676_v3 = vpop.f32.mrf.mxu3  ;;  %4912 = vpow2.f32 %v4664_v27 }
 0x152   :  { %v1664_v48 = vadd.f32 %v1663_v14, %v5812_v26  ;;  %4914 = vrcp.f32 %v5816_v12  ;;  %v1744_v14 = vsub.f32 1.0, %v1743_v15  ;;  %v1753_v15 = vand.u32 2147483648, %v1740_v0 }
 0x154   :  { %v1677_v13 = vadd.f32 %v1676_v3, %v1664_v48  ;;  %v1745_v27 = vmul.f32 %v4911_v25, %v1744_v14 }
 0x156   :  { %v1773_v38 = vadd.f32 %v1677_v13, %v5751_v30 }
 0x157   :  { %v4913_v54 = vpop.eup %4912 }
 0x158   :  { %v4665_v43 = vmul.f32 -1.442695, %v1773_v38  ;;  %v1780_v6 = vadd.f32 1.0, %v4913_v54  ;;  %v5820_v26 = vpop.eup %4914  ;;  %v5828_v38 = vperm.slane %v5795_v36, 4  ;;  %v1751_v54 = vand.u32 2147483647, %v1740_v0 }
 0x159   :  { %v1665_v22 = vpop.f32.mrf.mxu2  ;;  %v1678_v49 = vpop.f32.mrf.mxu3  ;;  %v1758_v48 = vmul.f32 %v5820_v26, %v5816_v12  ;;  %vm1763_vm5 = vweird.f32 %v5820_v26 }
 0x15a   :  { %4916 = vpow2.f32 %v4665_v43  ;;  %v1746_v22 = vadd.f32 %v4911_v25, %v1745_v27  ;;  %7009 = vst [vmem:[#allocation121_spill] sm:$0xff] %v5828_v38  ;;  %v1754_v27 = vor.u32 1.1754944e-38, %v1753_v15  ;;  %vm1752_vm4 = vcmp.eq.f32.partialorder %v1751_v54, 8.507059e+37  ;;  %vm5840_vm9 = vmor %vm1762_vm7, %vm1763_vm5 }
 0x15b   :  { %4918 = vrcp.f32 %v1780_v6  ;;  %v1759_v10 = vsub.f32 1.0, %v1758_v48  ;;  %v1768_v15 = vand.u32 2147483648, %v5816_v12  ;;  %vm1787_vm8 = vweird.f32 %v1780_v6 }
 0x15c   :  { %v1791_v54 = vand.u32 2147483647, %v1780_v6 }
 0x15d   :  { %v1760_v39 = vmul.f32 %v5820_v26, %v1759_v10 }
 0x15e   :  { %vm1792_vm11 = vcmp.eq.f32.partialorder %v1791_v54, 8.507059e+37 }
 0x160   :  { %v4917_v46 = vpop.eup %4916 }
 0x161   :  { %v5824_v3 = vadd.f32 1.0, %v4917_v46  ;;  %v4919_v51 = vpop.eup %4918  ;;  %v1750_v46 = vsel %vm1749_vm3, %v4911_v25, %v1746_v22  ;;  %v1761_v25 = vadd.f32 %v5820_v26, %v1760_v39  ;;  %v1793_v22 = vand.u32 2147483648, %v1780_v6 }
 0x162   :  { %v1783_v13 = vmul.f32 %v4919_v51, %v1780_v6  ;;  %v1755_v35 = vsel %vm1752_vm4, %v1754_v27, %v1750_v46  ;;  %vm1788_vm6 = vweird.f32 %v4919_v51 }
 0x163   :  { %4920 = vrcp.f32 %v5824_v3  ;;  %vm5845_vm10 = vmor %vm1787_vm8, %vm1788_vm6  ;;  %v1765_v46 = vsel %vm5840_vm9, %v5820_v26, %v1761_v25  ;;  %vm1802_vm14 = vweird.f32 %v5824_v3 }
 0x164   :  { %v1784_v43 = vsub.f32 1.0, %v1783_v13  ;;  %v5834_v13 = vperm.slane %v5795_v36, 5 }
 0x166   :  { %v1785_v49 = vmul.f32 %v4919_v51, %v1784_v43 }
 0x168   :  { %v1689_v14 = vpop.f32.mrf.mxu0  ;;  %v1702_v30 = vpop.f32.mrf.mxu1  ;;  %v1786_v43 = vadd.f32 %v4919_v51, %v1785_v49 }
 0x169   :  { %v4921_v20 = vpop.eup %4920  ;;  %v1690_v47 = vadd.f32 %v1689_v14, %v5828_v38  ;;  %v1769_v38 = vor.u32 1.1754944e-38, %v1768_v15 }
 0x16a   :  { %v1798_v48 = vmul.f32 %v4921_v20, %v5824_v3  ;;  %v1790_v14 = vsel %vm5845_vm10, %v4919_v51, %v1786_v43  ;;  %vm1803_vm13 = vweird.f32 %v4921_v20  ;;  %v1808_v51 = vand.u32 2147483648, %v5824_v3 }
 0x16b   :  { %v1703_v42 = vadd.f32 %v1702_v30, %v1690_v47  ;;  %v1766_v30 = vand.u32 2147483647, %v5816_v12  ;;  %v1806_v47 = vand.u32 2147483647, %v5824_v3  ;;  %vm1804_vm15 = vmor %vm1802_vm14, %vm1803_vm13 }
 0x16c   :  { %v1799_v0 = vsub.f32 1.0, %v1798_v48  ;;  %v1794_v48 = vor.u32 1.1754944e-38, %v1793_v22 }
 0x16d   :  { %v1812_v10 = vmul.f32 %v1755_v35, %v1703_v42  ;;  %vm1767_vm12 = vcmp.eq.f32.partialorder %v1766_v30, 8.507059e+37  ;;  %v1809_v30 = vor.u32 1.1754944e-38, %v1808_v51  ;;  %vm1807_vm0 = vcmp.eq.f32.partialorder %v1806_v47, 8.507059e+37  ;;  %v7020_v51 = vld [vmem:[#allocation88_spill] sm:$0xff]  ;;  %v7022_v47 = vld [vmem:[#allocation95_spill] sm:$0xff] }
 0x16e   :  { %v1800_v49 = vmul.f32 %v4921_v20, %v1799_v0 }
 0x16f   :  { %v1814_v39 = vadd.f32 %v1812_v10, %v5768_v16  ;;  %v1715_v35 = vpop.f32.mrf.mxu2  ;;  %v1795_v10 = vsel %vm1792_vm11, %v1794_v48, %v1790_v14  ;;  %v1770_v16 = vsel %vm1767_vm12, %v1769_v38, %v1765_v46  ;;  %v7016_v46 = vld [vmem:[#allocation87_spill] sm:$0xff] }
 0x170   :  { %v1728_v42 = vpop.f32.mrf.mxu3  ;;  %v1716_v6 = vadd.f32 %v1715_v35, %v5834_v13  ;;  %v1691_v27 = vpop.f32.mrf.mxu0  ;;  %v1801_v59 = vadd.f32 %v4921_v20, %v1800_v49  ;;  %v1818_v26 = vsub.f32 1.0, %v1795_v10  ;;  %v7014_v35 = vld [vmem:[#allocation51_spill] sm:$0xff] }
 0x171   :  { %v1704_v12 = vpop.f32.mrf.mxu1  ;;  %4922 = vtanh.f32 %v1814_v39  ;;  %v1822_v38 = vmul.f32 %v1795_v10, %v7014_v35  ;;  %v7017_v27 = vld [vmem:[#allocation89_spill] sm:$0xff]  ;;  %v7018_v48 = vld [vmem:[#allocation91_spill] sm:$0xff] }
 0x172   :  { %v1729_v0 = vadd.f32 %v1728_v42, %v1716_v6  ;;  %v1805_v15 = vsel %vm1804_vm15, %v4921_v20, %v1801_v59  ;;  %v7015_v59 = vld [vmem:[#allocation54_spill] sm:$0xff]  ;;  %v7031_v35 = vld [vmem:[#allocation105_spill] sm:$0xff] }
 0x174   :  { %v1813_v43 = vmul.f32 %v1770_v16, %v1729_v0  ;;  %v1810_v16 = vsel %vm1807_vm0, %v1809_v30, %v1805_v15  ;;  %v7019_v0 = vld [vmem:[#allocation93_spill] sm:$0xff]  ;;  %v7026_v15 = vld [vmem:[#allocation99_spill] sm:$0xff]  ;;  %v7029_v30 = vld [vmem:[#allocation98_spill] sm:$0xff] }
 0x175   :  { %v1819_v42 = vsub.f32 1.0, %v1810_v16  ;;  %v1823_v20 = vmul.f32 %v1810_v16, %v7015_v59  ;;  %v7033_v16 = vld [vmem:[#allocation102_spill] sm:$0xff]  ;;  %v7037_v59 = vld [vmem:[#allocation108_spill] sm:$0xff] }
 0x176   :  { %v1815_v25 = vadd.f32 %v1813_v43, %v5779_v62  ;;  %v7021_v43 = vld [vmem:[#allocation90_spill] sm:$0xff] }
 0x177   :  { %v4923_v22 = vpop.eup %4922  ;;  %v1717_v54 = vpop.f32.mrf.mxu2 }
 0x178   :  { %v1730_v36 = vpop.f32.mrf.mxu3  ;;  %v1820_v39 = vmul.f32 %v4923_v22, %v1818_v26  ;;  %4924 = vtanh.f32 %v1815_v25  ;;  %v7023_v26 = vld [vmem:[#allocation97_spill] sm:$0xff]  ;;  %v7024_v25 = vld [vmem:[#allocation92_spill] sm:$0xff]  ;;  %v7025_v22 = vld [vmem:[#allocation94_spill] sm:$0xff] }
 0x179   :  { %v7027_v54 = vld [vmem:[#allocation101_spill] sm:$0xff]  ;;  %v7028_v36 = vld [vmem:[#allocation96_spill] sm:$0xff] }
 0x17a   :  { %v5861_v49 = vadd.f32 %v1822_v38, %v1820_v39  ;;  %v7030_v39 = vld [vmem:[#allocation103_spill] sm:$0xff]  ;;  %v7032_v38 = vld [vmem:[#allocation100_spill] sm:$0xff] }
 0x17c   :  { %v1826_v3 = vpack.c.bf16 %v5861_v49, %v5861_v49 }
 0x17e   :  { %v4925_v14 = vpop.eup %4924  ;;  %1836 = vmatmul.bf16.vlgmr.msra.gmra.mxu0 %v1826_v3  ;;  %1862 = vmatmul.bf16.vlgmr.msra.gmra.mxu2 %v1826_v3 }
 0x17f   :  { %v1821_v6 = vmul.f32 %v4925_v14, %v1819_v42  ;;  %1932 = vmatpush.bf16.msra.mxu0 %v7016_v46  ;;  %1958 = vmatpush.bf16.msra.mxu2 %v7017_v27  ;;  %v7034_v42 = vld [vmem:[#allocation107_spill] sm:$0xff]  ;;  %v7035_v14 = vld [vmem:[#allocation104_spill] sm:$0xff] }
 0x181   :  { %v5868_v12 = vadd.f32 %v1823_v20, %v1821_v6  ;;  %v7036_v6 = vld [vmem:[#allocation106_spill] sm:$0xff]  ;;  %v7039_v20 = vld [vmem:[#allocation49_spill] sm:$0xff] }
 0x183   :  { %1933 = vmatpush.bf16.msra.mxu0 %v7018_v48  ;;  %1959 = vmatpush.bf16.msra.mxu2 %v7019_v0  ;;  %v1827_v10 = vpack.c.bf16 %v5868_v12, %v5868_v12 }
 0x185   :  { %1849 = vmatmul.bf16.vlgmr.msra.gmra.mxu1 %v1827_v10  ;;  %1875 = vmatmul.bf16.vlgmr.msra.gmra.mxu3 %v1827_v10 }
 0x186   :  { %1945 = vmatpush.bf16.msra.mxu1 %v7020_v51  ;;  %1971 = vmatpush.bf16.msra.mxu3 %v7021_v43 }
 0x187   :  { %1934 = vmatpush.bf16.msra.mxu0 %v7022_v47  ;;  %1960 = vmatpush.bf16.msra.mxu2 %v7023_v26 }
 0x18a   :  { %1946 = vmatpush.bf16.msra.mxu1 %v7024_v25  ;;  %1972 = vmatpush.bf16.msra.mxu3 %v7025_v22 }
 0x18b   :  { %1935 = vmatpush.bf16.msra.mxu0 %v7026_v15  ;;  %1961 = vmatpush.bf16.msra.mxu2 %v7027_v54 }
 0x18e   :  { %1947 = vmatpush.bf16.msra.mxu1 %v7028_v36  ;;  %1973 = vmatpush.bf16.msra.mxu3 %v7029_v30 }
 0x18f   :  { %1888 = vmatmul.bf16.vlgmr.msrb.gmra.mxu0 %v1826_v3  ;;  %1914 = vmatmul.bf16.vlgmr.msrb.gmra.mxu2 %v1826_v3 }
 0x190   :  { %1936 = vmatpush.bf16.msra.mxu0 %v7030_v39  ;;  %1962 = vmatpush.bf16.msra.mxu2 %v7031_v35 }
 0x192   :  { %1948 = vmatpush.bf16.msra.mxu1 %v7032_v38  ;;  %1974 = vmatpush.bf16.msra.mxu3 %v7033_v16 }
 0x194   :  { %1937 = vmatpush.bf16.msra.mxu0 %v7034_v42  ;;  %1963 = vmatpush.bf16.msra.mxu2 %v5675_v31 }
 0x195   :  { %1901 = vmatmul.bf16.vlgmr.msrb.gmra.mxu1 %v1827_v10  ;;  %1927 = vmatmul.bf16.vlgmr.msrb.gmra.mxu3 %v1827_v10 }
 0x196   :  { %1949 = vmatpush.bf16.msra.mxu1 %v7035_v14  ;;  %1975 = vmatpush.bf16.msra.mxu3 %v7036_v6 }
 0x198   :  { %1938 = vmatpush.bf16.msra.mxu0 %v5681_v63  ;;  %1964 = vmatpush.bf16.msra.mxu2 %v5687_v50 }
 0x19a   :  { %1950 = vmatpush.bf16.msra.mxu1 %v7037_v59  ;;  %1976 = vmatpush.bf16.msra.mxu3 %v5677_v34 }
 0x19c   :  { %1939 = vmatpush.bf16.msra.mxu0 %v5693_v7  ;;  %1965 = vmatpush.bf16.msra.mxu2 %v5699_v37 }
 0x19e   :  { %1951 = vmatpush.bf16.msra.mxu1 %v5683_v24  ;;  %1977 = vmatpush.bf16.msra.mxu3 %v5689_v1 }
 0x19f   :  { %1940 = vmatmul.bf16.vlgmr.msra.gmra.mxu0 %v1826_v3  ;;  %1966 = vmatmul.bf16.vlgmr.msra.gmra.mxu2 %v1826_v3  ;;  %v7038_v3 = vld [vmem:[#allocation44_spill] sm:$0xff] }
 0x1a0   :  { %2112 = vmatpush.bf16.msrb.mxu0 %v5395_v56  ;;  %2138 = vmatpush.bf16.msrb.mxu2 %v5399_v60 }
 0x1a2   :  { %1952 = vmatpush.bf16.msra.mxu1 %v5695_v55  ;;  %1978 = vmatpush.bf16.msra.mxu3 %v5701_v2 }
 0x1a4   :  { %2113 = vmatpush.bf16.msrb.mxu0 %v5405_v4  ;;  %2139 = vmatpush.bf16.msrb.mxu2 %v5411_v8 }
 0x1a5   :  { %1953 = vmatmul.bf16.vlgmr.msra.gmra.mxu1 %v1827_v10  ;;  %1979 = vmatmul.bf16.vlgmr.msra.gmra.mxu3 %v1827_v10  ;;  %v7040_v10 = vld [vmem:[#allocation52_spill] sm:$0xff] }
 0x1a6   :  { %2125 = vmatpush.bf16.msrb.mxu1 %v5397_v57  ;;  %2151 = vmatpush.bf16.msrb.mxu3 %v5401_v61 }
 0x1a8   :  { %2114 = vmatpush.bf16.msrb.mxu0 %v5421_v17  ;;  %2140 = vmatpush.bf16.msrb.mxu2 %v5427_v23 }
 0x1aa   :  { %2126 = vmatpush.bf16.msrb.mxu1 %v5407_v5  ;;  %2152 = vmatpush.bf16.msrb.mxu3 %v5413_v9  ;;  %v7080_v5 = vld [vmem:[#allocation113_spill] sm:$0xff] }
 0x1ac   :  { %2115 = vmatpush.bf16.msrb.mxu0 %v5433_v28  ;;  %2141 = vmatpush.bf16.msrb.mxu2 %v5439_v32 }
 0x1ae   :  { %2127 = vmatpush.bf16.msrb.mxu1 %v5423_v18  ;;  %2153 = vmatpush.bf16.msrb.mxu3 %v5429_v21  ;;  %v7078_v21 = vld [vmem:[#allocation112_spill] sm:$0xff]  ;;  %v7079_v18 = vld [vmem:[#allocation118_spill] sm:$0xff] }
 0x1b0   :  { %2116 = vmatpush.bf16.msrb.mxu0 %v5445_v40  ;;  %2142 = vmatpush.bf16.msrb.mxu2 %v5451_v44 }
 0x1b2   :  { %2128 = vmatpush.bf16.msrb.mxu1 %v5435_v29  ;;  %2154 = vmatpush.bf16.msrb.mxu3 %v5441_v33  ;;  %v7041_v33 = vld [vmem:[#allocation55_spill] sm:$0xff] }
 0x1b4   :  { %2117 = vmatpush.bf16.msrb.mxu0 %v5457_v52  ;;  %2143 = vmatpush.bf16.msrb.mxu2 %v5463_v58  ;;  %v7042_v52 = vld [vmem:[#allocation57_spill] sm:$0xff]  ;;  %v7043_v58 = vld [vmem:[#allocation46_spill] sm:$0xff] }
 0x1b6   :  { %2129 = vmatpush.bf16.msrb.mxu1 %v5447_v41  ;;  %2155 = vmatpush.bf16.msrb.mxu3 %v5453_v45  ;;  %v7044_v41 = vld [vmem:[#allocation48_spill] sm:$0xff]  ;;  %v7045_v45 = vld [vmem:[#allocation59_spill] sm:$0xff] }
 0x1b8   :  { %2118 = vmatpush.bf16.msrb.mxu0 %v5469_v11  ;;  %2144 = vmatpush.bf16.msrb.mxu2 %v5475_v19  ;;  %v7046_v11 = vld [vmem:[#allocation61_spill] sm:$0xff]  ;;  %v7047_v19 = vld [vmem:[#allocation50_spill] sm:$0xff] }
 0x1ba   :  { %2130 = vmatpush.bf16.msrb.mxu1 %v5459_v53  ;;  %2156 = vmatpush.bf16.msrb.mxu3 %v7038_v3  ;;  %v7048_v53 = vld [vmem:[#allocation53_spill] sm:$0xff]  ;;  %v7049_v3 = vld [vmem:[#allocation56_spill] sm:$0xff] }
 0x1bc   :  { %2119 = vmatpush.bf16.msrb.mxu0 %v7039_v20  ;;  %2145 = vmatpush.bf16.msrb.mxu2 %v7040_v10  ;;  %v7050_v20 = vld [vmem:[#allocation58_spill] sm:$0xff]  ;;  %v7051_v10 = vld [vmem:[#allocation63_spill] sm:$0xff] }
 0x1be   :  { %2131 = vmatpush.bf16.msrb.mxu1 %v7043_v58  ;;  %2157 = vmatpush.bf16.msrb.mxu3 %v7044_v41  ;;  %v7054_v58 = vld [vmem:[#allocation62_spill] sm:$0xff]  ;;  %v7055_v41 = vld [vmem:[#allocation67_spill] sm:$0xff] }
 0x1c0   :  { %2164 = vmatpush.bf16.msra.mxu0 %v7041_v33  ;;  %2190 = vmatpush.bf16.msra.mxu2 %v7042_v52  ;;  %v7052_v33 = vld [vmem:[#allocation65_spill] sm:$0xff]  ;;  %v7053_v52 = vld [vmem:[#allocation60_spill] sm:$0xff] }
 0x1c2   :  { %2132 = vmatpush.bf16.msrb.mxu1 %v7047_v19  ;;  %2158 = vmatpush.bf16.msrb.mxu3 %v7048_v53  ;;  %v7058_v19 = vld [vmem:[#allocation66_spill] sm:$0xff]  ;;  %v7059_v53 = vld [vmem:[#allocation71_spill] sm:$0xff] }
 0x1c4   :  { %2165 = vmatpush.bf16.msra.mxu0 %v7045_v45  ;;  %2191 = vmatpush.bf16.msra.mxu2 %v7046_v11  ;;  %v7056_v45 = vld [vmem:[#allocation69_spill] sm:$0xff]  ;;  %v7057_v11 = vld [vmem:[#allocation64_spill] sm:$0xff] }
 0x1c6   :  { %2177 = vmatpush.bf16.msra.mxu1 %v7049_v3  ;;  %2203 = vmatpush.bf16.msra.mxu3 %v7050_v20  ;;  %v7060_v3 = vld [vmem:[#allocation73_spill] sm:$0xff]  ;;  %v7061_v20 = vld [vmem:[#allocation68_spill] sm:$0xff] }
 0x1c8   :  { %2166 = vmatpush.bf16.msra.mxu0 %v7051_v10  ;;  %2192 = vmatpush.bf16.msra.mxu2 %v7052_v33  ;;  %v7062_v10 = vld [vmem:[#allocation70_spill] sm:$0xff]  ;;  %v7063_v33 = vld [vmem:[#allocation75_spill] sm:$0xff] }
 0x1ca   :  { %2178 = vmatpush.bf16.msra.mxu1 %v7053_v52  ;;  %2204 = vmatpush.bf16.msra.mxu3 %v7054_v58  ;;  %v7064_v52 = vld [vmem:[#allocation77_spill] sm:$0xff]  ;;  %v7065_v58 = vld [vmem:[#allocation72_spill] sm:$0xff] }
 0x1cc   :  { %2167 = vmatpush.bf16.msra.mxu0 %v7055_v41  ;;  %2193 = vmatpush.bf16.msra.mxu2 %v7056_v45  ;;  %v7066_v41 = vld [vmem:[#allocation74_spill] sm:$0xff]  ;;  %v7067_v45 = vld [vmem:[#allocation79_spill] sm:$0xff] }
 0x1ce   :  { %2179 = vmatpush.bf16.msra.mxu1 %v7057_v11  ;;  %2205 = vmatpush.bf16.msra.mxu3 %v7058_v19  ;;  %v7068_v11 = vld [vmem:[#allocation81_spill] sm:$0xff]  ;;  %v7069_v19 = vld [vmem:[#allocation76_spill] sm:$0xff] }
 0x1d0   :  { %2168 = vmatpush.bf16.msra.mxu0 %v7059_v53  ;;  %2194 = vmatpush.bf16.msra.mxu2 %v7060_v3  ;;  %v7070_v53 = vld [vmem:[#allocation78_spill] sm:$0xff]  ;;  %v7071_v3 = vld [vmem:[#allocation83_spill] sm:$0xff] }
 0x1d2   :  { %2180 = vmatpush.bf16.msra.mxu1 %v7061_v20  ;;  %2206 = vmatpush.bf16.msra.mxu3 %v7062_v10  ;;  %v7072_v20 = vld [vmem:[#allocation85_spill] sm:$0xff]  ;;  %v7073_v10 = vld [vmem:[#allocation80_spill] sm:$0xff] }
 0x1d4   :  { %2169 = vmatpush.bf16.msra.mxu0 %v7063_v33  ;;  %2195 = vmatpush.bf16.msra.mxu2 %v7064_v52  ;;  %v7074_v33 = vld [vmem:[#allocation82_spill] sm:$0xff]  ;;  %v7075_v52 = vld [vmem:[#allocation84_spill] sm:$0xff] }
 0x1d6   :  { %2181 = vmatpush.bf16.msra.mxu1 %v7065_v58  ;;  %2207 = vmatpush.bf16.msra.mxu3 %v7066_v41  ;;  %v7076_v58 = vld [vmem:[#allocation86_spill] sm:$0xff] }
 0x1d8   :  { %2170 = vmatpush.bf16.msra.mxu0 %v7067_v45  ;;  %2196 = vmatpush.bf16.msra.mxu2 %v7068_v11  ;;  %v7077_v45 = vld [vmem:[#allocation117_spill] sm:$0xff] }
 0x1da   :  { %2182 = vmatpush.bf16.msra.mxu1 %v7069_v19  ;;  %2208 = vmatpush.bf16.msra.mxu3 %v7070_v53 }
 0x1dc   :  { %2171 = vmatpush.bf16.msra.mxu0 %v7071_v3  ;;  %2197 = vmatpush.bf16.msra.mxu2 %v7072_v20 }
 0x1de   :  { %2183 = vmatpush.bf16.msra.mxu1 %v7073_v10  ;;  %2209 = vmatpush.bf16.msra.mxu3 %v7074_v33 }
 0x1e2   :  { %2184 = vmatpush.bf16.msra.mxu1 %v7075_v52  ;;  %2210 = vmatpush.bf16.msra.mxu3 %v7076_v58 }
 0x1fb   :  { %v1837_v41 = vpop.f32.mrf.mxu0 }
 0x1fc   :  { %v1838_v29 = vadd.f32 %v1837_v41, %v7077_v45 }
 0x201   :  { %v1863_v11 = vpop.f32.mrf.mxu2 }
 0x202   :  { %v1850_v44 = vpop.f32.mrf.mxu1  ;;  %v1864_v20 = vadd.f32 %v1863_v11, %v7079_v18 }
 0x203   :  { %v1851_v19 = vadd.f32 %v1850_v44, %v1838_v29  ;;  %v1839_v40 = vpop.f32.mrf.mxu0  ;;  %v7081_v29 = vld [vmem:[#allocation119_spill] sm:$0xff] }
 0x205   :  { %v1986_v53 = vrot.slane %v1851_v19, 7 }
 0x207   :  { %v1990_v3 = vadd.f32 %v1986_v53, %v7078_v21 }
 0x208   :  { %v1876_v32 = vpop.f32.mrf.mxu3 }
 0x209   :  { %v4666_v10 = vmul.f32 -1.442695, %v1990_v3  ;;  %v1877_v28 = vadd.f32 %v1876_v32, %v1864_v20  ;;  %v1865_v33 = vpop.f32.mrf.mxu2 }
 0x20a   :  { %v1852_v9 = vpop.f32.mrf.mxu1 }
 0x20b   :  { %4926 = vpow2.f32 %v4666_v10  ;;  %v1987_v52 = vrot.slane %v1877_v28, 7  ;;  %v7082_v9 = vld [vmem:[#allocation114_spill] sm:$0xff]  ;;  %v7083_v28 = vld [vmem:[#allocation120_spill] sm:$0xff] }
 0x20c   :  { %v1889_v58 = vpop.f32.mrf.mxu0 }
 0x20d   :  { %v1991_v23 = vadd.f32 %v1987_v52, %v7080_v5  ;;  %v1890_v40 = vadd.f32 %v1889_v58, %v7081_v29 }
 0x20f   :  { %v4667_v41 = vmul.f32 -1.442695, %v1991_v23 }
 0x210   :  { %v1878_v45 = vpop.f32.mrf.mxu3 }
 0x211   :  { %v4927_v17 = vpop.eup %4926  ;;  %4928 = vpow2.f32 %v4667_v41 }
 0x212   :  { %v1998_v44 = vadd.f32 1.0, %v4927_v17  ;;  %v1902_v53 = vpop.f32.mrf.mxu1  ;;  %v1915_v19 = vpop.f32.mrf.mxu2 }
 0x213   :  { %v1903_v11 = vadd.f32 %v1902_v53, %v1890_v40  ;;  %v1916_v10 = vadd.f32 %v1915_v19, %v7083_v28  ;;  %v7084_v53 = vld [vmem:[#allocation115_spill] sm:$0xff] }
 0x214   :  { %4930 = vrcp.f32 %v1998_v44  ;;  %v1891_v3 = vpop.f32.mrf.mxu0  ;;  %v2011_v19 = vand.u32 2147483648, %v1998_v44  ;;  %vm2005_vm2 = vweird.f32 %v1998_v44 }
 0x215   :  { %v2032_v32 = vrot.slane %v1903_v11, 7 }
 0x217   :  { %v4929_v33 = vpop.eup %4928  ;;  %v2036_v20 = vadd.f32 %v2032_v32, %v7082_v9 }
 0x218   :  { %v1999_v18 = vadd.f32 1.0, %v4929_v33  ;;  %v1928_v52 = vpop.f32.mrf.mxu3 }
 0x219   :  { %v4668_v23 = vmul.f32 -1.442695, %v2036_v20  ;;  %v1929_v45 = vadd.f32 %v1928_v52, %v1916_v10  ;;  %v7085_v20 = vld [vmem:[#allocation121_spill] sm:$0xff] }
 0x21a   :  { %v4931_v5 = vpop.eup %4930  ;;  %4932 = vrcp.f32 %v1999_v18  ;;  %v1904_v41 = vpop.f32.mrf.mxu1  ;;  %vm2020_vm6 = vweird.f32 %v1999_v18 }
 0x21b   :  { %v1917_v58 = vpop.f32.mrf.mxu2  ;;  %4934 = vpow2.f32 %v4668_v23  ;;  %v2033_v17 = vrot.slane %v1929_v45, 7  ;;  %v2001_v29 = vmul.f32 %v4931_v5, %v1998_v44  ;;  %vm2006_vm1 = vweird.f32 %v4931_v5 }
 0x21c   :  { %v1941_v40 = vpop.f32.mrf.mxu0  ;;  %v2009_v45 = vand.u32 2147483647, %v1998_v44  ;;  %vm2007_vm3 = vmor %vm2005_vm2, %vm2006_vm1 }
 0x21d   :  { %v2037_v3 = vadd.f32 %v2033_v17, %v7084_v53  ;;  %v2002_v11 = vsub.f32 1.0, %v2001_v29  ;;  %v1942_v10 = vadd.f32 %v1941_v40, %v7085_v20  ;;  %v2026_v20 = vand.u32 2147483648, %v1999_v18 }
 0x21e   :  { %vm2010_vm4 = vcmp.eq.f32.partialorder %v2009_v45, 8.507059e+37 }
 0x21f   :  { %v4669_v21 = vmul.f32 -1.442695, %v2037_v3  ;;  %v2003_v61 = vmul.f32 %v4931_v5, %v2002_v11  ;;  %v2027_v45 = vor.u32 1.1754944e-38, %v2026_v20 }
 0x220   :  { %v4933_v32 = vpop.eup %4932  ;;  %v1930_v9 = vpop.f32.mrf.mxu3 }
 0x221   :  { %v4935_v33 = vpop.eup %4934  ;;  %4936 = vpow2.f32 %v4669_v21  ;;  %v2004_v52 = vadd.f32 %v4931_v5, %v2003_v61  ;;  %v2016_v41 = vmul.f32 %v4933_v32, %v1999_v18  ;;  %v2012_v9 = vor.u32 1.1754944e-38, %v2011_v19 }
 0x222   :  { %v2044_v58 = vadd.f32 1.0, %v4935_v33  ;;  %v1954_v23 = vpop.f32.mrf.mxu1  ;;  %vm2021_vm5 = vweird.f32 %v4933_v32 }
 0x223   :  { %v1967_v28 = vpop.f32.mrf.mxu2  ;;  %v1955_v57 = vadd.f32 %v1954_v23, %v1942_v10  ;;  %v2017_v29 = vsub.f32 1.0, %v2016_v41  ;;  %v2008_v17 = vsel %vm2007_vm3, %v4931_v5, %v2004_v52  ;;  %v2024_v10 = vand.u32 2147483647, %v1999_v18  ;;  %vm2022_vm7 = vmor %vm2020_vm6, %vm2021_vm5 }
 0x224   :  { %4938 = vrcp.f32 %v2044_v58  ;;  %v1943_v3 = vpop.f32.mrf.mxu0  ;;  %v2013_v40 = vsel %vm2010_vm4, %v2012_v9, %v2008_v17  ;;  %v1968_v61 = vadd.f32 %v1967_v28, %v5834_v13  ;;  %v2057_v9 = vand.u32 2147483648, %v2044_v58 }
 0x225   :  { %v2078_v11 = vrot.slane %v1955_v57, 7  ;;  %v2018_v53 = vmul.f32 %v4933_v32, %v2017_v29  ;;  %v7086_v29 = vld [vmem:[#allocation116_spill] sm:$0xff]  ;;  %vm2025_vm8 = vcmp.eq.f32.partialorder %v2024_v10, 8.507059e+37  ;;  %v2055_v18 = vand.u32 2147483647, %v2044_v58 }
 0x226   :  { %vm2051_vm10 = vweird.f32 %v2044_v58 }
 0x227   :  { %v4937_v21 = vpop.eup %4936  ;;  %v2019_v33 = vadd.f32 %v4933_v32, %v2018_v53  ;;  %v2082_v44 = vmul.f32 %v2078_v11, %v2013_v40  ;;  %vm2056_vm12 = vcmp.eq.f32.partialorder %v2055_v18, 8.507059e+37  ;;  %v2095_v18 = vrot.slane %v5868_v12, 7 }
 0x228   :  { %v2045_v2 = vadd.f32 1.0, %v4937_v21  ;;  %v1980_v55 = vpop.f32.mrf.mxu3 }
 0x229   :  { %v1981_v41 = vadd.f32 %v1980_v55, %v1968_v61  ;;  %v2023_v19 = vsel %vm2022_vm7, %v4933_v32, %v2019_v33  ;;  %v2084_v17 = vadd.f32 %v2082_v44, %v7086_v29  ;;  %v2058_v33 = vor.u32 1.1754944e-38, %v2057_v9 }
 0x22a   :  { %v4939_v5 = vpop.eup %4938  ;;  %4940 = vrcp.f32 %v2045_v2  ;;  %v1956_v57 = vpop.f32.mrf.mxu1  ;;  %v2028_v3 = vsel %vm2025_vm8, %v2027_v45, %v2023_v19  ;;  %v2070_v45 = vand.u32 2147483647, %v2045_v2  ;;  %vm2066_vm14 = vweird.f32 %v2045_v2 }
 0x22b   :  { %v1969_v52 = vpop.f32.mrf.mxu2  ;;  %v2047_v23 = vmul.f32 %v4939_v5, %v2044_v58  ;;  %v2079_v28 = vrot.slane %v1981_v41, 7  ;;  %vm2052_vm9 = vweird.f32 %v4939_v5  ;;  %4942 = vtanh.f32 %v2084_v17 }
 0x22c   :  { %vm2053_vm11 = vmor %vm2051_vm10, %vm2052_vm9  ;;  %v2072_v41 = vand.u32 2147483648, %v2045_v2  ;;  %v2094_v57 = vrot.slane %v5861_v49, 7  ;;  %vm2071_vm0 = vcmp.eq.f32.partialorder %v2070_v45, 8.507059e+37  ;;  %v7093_v45 = vld [vmem:[#allocation26_spill] sm:$0xff] }
 0x22d   :  { %v2048_v53 = vsub.f32 1.0, %v2047_v23  ;;  %v2083_v11 = vmul.f32 %v2079_v28, %v2028_v3 }
 0x22e   :  { %v2073_v3 = vor.u32 1.1754944e-38, %v2072_v41  ;;  %v7088_v41 = vld [vmem:[#allocation111_spill] sm:$0xff] }
 0x22f   :  { %v2049_v21 = vmul.f32 %v4939_v5, %v2048_v53  ;;  %v2085_v20 = vadd.f32 %v2083_v11, %v5779_v62 }
 0x230   :  { %v4941_v55 = vpop.eup %4940  ;;  %v1982_v40 = vpop.f32.mrf.mxu3 }
 0x231   :  { %v2062_v32 = vmul.f32 %v4941_v55, %v2045_v2  ;;  %v2050_v61 = vadd.f32 %v4939_v5, %v2049_v21  ;;  %vm2067_vm13 = vweird.f32 %v4941_v55  ;;  %v4943_v17 = vpop.eup %4942  ;;  %4944 = vtanh.f32 %v2085_v20 }
 0x232   :  { %vm2068_vm15 = vmor %vm2066_vm14, %vm2067_vm13 }
 0x233   :  { %v2063_v44 = vsub.f32 1.0, %v2062_v32  ;;  %v2054_v10 = vsel %vm2053_vm11, %v4939_v5, %v2050_v61 }
 0x234   :  { %v2059_v19 = vsel %vm2056_vm12, %v2058_v33, %v2054_v10  ;;  %v7087_v10 = vld [vmem:[#allocation110_spill] sm:$0xff] }
 0x235   :  { %v2064_v52 = vmul.f32 %v4941_v55, %v2063_v44  ;;  %v2088_v23 = vsub.f32 1.0, %v2059_v19  ;;  %v2098_v28 = vmul.f32 %v2094_v57, %v2059_v19  ;;  %v7089_v19 = vld [vmem:[#allocation23_spill] sm:$0xff]  ;;  %v7090_v57 = vld [vmem:[#allocation24_spill] sm:$0xff] }
 0x237   :  { %v2090_v58 = vmul.f32 %v4943_v17, %v2088_v23  ;;  %v2065_v53 = vadd.f32 %v4941_v55, %v2064_v52  ;;  %v4945_v32 = vpop.eup %4944  ;;  %v7091_v52 = vld [vmem:[#allocation29_spill] sm:$0xff]  ;;  %v7092_v23 = vld [vmem:[#allocation31_spill] sm:$0xff]  ;;  %v7094_v17 = vld [vmem:[#allocation28_spill] sm:$0xff] }
 0x239   :  { %v5979_v9 = vadd.f32 %v2098_v28, %v2090_v58  ;;  %v2069_v5 = vsel %vm2068_vm15, %v4941_v55, %v2065_v53  ;;  %v7095_v58 = vld [vmem:[#allocation33_spill] sm:$0xff]  ;;  %v7096_v28 = vld [vmem:[#allocation35_spill] sm:$0xff]  ;;  %v7097_v53 = vld [vmem:[#allocation30_spill] sm:$0xff]  ;;  %vm3804_vm15 = vcmask 1040384  }
 0x23a   :  { %v2074_v11 = vsel %vm2071_vm0, %v2073_v3, %v2069_v5  ;;  %v7098_v3 = vld [vmem:[#allocation32_spill] sm:$0xff]  ;;  %v7099_v5 = vld [vmem:[#allocation37_spill] sm:$0xff] }
 0x23b   :  { %v2089_v21 = vsub.f32 1.0, %v2074_v11  ;;  %v2102_v40 = vpack.c.bf16 %v5979_v9, %v5979_v9  ;;  %v2099_v33 = vmul.f32 %v2095_v18, %v2074_v11  ;;  %v7100_v11 = vld [vmem:[#allocation39_spill] sm:$0xff]  ;;  %v7102_v18 = vld [vmem:[#allocation36_spill] sm:$0xff] }
 0x23d   :  { %v2091_v61 = vmul.f32 %v4945_v32, %v2089_v21  ;;  %v2105_v2 = vshrl.u32 %v2102_v40, 16  ;;  %v7101_v21 = vld [vmem:[#allocation34_spill] sm:$0xff]  ;;  %v7103_v40 = vld [vmem:[#allocation41_spill] sm:$0xff]  ;;  %v7104_v32 = vld [vmem:[#allocation43_spill] sm:$0xff] }
 0x23f   :  { %v5984_v20 = vadd.f32 %v2099_v33, %v2091_v61  ;;  %2120 = vmatmul.bf16.vlgmr.msrb.gmra.mxu0 %v2105_v2  ;;  %2146 = vmatmul.bf16.vlgmr.msrb.gmra.mxu2 %v2105_v2  ;;  %v7105_v61 = vld [vmem:[#allocation38_spill] sm:$0xff]  ;;  %v7106_v33 = vld [vmem:[#allocation40_spill] sm:$0xff] }
 0x240   :  { %2216 = vmatpush.bf16.msrb.mxu0 %v7016_v46  ;;  %2242 = vmatpush.bf16.msrb.mxu2 %v7017_v27 }
 0x241   :  { %v2103_v55 = vpack.c.bf16 %v5984_v20, %v5984_v20 }
 0x243   :  { %v2108_v44 = vshrl.u32 %v2103_v55, 16  ;;  %v7108_v55 = vld [vmem:[#allocation47_spill] sm:$0xff] }
 0x244   :  { %2217 = vmatpush.bf16.msrb.mxu0 %v7018_v48  ;;  %2243 = vmatpush.bf16.msrb.mxu2 %v7019_v0 }
 0x245   :  { %2133 = vmatmul.bf16.vlgmr.msrb.gmra.mxu1 %v2108_v44  ;;  %2159 = vmatmul.bf16.vlgmr.msrb.gmra.mxu3 %v2108_v44 }
 0x246   :  { %2229 = vmatpush.bf16.msrb.mxu1 %v7020_v51  ;;  %2255 = vmatpush.bf16.msrb.mxu3 %v7021_v43 }
 0x248   :  { %2218 = vmatpush.bf16.msrb.mxu0 %v7022_v47  ;;  %2244 = vmatpush.bf16.msrb.mxu2 %v7023_v26 }
 0x24a   :  { %2230 = vmatpush.bf16.msrb.mxu1 %v7024_v25  ;;  %2256 = vmatpush.bf16.msrb.mxu3 %v7025_v22 }
 0x24c   :  { %2219 = vmatpush.bf16.msrb.mxu0 %v7026_v15  ;;  %2245 = vmatpush.bf16.msrb.mxu2 %v7027_v54 }
 0x24e   :  { %2231 = vmatpush.bf16.msrb.mxu1 %v7028_v36  ;;  %2257 = vmatpush.bf16.msrb.mxu3 %v7029_v30 }
 0x24f   :  { %2172 = vmatmul.bf16.vlgmr.msra.gmra.mxu0 %v2105_v2  ;;  %2198 = vmatmul.bf16.vlgmr.msra.gmra.mxu2 %v2105_v2 }
 0x250   :  { %2220 = vmatpush.bf16.msrb.mxu0 %v7030_v39  ;;  %2246 = vmatpush.bf16.msrb.mxu2 %v7031_v35 }
 0x252   :  { %2232 = vmatpush.bf16.msrb.mxu1 %v7032_v38  ;;  %2258 = vmatpush.bf16.msrb.mxu3 %v7033_v16 }
 0x254   :  { %2221 = vmatpush.bf16.msrb.mxu0 %v7034_v42  ;;  %2247 = vmatpush.bf16.msrb.mxu2 %v5675_v31 }
 0x255   :  { %2185 = vmatmul.bf16.vlgmr.msra.gmra.mxu1 %v2108_v44  ;;  %2211 = vmatmul.bf16.vlgmr.msra.gmra.mxu3 %v2108_v44 }
 0x256   :  { %2233 = vmatpush.bf16.msrb.mxu1 %v7035_v14  ;;  %2259 = vmatpush.bf16.msrb.mxu3 %v7036_v6 }
 0x258   :  { %2222 = vmatpush.bf16.msrb.mxu0 %v5681_v63  ;;  %2248 = vmatpush.bf16.msrb.mxu2 %v5687_v50 }
 0x25a   :  { %2234 = vmatpush.bf16.msrb.mxu1 %v7037_v59  ;;  %2260 = vmatpush.bf16.msrb.mxu3 %v5677_v34 }
 0x25c   :  { %2223 = vmatpush.bf16.msrb.mxu0 %v5693_v7  ;;  %2249 = vmatpush.bf16.msrb.mxu2 %v5699_v37 }
 0x25e   :  { %2235 = vmatpush.bf16.msrb.mxu1 %v5683_v24  ;;  %2261 = vmatpush.bf16.msrb.mxu3 %v5689_v1 }
 0x25f   :  { %2224 = vmatmul.bf16.vlgmr.msrb.gmra.mxu0 %v2105_v2  ;;  %2250 = vmatmul.bf16.vlgmr.msrb.gmra.mxu2 %v2105_v2  ;;  %v7107_v2 = vld [vmem:[#allocation45_spill] sm:$0xff] }
 0x260   :  { %2394 = vmatpush.bf16.msra.mxu0 %v5395_v56  ;;  %2420 = vmatpush.bf16.msra.mxu2 %v5399_v60 }
 0x262   :  { %2236 = vmatpush.bf16.msrb.mxu1 %v7087_v10  ;;  %2262 = vmatpush.bf16.msrb.mxu3 %v7088_v41 }
 0x264   :  { %2395 = vmatpush.bf16.msra.mxu0 %v5405_v4  ;;  %2421 = vmatpush.bf16.msra.mxu2 %v5411_v8 }
 0x265   :  { %2237 = vmatmul.bf16.vlgmr.msrb.gmra.mxu1 %v2108_v44  ;;  %2263 = vmatmul.bf16.vlgmr.msrb.gmra.mxu3 %v2108_v44  ;;  %v7109_v44 = vld [vmem:[#allocation42_spill] sm:$0xff] }
 0x266   :  { %2407 = vmatpush.bf16.msra.mxu1 %v7089_v19  ;;  %2433 = vmatpush.bf16.msra.mxu3 %v7090_v57  ;;  %v7152_v57 = vld [vmem:[#allocation113_spill] sm:$0xff] }
 0x268   :  { %2396 = vmatpush.bf16.msra.mxu0 %v7091_v52  ;;  %2422 = vmatpush.bf16.msra.mxu2 %v7092_v23 }
 0x26a   :  { %2408 = vmatpush.bf16.msra.mxu1 %v7093_v45  ;;  %2434 = vmatpush.bf16.msra.mxu3 %v7094_v17  ;;  %v7151_v17 = vld [vmem:[#allocation118_spill] sm:$0xff] }
 0x26c   :  { %2397 = vmatpush.bf16.msra.mxu0 %v7095_v58  ;;  %2423 = vmatpush.bf16.msra.mxu2 %v7096_v28  ;;  %v7150_v58 = vld [vmem:[#allocation112_spill] sm:$0xff] }
 0x26e   :  { %2409 = vmatpush.bf16.msra.mxu1 %v7097_v53  ;;  %2435 = vmatpush.bf16.msra.mxu3 %v7098_v3 }
 0x270   :  { %2398 = vmatpush.bf16.msra.mxu0 %v7099_v5  ;;  %2424 = vmatpush.bf16.msra.mxu2 %v7100_v11  ;;  %v7110_v5 = vld [vmem:[#allocation44_spill] sm:$0xff]  ;;  %v7111_v11 = vld [vmem:[#allocation49_spill] sm:$0xff] }
 0x272   :  { %2410 = vmatpush.bf16.msra.mxu1 %v7101_v21  ;;  %2436 = vmatpush.bf16.msra.mxu3 %v7102_v18  ;;  %v7112_v21 = vld [vmem:[#allocation52_spill] sm:$0xff]  ;;  %v7113_v18 = vld [vmem:[#allocation55_spill] sm:$0xff] }
 0x274   :  { %2399 = vmatpush.bf16.msra.mxu0 %v7103_v40  ;;  %2425 = vmatpush.bf16.msra.mxu2 %v7104_v32  ;;  %v7114_v40 = vld [vmem:[#allocation57_spill] sm:$0xff]  ;;  %v7115_v32 = vld [vmem:[#allocation46_spill] sm:$0xff] }
 0x276   :  { %2411 = vmatpush.bf16.msra.mxu1 %v7105_v61  ;;  %2437 = vmatpush.bf16.msra.mxu3 %v7106_v33  ;;  %v7116_v61 = vld [vmem:[#allocation48_spill] sm:$0xff]  ;;  %v7117_v33 = vld [vmem:[#allocation59_spill] sm:$0xff] }
 0x278   :  { %2400 = vmatpush.bf16.msra.mxu0 %v7107_v2  ;;  %2426 = vmatpush.bf16.msra.mxu2 %v7108_v55  ;;  %v7118_v2 = vld [vmem:[#allocation61_spill] sm:$0xff]  ;;  %v7119_v55 = vld [vmem:[#allocation50_spill] sm:$0xff] }
 0x27a   :  { %2412 = vmatpush.bf16.msra.mxu1 %v7109_v44  ;;  %2438 = vmatpush.bf16.msra.mxu3 %v7110_v5  ;;  %v7120_v44 = vld [vmem:[#allocation53_spill] sm:$0xff]  ;;  %v7121_v5 = vld [vmem:[#allocation56_spill] sm:$0xff] }
 0x27c   :  { %2401 = vmatpush.bf16.msra.mxu0 %v7111_v11  ;;  %2427 = vmatpush.bf16.msra.mxu2 %v7112_v21  ;;  %v7122_v11 = vld [vmem:[#allocation58_spill] sm:$0xff]  ;;  %v7123_v21 = vld [vmem:[#allocation63_spill] sm:$0xff] }
 0x27e   :  { %2413 = vmatpush.bf16.msra.mxu1 %v7115_v32  ;;  %2439 = vmatpush.bf16.msra.mxu3 %v7116_v61  ;;  %v7126_v32 = vld [vmem:[#allocation62_spill] sm:$0xff]  ;;  %v7127_v61 = vld [vmem:[#allocation67_spill] sm:$0xff] }
 0x280   :  { %2446 = vmatpush.bf16.msrb.mxu0 %v7113_v18  ;;  %2472 = vmatpush.bf16.msrb.mxu2 %v7114_v40  ;;  %v7124_v18 = vld [vmem:[#allocation65_spill] sm:$0xff]  ;;  %v7125_v40 = vld [vmem:[#allocation60_spill] sm:$0xff] }
 0x282   :  { %2414 = vmatpush.bf16.msra.mxu1 %v7119_v55  ;;  %2440 = vmatpush.bf16.msra.mxu3 %v7120_v44  ;;  %v7130_v55 = vld [vmem:[#allocation66_spill] sm:$0xff]  ;;  %v7131_v44 = vld [vmem:[#allocation71_spill] sm:$0xff] }
 0x284   :  { %2447 = vmatpush.bf16.msrb.mxu0 %v7117_v33  ;;  %2473 = vmatpush.bf16.msrb.mxu2 %v7118_v2  ;;  %v7128_v33 = vld [vmem:[#allocation69_spill] sm:$0xff]  ;;  %v7129_v2 = vld [vmem:[#allocation64_spill] sm:$0xff] }
 0x286   :  { %2459 = vmatpush.bf16.msrb.mxu1 %v7121_v5  ;;  %2485 = vmatpush.bf16.msrb.mxu3 %v7122_v11  ;;  %v7132_v5 = vld [vmem:[#allocation73_spill] sm:$0xff]  ;;  %v7133_v11 = vld [vmem:[#allocation68_spill] sm:$0xff] }
 0x288   :  { %2448 = vmatpush.bf16.msrb.mxu0 %v7123_v21  ;;  %2474 = vmatpush.bf16.msrb.mxu2 %v7124_v18  ;;  %v7134_v21 = vld [vmem:[#allocation70_spill] sm:$0xff]  ;;  %v7135_v18 = vld [vmem:[#allocation75_spill] sm:$0xff] }
 0x28a   :  { %2460 = vmatpush.bf16.msrb.mxu1 %v7125_v40  ;;  %2486 = vmatpush.bf16.msrb.mxu3 %v7126_v32  ;;  %v7136_v40 = vld [vmem:[#allocation77_spill] sm:$0xff]  ;;  %v7137_v32 = vld [vmem:[#allocation72_spill] sm:$0xff] }
 0x28c   :  { %2449 = vmatpush.bf16.msrb.mxu0 %v7127_v61  ;;  %2475 = vmatpush.bf16.msrb.mxu2 %v7128_v33  ;;  %v7138_v61 = vld [vmem:[#allocation74_spill] sm:$0xff]  ;;  %v7139_v33 = vld [vmem:[#allocation79_spill] sm:$0xff] }
 0x28e   :  { %2461 = vmatpush.bf16.msrb.mxu1 %v7129_v2  ;;  %2487 = vmatpush.bf16.msrb.mxu3 %v7130_v55  ;;  %v7140_v2 = vld [vmem:[#allocation81_spill] sm:$0xff]  ;;  %v7141_v55 = vld [vmem:[#allocation76_spill] sm:$0xff] }
 0x290   :  { %2450 = vmatpush.bf16.msrb.mxu0 %v7131_v44  ;;  %2476 = vmatpush.bf16.msrb.mxu2 %v7132_v5  ;;  %v7142_v44 = vld [vmem:[#allocation78_spill] sm:$0xff]  ;;  %v7143_v5 = vld [vmem:[#allocation83_spill] sm:$0xff] }
 0x292   :  { %2462 = vmatpush.bf16.msrb.mxu1 %v7133_v11  ;;  %2488 = vmatpush.bf16.msrb.mxu3 %v7134_v21  ;;  %v7144_v11 = vld [vmem:[#allocation85_spill] sm:$0xff]  ;;  %v7145_v21 = vld [vmem:[#allocation80_spill] sm:$0xff] }
 0x294   :  { %2451 = vmatpush.bf16.msrb.mxu0 %v7135_v18  ;;  %2477 = vmatpush.bf16.msrb.mxu2 %v7136_v40  ;;  %v7146_v18 = vld [vmem:[#allocation82_spill] sm:$0xff]  ;;  %v7147_v40 = vld [vmem:[#allocation84_spill] sm:$0xff] }
 0x296   :  { %2463 = vmatpush.bf16.msrb.mxu1 %v7137_v32  ;;  %2489 = vmatpush.bf16.msrb.mxu3 %v7138_v61  ;;  %v7148_v32 = vld [vmem:[#allocation86_spill] sm:$0xff] }
 0x298   :  { %2452 = vmatpush.bf16.msrb.mxu0 %v7139_v33  ;;  %2478 = vmatpush.bf16.msrb.mxu2 %v7140_v2  ;;  %v7149_v33 = vld [vmem:[#allocation117_spill] sm:$0xff] }
 0x29a   :  { %2464 = vmatpush.bf16.msrb.mxu1 %v7141_v55  ;;  %2490 = vmatpush.bf16.msrb.mxu3 %v7142_v44 }
 0x29c   :  { %2453 = vmatpush.bf16.msrb.mxu0 %v7143_v5  ;;  %2479 = vmatpush.bf16.msrb.mxu2 %v7144_v11 }
 0x29e   :  { %2465 = vmatpush.bf16.msrb.mxu1 %v7145_v21  ;;  %2491 = vmatpush.bf16.msrb.mxu3 %v7146_v18 }
 0x2a2   :  { %2466 = vmatpush.bf16.msrb.mxu1 %v7147_v40  ;;  %2492 = vmatpush.bf16.msrb.mxu3 %v7148_v32 }
 0x2bc   :  { %v2121_v61 = vpop.f32.mrf.mxu0 }
 0x2bd   :  { %v2122_v3 = vadd.f32 %v2121_v61, %v7149_v33 }
 0x2c2   :  { %v2134_v2 = vpop.f32.mrf.mxu1  ;;  %v2147_v53 = vpop.f32.mrf.mxu2 }
 0x2c3   :  { %v2135_v55 = vadd.f32 %v2134_v2, %v2122_v3  ;;  %v2148_v11 = vadd.f32 %v2147_v53, %v7151_v17 }
 0x2c4   :  { %v2123_v28 = vpop.f32.mrf.mxu0 }
 0x2c5   :  { %v2270_v44 = vrot.slane %v2135_v55, 6  ;;  %v7153_v28 = vld [vmem:[#allocation119_spill] sm:$0xff] }
 0x2c7   :  { %v2274_v5 = vadd.f32 %v2270_v44, %v7150_v58 }
 0x2c8   :  { %v2160_v45 = vpop.f32.mrf.mxu3 }
 0x2c9   :  { %v4670_v21 = vmul.f32 -1.442695, %v2274_v5  ;;  %v2161_v23 = vadd.f32 %v2160_v45, %v2148_v11 }
 0x2ca   :  { %v2136_v18 = vpop.f32.mrf.mxu1  ;;  %v2149_v52 = vpop.f32.mrf.mxu2 }
 0x2cb   :  { %4946 = vpow2.f32 %v4670_v21  ;;  %v2271_v40 = vrot.slane %v2161_v23, 6  ;;  %v7154_v52 = vld [vmem:[#allocation114_spill] sm:$0xff]  ;;  %v7155_v23 = vld [vmem:[#allocation120_spill] sm:$0xff] }
 0x2cc   :  { %v2173_v32 = vpop.f32.mrf.mxu0 }
 0x2cd   :  { %v2275_v19 = vadd.f32 %v2271_v40, %v7152_v57  ;;  %v2174_v3 = vadd.f32 %v2173_v32, %v7153_v28 }
 0x2cf   :  { %v4671_v61 = vmul.f32 -1.442695, %v2275_v19 }
 0x2d0   :  { %v2162_v33 = vpop.f32.mrf.mxu3 }
 0x2d1   :  { %v4947_v41 = vpop.eup %4946  ;;  %4948 = vpow2.f32 %v4671_v61 }
 0x2d2   :  { %v2282_v2 = vadd.f32 1.0, %v4947_v41  ;;  %v2186_v55 = vpop.f32.mrf.mxu1  ;;  %v2199_v44 = vpop.f32.mrf.mxu2 }
 0x2d3   :  { %v2187_v53 = vadd.f32 %v2186_v55, %v2174_v3  ;;  %v2200_v18 = vadd.f32 %v2199_v44, %v7155_v23  ;;  %v7156_v55 = vld [vmem:[#allocation115_spill] sm:$0xff] }
 0x2d4   :  { %4950 = vrcp.f32 %v2282_v2  ;;  %v2175_v5 = vpop.f32.mrf.mxu0  ;;  %v2295_v44 = vand.u32 2147483648, %v2282_v2  ;;  %vm2289_vm2 = vweird.f32 %v2282_v2 }
 0x2d5   :  { %v2316_v45 = vrot.slane %v2187_v53, 6 }
 0x2d7   :  { %v4949_v11 = vpop.eup %4948  ;;  %v2320_v21 = vadd.f32 %v2316_v45, %v7154_v52 }
 0x2d8   :  { %v2283_v17 = vadd.f32 1.0, %v4949_v11  ;;  %v2212_v40 = vpop.f32.mrf.mxu3 }
 0x2d9   :  { %v4672_v19 = vmul.f32 -1.442695, %v2320_v21  ;;  %v2213_v33 = vadd.f32 %v2212_v40, %v2200_v18  ;;  %v7157_v21 = vld [vmem:[#allocation121_spill] sm:$0xff] }
 0x2da   :  { %v4951_v57 = vpop.eup %4950  ;;  %4952 = vrcp.f32 %v2283_v17  ;;  %v2188_v61 = vpop.f32.mrf.mxu1  ;;  %vm2304_vm6 = vweird.f32 %v2283_v17 }
 0x2db   :  { %v2201_v32 = vpop.f32.mrf.mxu2  ;;  %4954 = vpow2.f32 %v4672_v19  ;;  %v2317_v41 = vrot.slane %v2213_v33, 6  ;;  %v2285_v28 = vmul.f32 %v4951_v57, %v2282_v2  ;;  %vm2290_vm1 = vweird.f32 %v4951_v57 }
 0x2dc   :  { %v2225_v3 = vpop.f32.mrf.mxu0  ;;  %v2293_v33 = vand.u32 2147483647, %v2282_v2  ;;  %vm2291_vm3 = vmor %vm2289_vm2, %vm2290_vm1  ;;  %vm3807_vm2 = vcmask 1041408  }
 0x2dd   :  { %v2321_v5 = vadd.f32 %v2317_v41, %v7156_v55  ;;  %v2286_v53 = vsub.f32 1.0, %v2285_v28  ;;  %v2226_v18 = vadd.f32 %v2225_v3, %v7157_v21  ;;  %v2310_v21 = vand.u32 2147483648, %v2283_v17 }
 0x2de   :  { %vm2294_vm4 = vcmp.eq.f32.partialorder %v2293_v33, 8.507059e+37 }
 0x2df   :  { %v4673_v58 = vmul.f32 -1.442695, %v2321_v5  ;;  %v2287_v10 = vmul.f32 %v4951_v57, %v2286_v53  ;;  %v2311_v33 = vor.u32 1.1754944e-38, %v2310_v21 }
 0x2e0   :  { %v4953_v45 = vpop.eup %4952  ;;  %v2214_v52 = vpop.f32.mrf.mxu3 }
 0x2e1   :  { %v4955_v11 = vpop.eup %4954  ;;  %4956 = vpow2.f32 %v4673_v58  ;;  %v2288_v40 = vadd.f32 %v4951_v57, %v2287_v10  ;;  %v2300_v61 = vmul.f32 %v4953_v45, %v2283_v17  ;;  %v2296_v52 = vor.u32 1.1754944e-38, %v2295_v44 }
 0x2e2   :  { %v2328_v32 = vadd.f32 1.0, %v4955_v11  ;;  %v2238_v19 = vpop.f32.mrf.mxu1  ;;  %vm2305_vm5 = vweird.f32 %v4953_v45 }
 0x2e3   :  { %v2251_v23 = vpop.f32.mrf.mxu2  ;;  %v2239_v8 = vadd.f32 %v2238_v19, %v2226_v18  ;;  %v2301_v28 = vsub.f32 1.0, %v2300_v61  ;;  %v2292_v41 = vsel %vm2291_vm3, %v4951_v57, %v2288_v40  ;;  %v2308_v18 = vand.u32 2147483647, %v2283_v17  ;;  %vm2306_vm7 = vmor %vm2304_vm6, %vm2305_vm5 }
 0x2e4   :  { %4958 = vrcp.f32 %v2328_v32  ;;  %v2227_v5 = vpop.f32.mrf.mxu0  ;;  %v2297_v3 = vsel %vm2294_vm4, %v2296_v52, %v2292_v41  ;;  %v2252_v10 = vadd.f32 %v2251_v23, %v5834_v13  ;;  %v2339_v17 = vand.u32 2147483647, %v2328_v32 }
 0x2e5   :  { %v2362_v53 = vrot.slane %v2239_v8, 6  ;;  %v2302_v55 = vmul.f32 %v4953_v45, %v2301_v28  ;;  %vm2309_vm8 = vcmp.eq.f32.partialorder %v2308_v18, 8.507059e+37  ;;  %v2341_v5 = vand.u32 2147483648, %v2328_v32 }
 0x2e6   :  { %vm2335_vm10 = vweird.f32 %v2328_v32  ;;  %vm2340_vm12 = vcmp.eq.f32.partialorder %v2339_v17, 8.507059e+37  ;;  %v2379_v17 = vrot.slane %v5984_v20, 7 }
 0x2e7   :  { %v4957_v58 = vpop.eup %4956  ;;  %v2303_v11 = vadd.f32 %v4953_v45, %v2302_v55  ;;  %v2366_v2 = vmul.f32 %v2362_v53, %v2297_v3 }
 0x2e8   :  { %v2329_v4 = vadd.f32 1.0, %v4957_v58  ;;  %v2264_v1 = vpop.f32.mrf.mxu3 }
 0x2e9   :  { %v2265_v61 = vadd.f32 %v2264_v1, %v2252_v10  ;;  %v2307_v44 = vsel %vm2306_vm7, %v4953_v45, %v2303_v11  ;;  %v2368_v28 = vadd.f32 %v2366_v2, %v7086_v29  ;;  %v2342_v10 = vor.u32 1.1754944e-38, %v2341_v5 }
 0x2ea   :  { %v4959_v57 = vpop.eup %4958  ;;  %4960 = vrcp.f32 %v2329_v4  ;;  %v2240_v8 = vpop.f32.mrf.mxu1  ;;  %v2312_v41 = vsel %vm2309_vm8, %v2311_v33, %v2307_v44  ;;  %v2356_v18 = vand.u32 2147483648, %v2329_v4  ;;  %v2378_v44 = vrot.slane %v5979_v9, 7 }
 0x2eb   :  { %v2253_v40 = vpop.f32.mrf.mxu2  ;;  %v2331_v19 = vmul.f32 %v4959_v57, %v2328_v32  ;;  %v2363_v23 = vrot.slane %v2265_v61, 6  ;;  %vm2336_vm9 = vweird.f32 %v4959_v57  ;;  %4962 = vtanh.f32 %v2368_v28 }
 0x2ec   :  { %vm2337_vm11 = vmor %vm2335_vm10, %vm2336_vm9  ;;  %vm2350_vm14 = vweird.f32 %v2329_v4 }
 0x2ed   :  { %v2332_v55 = vsub.f32 1.0, %v2331_v19  ;;  %v2367_v52 = vmul.f32 %v2363_v23, %v2312_v41  ;;  %v2354_v19 = vand.u32 2147483647, %v2329_v4 }
 0x2ef   :  { %v2333_v53 = vmul.f32 %v4959_v57, %v2332_v55  ;;  %v2369_v21 = vadd.f32 %v2367_v52, %v5779_v62  ;;  %v2357_v55 = vor.u32 1.1754944e-38, %v2356_v18  ;;  %vm2355_vm1 = vcmp.eq.f32.partialorder %v2354_v19, 8.507059e+37  ;;  %v7160_v18 = vld [vmem:[#allocation27_spill] sm:$0xff]  ;;  %v7165_v19 = vld [vmem:[#allocation29_spill] sm:$0xff] }
 0x2f0   :  { %v4961_v1 = vpop.eup %4960  ;;  %v2266_v58 = vpop.f32.mrf.mxu3  ;;  %v3805_v52 = vsel %vm3804_vm15, %v5861_v49, %v5979_v9  ;;  %v3806_v49 = vsel %vm3804_vm15, %v5868_v12, %v5984_v20  ;;  %v7158_v12 = vld [vmem:[#allocation109_spill] sm:$0xff] }
 0x2f1   :  { %v2346_v45 = vmul.f32 %v4961_v1, %v2329_v4  ;;  %v2334_v3 = vadd.f32 %v4959_v57, %v2333_v53  ;;  %vm2351_vm13 = vweird.f32 %v4961_v1  ;;  %v4963_v33 = vpop.eup %4962  ;;  %4964 = vtanh.f32 %v2369_v21  ;;  %v7159_v20 = vld [vmem:[#allocation25_spill] sm:$0xff] }
 0x2f2   :  { %vm2352_vm0 = vmor %vm2350_vm14, %vm2351_vm13 }
 0x2f3   :  { %v2347_v11 = vsub.f32 1.0, %v2346_v45  ;;  %v2338_v2 = vsel %vm2337_vm11, %v4959_v57, %v2334_v3 }
 0x2f4   :  { %v2343_v61 = vsel %vm2340_vm12, %v2342_v10, %v2338_v2 }
 0x2f5   :  { %v2348_v8 = vmul.f32 %v4961_v1, %v2347_v11  ;;  %v2372_v40 = vsub.f32 1.0, %v2343_v61  ;;  %v2382_v28 = vmul.f32 %v2378_v44, %v2343_v61  ;;  %v7161_v61 = vld [vmem:[#allocation110_spill] sm:$0xff]  ;;  %v7162_v44 = vld [vmem:[#allocation111_spill] sm:$0xff] }
 0x2f7   :  { %v2374_v32 = vmul.f32 %v4963_v33, %v2372_v40  ;;  %v2349_v23 = vadd.f32 %v4961_v1, %v2348_v8  ;;  %v4965_v58 = vpop.eup %4964  ;;  %v7163_v8 = vld [vmem:[#allocation23_spill] sm:$0xff]  ;;  %v7164_v40 = vld [vmem:[#allocation24_spill] sm:$0xff] }
 0x2f8   :  { %v7166_v33 = vld [vmem:[#allocation31_spill] sm:$0xff] }
 0x2f9   :  { %v6097_v41 = vadd.f32 %v2382_v28, %v2374_v32  ;;  %v2353_v57 = vsel %vm2352_vm0, %v4961_v1, %v2349_v23  ;;  %v7167_v32 = vld [vmem:[#allocation26_spill] sm:$0xff]  ;;  %v7168_v28 = vld [vmem:[#allocation28_spill] sm:$0xff]  ;;  %v7169_v23 = vld [vmem:[#allocation33_spill] sm:$0xff] }
 0x2fa   :  { %v2358_v5 = vsel %vm2355_vm1, %v2357_v55, %v2353_v57  ;;  %v7170_v55 = vld [vmem:[#allocation35_spill] sm:$0xff]  ;;  %v7171_v57 = vld [vmem:[#allocation30_spill] sm:$0xff] }
 0x2fb   :  { %v2373_v53 = vsub.f32 1.0, %v2358_v5  ;;  %v2386_v4 = vpack.c.bf16 %v6097_v41, %v6097_v41  ;;  %v6107_v45 = vsel %vm3807_vm2, %v3805_v52, %v6097_v41  ;;  %v2383_v1 = vmul.f32 %v2379_v17, %v2358_v5  ;;  %v7172_v5 = vld [vmem:[#allocation32_spill] sm:$0xff]  ;;  %v7173_v52 = vld [vmem:[#allocation37_spill] sm:$0xff]  ;;  %v7175_v17 = vld [vmem:[#allocation34_spill] sm:$0xff] }
 0x2fd   :  { %v2375_v3 = vmul.f32 %v4965_v58, %v2373_v53  ;;  %v2390_v10 = vrot.slane %v2386_v4, 1  ;;  %v7174_v53 = vld [vmem:[#allocation39_spill] sm:$0xff]  ;;  %v7176_v4 = vld [vmem:[#allocation36_spill] sm:$0xff]  ;;  %v7177_v58 = vld [vmem:[#allocation41_spill] sm:$0xff] }
 0x2ff   :  { %v6109_v21 = vadd.f32 %v2383_v1, %v2375_v3  ;;  %2402 = vmatmul.bf16.vlgmr.msra.gmra.mxu0 %v2390_v10  ;;  %2428 = vmatmul.bf16.vlgmr.msra.gmra.mxu2 %v2390_v10  ;;  %v7178_v3 = vld [vmem:[#allocation43_spill] sm:$0xff]  ;;  %v7179_v1 = vld [vmem:[#allocation38_spill] sm:$0xff] }
 0x300   :  { %2498 = vmatpush.bf16.msra.mxu0 %v7016_v46  ;;  %2524 = vmatpush.bf16.msra.mxu2 %v7017_v27 }
 0x301   :  { %v2387_v9 = vpack.c.bf16 %v6109_v21, %v6109_v21  ;;  %v6120_v11 = vsel %vm3807_vm2, %v3806_v49, %v6109_v21  ;;  %v7181_v49 = vld [vmem:[#allocation45_spill] sm:$0xff] }
 0x303   :  { %v2391_v2 = vrot.slane %v2387_v9, 1  ;;  %v7182_v9 = vld [vmem:[#allocation47_spill] sm:$0xff] }
 0x304   :  { %2499 = vmatpush.bf16.msra.mxu0 %v7018_v48  ;;  %2525 = vmatpush.bf16.msra.mxu2 %v7019_v0 }
 0x305   :  { %2415 = vmatmul.bf16.vlgmr.msra.gmra.mxu1 %v2391_v2  ;;  %2441 = vmatmul.bf16.vlgmr.msra.gmra.mxu3 %v2391_v2 }
 0x306   :  { %2511 = vmatpush.bf16.msra.mxu1 %v7020_v51  ;;  %2537 = vmatpush.bf16.msra.mxu3 %v7021_v43 }
 0x308   :  { %2500 = vmatpush.bf16.msra.mxu0 %v7022_v47  ;;  %2526 = vmatpush.bf16.msra.mxu2 %v7023_v26 }
 0x30a   :  { %2512 = vmatpush.bf16.msra.mxu1 %v7024_v25  ;;  %2538 = vmatpush.bf16.msra.mxu3 %v7025_v22 }
 0x30c   :  { %2501 = vmatpush.bf16.msra.mxu0 %v7026_v15  ;;  %2527 = vmatpush.bf16.msra.mxu2 %v7027_v54 }
 0x30e   :  { %2513 = vmatpush.bf16.msra.mxu1 %v7028_v36  ;;  %2539 = vmatpush.bf16.msra.mxu3 %v7029_v30 }
 0x30f   :  { %2454 = vmatmul.bf16.vlgmr.msrb.gmra.mxu0 %v2390_v10  ;;  %2480 = vmatmul.bf16.vlgmr.msrb.gmra.mxu2 %v2390_v10 }
 0x310   :  { %2502 = vmatpush.bf16.msra.mxu0 %v7030_v39  ;;  %2528 = vmatpush.bf16.msra.mxu2 %v7031_v35 }
 0x312   :  { %2514 = vmatpush.bf16.msra.mxu1 %v7032_v38  ;;  %2540 = vmatpush.bf16.msra.mxu3 %v7033_v16 }
 0x314   :  { %2503 = vmatpush.bf16.msra.mxu0 %v7034_v42  ;;  %2529 = vmatpush.bf16.msra.mxu2 %v5675_v31 }
 0x315   :  { %2467 = vmatmul.bf16.vlgmr.msrb.gmra.mxu1 %v2391_v2  ;;  %2493 = vmatmul.bf16.vlgmr.msrb.gmra.mxu3 %v2391_v2 }
 0x316   :  { %2515 = vmatpush.bf16.msra.mxu1 %v7035_v14  ;;  %2541 = vmatpush.bf16.msra.mxu3 %v7036_v6 }
 0x318   :  { %2504 = vmatpush.bf16.msra.mxu0 %v5681_v63  ;;  %2530 = vmatpush.bf16.msra.mxu2 %v5687_v50 }
 0x31a   :  { %2516 = vmatpush.bf16.msra.mxu1 %v7037_v59  ;;  %2542 = vmatpush.bf16.msra.mxu3 %v5677_v34 }
 0x31c   :  { %2505 = vmatpush.bf16.msra.mxu0 %v5693_v7  ;;  %2531 = vmatpush.bf16.msra.mxu2 %v5699_v37 }
 0x31e   :  { %2517 = vmatpush.bf16.msra.mxu1 %v5683_v24  ;;  %2543 = vmatpush.bf16.msra.mxu3 %v7158_v12 }
 0x31f   :  { %2506 = vmatmul.bf16.vlgmr.msra.gmra.mxu0 %v2390_v10  ;;  %2532 = vmatmul.bf16.vlgmr.msra.gmra.mxu2 %v2390_v10  ;;  %v7180_v10 = vld [vmem:[#allocation40_spill] sm:$0xff] }
 0x320   :  { %2680 = vmatpush.bf16.msrb.mxu0 %v5395_v56  ;;  %2706 = vmatpush.bf16.msrb.mxu2 %v5399_v60 }
 0x322   :  { %2518 = vmatpush.bf16.msra.mxu1 %v7161_v61  ;;  %2544 = vmatpush.bf16.msra.mxu3 %v7162_v44 }
 0x324   :  { %2681 = vmatpush.bf16.msrb.mxu0 %v7159_v20  ;;  %2707 = vmatpush.bf16.msrb.mxu2 %v7160_v18 }
 0x325   :  { %2519 = vmatmul.bf16.vlgmr.msra.gmra.mxu1 %v2391_v2  ;;  %2545 = vmatmul.bf16.vlgmr.msra.gmra.mxu3 %v2391_v2  ;;  %v7183_v2 = vld [vmem:[#allocation42_spill] sm:$0xff] }
 0x326   :  { %2693 = vmatpush.bf16.msrb.mxu1 %v7163_v8  ;;  %2719 = vmatpush.bf16.msrb.mxu3 %v7164_v40  ;;  %v7226_v40 = vld [vmem:[#allocation113_spill] sm:$0xff] }
 0x328   :  { %2682 = vmatpush.bf16.msrb.mxu0 %v7165_v19  ;;  %2708 = vmatpush.bf16.msrb.mxu2 %v7166_v33 }
 0x32a   :  { %2694 = vmatpush.bf16.msrb.mxu1 %v7167_v32  ;;  %2720 = vmatpush.bf16.msrb.mxu3 %v7168_v28  ;;  %v7225_v28 = vld [vmem:[#allocation118_spill] sm:$0xff] }
 0x32c   :  { %2683 = vmatpush.bf16.msrb.mxu0 %v7169_v23  ;;  %2709 = vmatpush.bf16.msrb.mxu2 %v7170_v55  ;;  %v7224_v23 = vld [vmem:[#allocation112_spill] sm:$0xff] }
 0x32e   :  { %2695 = vmatpush.bf16.msrb.mxu1 %v7171_v57  ;;  %2721 = vmatpush.bf16.msrb.mxu3 %v7172_v5 }
 0x330   :  { %2684 = vmatpush.bf16.msrb.mxu0 %v7173_v52  ;;  %2710 = vmatpush.bf16.msrb.mxu2 %v7174_v53  ;;  %v7184_v52 = vld [vmem:[#allocation44_spill] sm:$0xff]  ;;  %v7185_v53 = vld [vmem:[#allocation49_spill] sm:$0xff] }
 0x332   :  { %2696 = vmatpush.bf16.msrb.mxu1 %v7175_v17  ;;  %2722 = vmatpush.bf16.msrb.mxu3 %v7176_v4  ;;  %v7186_v17 = vld [vmem:[#allocation52_spill] sm:$0xff]  ;;  %v7187_v4 = vld [vmem:[#allocation55_spill] sm:$0xff] }
 0x334   :  { %2685 = vmatpush.bf16.msrb.mxu0 %v7177_v58  ;;  %2711 = vmatpush.bf16.msrb.mxu2 %v7178_v3  ;;  %v7188_v58 = vld [vmem:[#allocation57_spill] sm:$0xff]  ;;  %v7189_v3 = vld [vmem:[#allocation46_spill] sm:$0xff] }
 0x336   :  { %2697 = vmatpush.bf16.msrb.mxu1 %v7179_v1  ;;  %2723 = vmatpush.bf16.msrb.mxu3 %v7180_v10  ;;  %v7190_v1 = vld [vmem:[#allocation48_spill] sm:$0xff]  ;;  %v7191_v10 = vld [vmem:[#allocation59_spill] sm:$0xff] }
 0x338   :  { %2686 = vmatpush.bf16.msrb.mxu0 %v7181_v49  ;;  %2712 = vmatpush.bf16.msrb.mxu2 %v7182_v9  ;;  %v7192_v49 = vld [vmem:[#allocation61_spill] sm:$0xff]  ;;  %v7193_v9 = vld [vmem:[#allocation50_spill] sm:$0xff] }
 0x33a   :  { %2698 = vmatpush.bf16.msrb.mxu1 %v7183_v2  ;;  %2724 = vmatpush.bf16.msrb.mxu3 %v7184_v52  ;;  %v7194_v2 = vld [vmem:[#allocation53_spill] sm:$0xff]  ;;  %v7195_v52 = vld [vmem:[#allocation56_spill] sm:$0xff] }
 0x33c   :  { %2687 = vmatpush.bf16.msrb.mxu0 %v7185_v53  ;;  %2713 = vmatpush.bf16.msrb.mxu2 %v7186_v17  ;;  %v7196_v53 = vld [vmem:[#allocation58_spill] sm:$0xff]  ;;  %v7197_v17 = vld [vmem:[#allocation63_spill] sm:$0xff] }
 0x33e   :  { %2699 = vmatpush.bf16.msrb.mxu1 %v7189_v3  ;;  %2725 = vmatpush.bf16.msrb.mxu3 %v7190_v1  ;;  %v7200_v3 = vld [vmem:[#allocation62_spill] sm:$0xff]  ;;  %v7201_v1 = vld [vmem:[#allocation67_spill] sm:$0xff] }
 0x340   :  { %2732 = vmatpush.bf16.msra.mxu0 %v7187_v4  ;;  %2758 = vmatpush.bf16.msra.mxu2 %v7188_v58  ;;  %v7198_v4 = vld [vmem:[#allocation65_spill] sm:$0xff]  ;;  %v7199_v58 = vld [vmem:[#allocation60_spill] sm:$0xff] }
 0x342   :  { %2700 = vmatpush.bf16.msrb.mxu1 %v7193_v9  ;;  %2726 = vmatpush.bf16.msrb.mxu3 %v7194_v2  ;;  %v7204_v9 = vld [vmem:[#allocation66_spill] sm:$0xff]  ;;  %v7205_v2 = vld [vmem:[#allocation71_spill] sm:$0xff] }
 0x344   :  { %2733 = vmatpush.bf16.msra.mxu0 %v7191_v10  ;;  %2759 = vmatpush.bf16.msra.mxu2 %v7192_v49  ;;  %v7202_v10 = vld [vmem:[#allocation69_spill] sm:$0xff]  ;;  %v7203_v49 = vld [vmem:[#allocation64_spill] sm:$0xff] }
 0x346   :  { %2745 = vmatpush.bf16.msra.mxu1 %v7195_v52  ;;  %2771 = vmatpush.bf16.msra.mxu3 %v7196_v53  ;;  %v7206_v52 = vld [vmem:[#allocation73_spill] sm:$0xff]  ;;  %v7207_v53 = vld [vmem:[#allocation68_spill] sm:$0xff] }
 0x348   :  { %2734 = vmatpush.bf16.msra.mxu0 %v7197_v17  ;;  %2760 = vmatpush.bf16.msra.mxu2 %v7198_v4  ;;  %v7208_v17 = vld [vmem:[#allocation70_spill] sm:$0xff]  ;;  %v7209_v4 = vld [vmem:[#allocation75_spill] sm:$0xff] }
 0x34a   :  { %2746 = vmatpush.bf16.msra.mxu1 %v7199_v58  ;;  %2772 = vmatpush.bf16.msra.mxu3 %v7200_v3  ;;  %v7210_v58 = vld [vmem:[#allocation77_spill] sm:$0xff]  ;;  %v7211_v3 = vld [vmem:[#allocation72_spill] sm:$0xff] }
 0x34c   :  { %2735 = vmatpush.bf16.msra.mxu0 %v7201_v1  ;;  %2761 = vmatpush.bf16.msra.mxu2 %v7202_v10  ;;  %v7212_v1 = vld [vmem:[#allocation74_spill] sm:$0xff]  ;;  %v7213_v10 = vld [vmem:[#allocation79_spill] sm:$0xff] }
 0x34e   :  { %2747 = vmatpush.bf16.msra.mxu1 %v7203_v49  ;;  %2773 = vmatpush.bf16.msra.mxu3 %v7204_v9  ;;  %v7214_v49 = vld [vmem:[#allocation81_spill] sm:$0xff]  ;;  %v7215_v9 = vld [vmem:[#allocation76_spill] sm:$0xff] }
 0x350   :  { %2736 = vmatpush.bf16.msra.mxu0 %v7205_v2  ;;  %2762 = vmatpush.bf16.msra.mxu2 %v7206_v52  ;;  %v7216_v2 = vld [vmem:[#allocation78_spill] sm:$0xff]  ;;  %v7217_v52 = vld [vmem:[#allocation83_spill] sm:$0xff] }
 0x352   :  { %2748 = vmatpush.bf16.msra.mxu1 %v7207_v53  ;;  %2774 = vmatpush.bf16.msra.mxu3 %v7208_v17  ;;  %v7218_v53 = vld [vmem:[#allocation85_spill] sm:$0xff]  ;;  %v7219_v17 = vld [vmem:[#allocation80_spill] sm:$0xff] }
 0x354   :  { %2737 = vmatpush.bf16.msra.mxu0 %v7209_v4  ;;  %2763 = vmatpush.bf16.msra.mxu2 %v7210_v58  ;;  %v7220_v4 = vld [vmem:[#allocation82_spill] sm:$0xff]  ;;  %v7221_v58 = vld [vmem:[#allocation84_spill] sm:$0xff] }
 0x356   :  { %2749 = vmatpush.bf16.msra.mxu1 %v7211_v3  ;;  %2775 = vmatpush.bf16.msra.mxu3 %v7212_v1  ;;  %v7222_v3 = vld [vmem:[#allocation86_spill] sm:$0xff] }
 0x358   :  { %2738 = vmatpush.bf16.msra.mxu0 %v7213_v10  ;;  %2764 = vmatpush.bf16.msra.mxu2 %v7214_v49  ;;  %v7223_v10 = vld [vmem:[#allocation117_spill] sm:$0xff] }
 0x35a   :  { %2750 = vmatpush.bf16.msra.mxu1 %v7215_v9  ;;  %2776 = vmatpush.bf16.msra.mxu3 %v7216_v2 }
 0x35c   :  { %2739 = vmatpush.bf16.msra.mxu0 %v7217_v52  ;;  %2765 = vmatpush.bf16.msra.mxu2 %v7218_v53 }
 0x35e   :  { %2751 = vmatpush.bf16.msra.mxu1 %v7219_v17  ;;  %2777 = vmatpush.bf16.msra.mxu3 %v7220_v4 }
 0x362   :  { %2752 = vmatpush.bf16.msra.mxu1 %v7221_v58  ;;  %2778 = vmatpush.bf16.msra.mxu3 %v7222_v3 }
 0x37c   :  { %v2403_v1 = vpop.f32.mrf.mxu0 }
 0x37d   :  { %v2404_v5 = vadd.f32 %v2403_v1, %v7223_v10 }
 0x382   :  { %v2416_v49 = vpop.f32.mrf.mxu1  ;;  %v2429_v57 = vpop.f32.mrf.mxu2 }
 0x383   :  { %v2417_v9 = vadd.f32 %v2416_v49, %v2404_v5  ;;  %v2430_v53 = vadd.f32 %v2429_v57, %v7225_v28 }
 0x384   :  { %v2405_v55 = vpop.f32.mrf.mxu0 }
 0x385   :  { %v2552_v2 = vrot.slane %v2417_v9, 5  ;;  %v7227_v55 = vld [vmem:[#allocation119_spill] sm:$0xff] }
 0x387   :  { %v2556_v52 = vadd.f32 %v2552_v2, %v7224_v23 }
 0x388   :  { %v2442_v32 = vpop.f32.mrf.mxu3 }
 0x389   :  { %v4674_v17 = vmul.f32 -1.442695, %v2556_v52  ;;  %v2443_v33 = vadd.f32 %v2442_v32, %v2430_v53 }
 0x38a   :  { %v2418_v4 = vpop.f32.mrf.mxu1  ;;  %v2431_v19 = vpop.f32.mrf.mxu2 }
 0x38b   :  { %4966 = vpow2.f32 %v4674_v17  ;;  %v2553_v58 = vrot.slane %v2443_v33, 5  ;;  %v7228_v19 = vld [vmem:[#allocation114_spill] sm:$0xff]  ;;  %v7229_v33 = vld [vmem:[#allocation120_spill] sm:$0xff] }
 0x38c   :  { %v2455_v3 = vpop.f32.mrf.mxu0 }
 0x38d   :  { %v2557_v8 = vadd.f32 %v2553_v58, %v7226_v40  ;;  %v2456_v5 = vadd.f32 %v2455_v3, %v7227_v55 }
 0x38f   :  { %v4675_v1 = vmul.f32 -1.442695, %v2557_v8 }
 0x390   :  { %v2444_v10 = vpop.f32.mrf.mxu3 }
 0x391   :  { %v4967_v44 = vpop.eup %4966  ;;  %4968 = vpow2.f32 %v4675_v1 }
 0x392   :  { %v2564_v49 = vadd.f32 1.0, %v4967_v44  ;;  %v2468_v9 = vpop.f32.mrf.mxu1  ;;  %v2481_v2 = vpop.f32.mrf.mxu2 }
 0x393   :  { %v2469_v57 = vadd.f32 %v2468_v9, %v2456_v5  ;;  %v2482_v4 = vadd.f32 %v2481_v2, %v7229_v33  ;;  %v7230_v9 = vld [vmem:[#allocation115_spill] sm:$0xff] }
 0x394   :  { %4970 = vrcp.f32 %v2564_v49  ;;  %v2457_v52 = vpop.f32.mrf.mxu0  ;;  %v2577_v2 = vand.u32 2147483648, %v2564_v49  ;;  %vm2571_vm4 = vweird.f32 %v2564_v49 }
 0x395   :  { %v2598_v32 = vrot.slane %v2469_v57, 5 }
 0x397   :  { %v4969_v53 = vpop.eup %4968  ;;  %v2602_v17 = vadd.f32 %v2598_v32, %v7228_v19 }
 0x398   :  { %v2565_v28 = vadd.f32 1.0, %v4969_v53  ;;  %v2494_v58 = vpop.f32.mrf.mxu3 }
 0x399   :  { %v4676_v8 = vmul.f32 -1.442695, %v2602_v17  ;;  %v2495_v10 = vadd.f32 %v2494_v58, %v2482_v4  ;;  %v7231_v17 = vld [vmem:[#allocation121_spill] sm:$0xff] }
 0x39a   :  { %v4971_v40 = vpop.eup %4970  ;;  %4972 = vrcp.f32 %v2565_v28  ;;  %v2470_v1 = vpop.f32.mrf.mxu1  ;;  %vm2586_vm8 = vweird.f32 %v2565_v28 }
 0x39b   :  { %v2483_v3 = vpop.f32.mrf.mxu2  ;;  %4974 = vpow2.f32 %v4676_v8  ;;  %v2599_v44 = vrot.slane %v2495_v10, 5  ;;  %v2567_v55 = vmul.f32 %v4971_v40, %v2564_v49  ;;  %vm2572_vm3 = vweird.f32 %v4971_v40 }
 0x39c   :  { %v2507_v5 = vpop.f32.mrf.mxu0  ;;  %v2575_v10 = vand.u32 2147483647, %v2564_v49  ;;  %vm2573_vm5 = vmor %vm2571_vm4, %vm2572_vm3  ;;  %vm3810_vm3 = vcmask 1042432  }
 0x39d   :  { %v2603_v52 = vadd.f32 %v2599_v44, %v7230_v9  ;;  %v2568_v57 = vsub.f32 1.0, %v2567_v55  ;;  %v2508_v4 = vadd.f32 %v2507_v5, %v7231_v17  ;;  %v2592_v17 = vand.u32 2147483648, %v2565_v28 }
 0x39e   :  { %vm2576_vm6 = vcmp.eq.f32.partialorder %v2575_v10, 8.507059e+37 }
 0x39f   :  { %v4677_v23 = vmul.f32 -1.442695, %v2603_v52  ;;  %v2569_v61 = vmul.f32 %v4971_v40, %v2568_v57  ;;  %v2593_v10 = vor.u32 1.1754944e-38, %v2592_v17 }
 0x3a0   :  { %v4973_v32 = vpop.eup %4972  ;;  %v2496_v19 = vpop.f32.mrf.mxu3 }
 0x3a1   :  { %v4975_v53 = vpop.eup %4974  ;;  %4976 = vpow2.f32 %v4677_v23  ;;  %v2570_v58 = vadd.f32 %v4971_v40, %v2569_v61  ;;  %v2582_v1 = vmul.f32 %v4973_v32, %v2565_v28  ;;  %v2578_v19 = vor.u32 1.1754944e-38, %v2577_v2 }
 0x3a2   :  { %v2610_v3 = vadd.f32 1.0, %v4975_v53  ;;  %v2520_v8 = vpop.f32.mrf.mxu1  ;;  %vm2587_vm7 = vweird.f32 %v4973_v32 }
 0x3a3   :  { %v2533_v33 = vpop.f32.mrf.mxu2  ;;  %v2521_v18 = vadd.f32 %v2520_v8, %v2508_v4  ;;  %v2583_v55 = vsub.f32 1.0, %v2582_v1  ;;  %v2574_v44 = vsel %vm2573_vm5, %v4971_v40, %v2570_v58  ;;  %v2590_v4 = vand.u32 2147483647, %v2565_v28  ;;  %vm2588_vm9 = vmor %vm2586_vm8, %vm2587_vm7 }
 0x3a4   :  { %4978 = vrcp.f32 %v2610_v3  ;;  %v2509_v52 = vpop.f32.mrf.mxu0  ;;  %v2579_v5 = vsel %vm2576_vm6, %v2578_v19, %v2574_v44  ;;  %v2534_v61 = vadd.f32 %v2533_v33, %v5834_v13  ;;  %v2621_v28 = vand.u32 2147483647, %v2610_v3 }
 0x3a5   :  { %v2644_v57 = vrot.slane %v2521_v18, 5  ;;  %v2584_v9 = vmul.f32 %v4973_v32, %v2583_v55  ;;  %vm2591_vm10 = vcmp.eq.f32.partialorder %v2590_v4, 8.507059e+37  ;;  %v2623_v52 = vand.u32 2147483648, %v2610_v3 }
 0x3a6   :  { %vm2617_vm12 = vweird.f32 %v2610_v3  ;;  %vm2622_vm14 = vcmp.eq.f32.partialorder %v2621_v28, 8.507059e+37 }
 0x3a7   :  { %v4977_v23 = vpop.eup %4976  ;;  %v2585_v53 = vadd.f32 %v4973_v32, %v2584_v9  ;;  %v2648_v49 = vmul.f32 %v2644_v57, %v2579_v5 }
 0x3a8   :  { %v2611_v20 = vadd.f32 1.0, %v4977_v23  ;;  %v2546_v12 = vpop.f32.mrf.mxu3 }
 0x3a9   :  { %v2547_v1 = vadd.f32 %v2546_v12, %v2534_v61  ;;  %v2589_v2 = vsel %vm2588_vm9, %v4973_v32, %v2585_v53  ;;  %v2650_v55 = vadd.f32 %v2648_v49, %v7086_v29  ;;  %v2624_v61 = vor.u32 1.1754944e-38, %v2623_v52 }
 0x3aa   :  { %v4979_v40 = vpop.eup %4978  ;;  %4980 = vrcp.f32 %v2611_v20  ;;  %v2522_v18 = vpop.f32.mrf.mxu1  ;;  %v2594_v44 = vsel %vm2591_vm10, %v2593_v10, %v2589_v2  ;;  %v2638_v4 = vand.u32 2147483648, %v2611_v20  ;;  %v2660_v2 = vrot.slane %v6097_v41, 7 }
 0x3ab   :  { %v2535_v58 = vpop.f32.mrf.mxu2  ;;  %v2613_v8 = vmul.f32 %v4979_v40, %v2610_v3  ;;  %v2645_v33 = vrot.slane %v2547_v1, 5  ;;  %vm2618_vm11 = vweird.f32 %v4979_v40  ;;  %4982 = vtanh.f32 %v2650_v55 }
 0x3ac   :  { %vm2619_vm13 = vmor %vm2617_vm12, %vm2618_vm11  ;;  %vm2632_vm0 = vweird.f32 %v2611_v20  ;;  %v2661_v41 = vrot.slane %v6109_v21, 7 }
 0x3ad   :  { %v2614_v9 = vsub.f32 1.0, %v2613_v8  ;;  %v2649_v19 = vmul.f32 %v2645_v33, %v2594_v44  ;;  %v2636_v8 = vand.u32 2147483647, %v2611_v20 }
 0x3af   :  { %v2615_v57 = vmul.f32 %v4979_v40, %v2614_v9  ;;  %v2651_v17 = vadd.f32 %v2649_v19, %v5779_v62  ;;  %v2639_v9 = vor.u32 1.1754944e-38, %v2638_v4  ;;  %vm2637_vm2 = vcmp.eq.f32.partialorder %v2636_v8, 8.507059e+37  ;;  %v7234_v4 = vld [vmem:[#allocation27_spill] sm:$0xff]  ;;  %v7239_v8 = vld [vmem:[#allocation29_spill] sm:$0xff] }
 0x3b0   :  { %v4981_v12 = vpop.eup %4980  ;;  %v2548_v23 = vpop.f32.mrf.mxu3 }
 0x3b1   :  { %v2628_v32 = vmul.f32 %v4981_v12, %v2611_v20  ;;  %v2616_v5 = vadd.f32 %v4979_v40, %v2615_v57  ;;  %vm2633_vm15 = vweird.f32 %v4981_v12  ;;  %v4983_v10 = vpop.eup %4982  ;;  %4984 = vtanh.f32 %v2651_v17 }
 0x3b2   :  { %vm2634_vm1 = vmor %vm2632_vm0, %vm2633_vm15 }
 0x3b3   :  { %v2629_v53 = vsub.f32 1.0, %v2628_v32  ;;  %v2620_v49 = vsel %vm2619_vm13, %v4979_v40, %v2616_v5 }
 0x3b4   :  { %v2625_v1 = vsel %vm2622_vm14, %v2624_v61, %v2620_v49  ;;  %v7233_v49 = vld [vmem:[#allocation25_spill] sm:$0xff] }
 0x3b5   :  { %v2630_v18 = vmul.f32 %v4981_v12, %v2629_v53  ;;  %v2654_v58 = vsub.f32 1.0, %v2625_v1  ;;  %v2664_v55 = vmul.f32 %v2660_v2, %v2625_v1  ;;  %v7235_v1 = vld [vmem:[#allocation110_spill] sm:$0xff]  ;;  %v7236_v2 = vld [vmem:[#allocation111_spill] sm:$0xff] }
 0x3b7   :  { %v2656_v3 = vmul.f32 %v4983_v10, %v2654_v58  ;;  %v2631_v33 = vadd.f32 %v4981_v12, %v2630_v18  ;;  %v4985_v28 = vpop.eup %4984  ;;  %v7237_v18 = vld [vmem:[#allocation23_spill] sm:$0xff]  ;;  %v7238_v58 = vld [vmem:[#allocation24_spill] sm:$0xff] }
 0x3b8   :  { %v7240_v10 = vld [vmem:[#allocation31_spill] sm:$0xff] }
 0x3b9   :  { %v6229_v44 = vadd.f32 %v2664_v55, %v2656_v3  ;;  %v2635_v40 = vsel %vm2634_vm1, %v4981_v12, %v2631_v33  ;;  %v7241_v3 = vld [vmem:[#allocation26_spill] sm:$0xff]  ;;  %v7242_v55 = vld [vmem:[#allocation28_spill] sm:$0xff]  ;;  %v7243_v33 = vld [vmem:[#allocation33_spill] sm:$0xff] }
 0x3ba   :  { %v2640_v52 = vsel %vm2637_vm2, %v2639_v9, %v2635_v40  ;;  %v7244_v9 = vld [vmem:[#allocation35_spill] sm:$0xff]  ;;  %v7245_v40 = vld [vmem:[#allocation30_spill] sm:$0xff] }
 0x3bb   :  { %v2655_v19 = vsub.f32 1.0, %v2640_v52  ;;  %v2668_v57 = vpack.c.bf16 %v6229_v44, %v6229_v44  ;;  %v6236_v20 = vsel %vm3810_vm3, %v6107_v45, %v6229_v44  ;;  %v2665_v32 = vmul.f32 %v2661_v41, %v2640_v52  ;;  %v7246_v52 = vld [vmem:[#allocation32_spill] sm:$0xff]  ;;  %v7248_v41 = vld [vmem:[#allocation39_spill] sm:$0xff] }
 0x3bd   :  { %v2657_v23 = vmul.f32 %v4985_v28, %v2655_v19  ;;  %v2671_v5 = vshrl.u32 %v2668_v57, 16  ;;  %v7247_v19 = vld [vmem:[#allocation37_spill] sm:$0xff]  ;;  %v7249_v57 = vld [vmem:[#allocation34_spill] sm:$0xff]  ;;  %v7250_v28 = vld [vmem:[#allocation36_spill] sm:$0xff] }
 0x3bf   :  { %v6238_v61 = vadd.f32 %v2665_v32, %v2657_v23  ;;  %v2673_v12 = vrot.slane %v2671_v5, 1  ;;  %v7251_v23 = vld [vmem:[#allocation41_spill] sm:$0xff]  ;;  %v7252_v32 = vld [vmem:[#allocation43_spill] sm:$0xff]  ;;  %v7253_v5 = vld [vmem:[#allocation38_spill] sm:$0xff] }
 0x3c1   :  { %2688 = vmatmul.bf16.vlgmr.msrb.gmra.mxu0 %v2673_v12  ;;  %2714 = vmatmul.bf16.vlgmr.msrb.gmra.mxu2 %v2673_v12  ;;  %v2669_v17 = vpack.c.bf16 %v6238_v61, %v6238_v61  ;;  %v6244_v21 = vsel %vm3810_vm3, %v6120_v11, %v6238_v61  ;;  %v7232_v11 = vld [vmem:[#allocation109_spill] sm:$0xff] }
 0x3c2   :  { %2784 = vmatpush.bf16.msrb.mxu0 %v7016_v46  ;;  %2810 = vmatpush.bf16.msrb.mxu2 %v7017_v27 }
 0x3c3   :  { %v2675_v45 = vshrl.u32 %v2669_v17, 16  ;;  %v7255_v17 = vld [vmem:[#allocation45_spill] sm:$0xff] }
 0x3c5   :  { %v2677_v53 = vrot.slane %v2675_v45, 1  ;;  %v7256_v45 = vld [vmem:[#allocation47_spill] sm:$0xff] }
 0x3c6   :  { %2785 = vmatpush.bf16.msrb.mxu0 %v7018_v48  ;;  %2811 = vmatpush.bf16.msrb.mxu2 %v7019_v0 }
 0x3c7   :  { %2701 = vmatmul.bf16.vlgmr.msrb.gmra.mxu1 %v2677_v53  ;;  %2727 = vmatmul.bf16.vlgmr.msrb.gmra.mxu3 %v2677_v53 }
 0x3c8   :  { %2797 = vmatpush.bf16.msrb.mxu1 %v7020_v51  ;;  %2823 = vmatpush.bf16.msrb.mxu3 %v7021_v43 }
 0x3ca   :  { %2786 = vmatpush.bf16.msrb.mxu0 %v7022_v47  ;;  %2812 = vmatpush.bf16.msrb.mxu2 %v7023_v26 }
 0x3cc   :  { %2798 = vmatpush.bf16.msrb.mxu1 %v7024_v25  ;;  %2824 = vmatpush.bf16.msrb.mxu3 %v7025_v22 }
 0x3ce   :  { %2787 = vmatpush.bf16.msrb.mxu0 %v7026_v15  ;;  %2813 = vmatpush.bf16.msrb.mxu2 %v7027_v54 }
 0x3d0   :  { %2799 = vmatpush.bf16.msrb.mxu1 %v7028_v36  ;;  %2825 = vmatpush.bf16.msrb.mxu3 %v7029_v30 }
 0x3d1   :  { %2740 = vmatmul.bf16.vlgmr.msra.gmra.mxu0 %v2673_v12  ;;  %2766 = vmatmul.bf16.vlgmr.msra.gmra.mxu2 %v2673_v12 }
 0x3d2   :  { %2788 = vmatpush.bf16.msrb.mxu0 %v7030_v39  ;;  %2814 = vmatpush.bf16.msrb.mxu2 %v7031_v35 }
 0x3d4   :  { %2800 = vmatpush.bf16.msrb.mxu1 %v7032_v38  ;;  %2826 = vmatpush.bf16.msrb.mxu3 %v7033_v16 }
 0x3d6   :  { %2789 = vmatpush.bf16.msrb.mxu0 %v7034_v42  ;;  %2815 = vmatpush.bf16.msrb.mxu2 %v5675_v31 }
 0x3d7   :  { %2753 = vmatmul.bf16.vlgmr.msra.gmra.mxu1 %v2677_v53  ;;  %2779 = vmatmul.bf16.vlgmr.msra.gmra.mxu3 %v2677_v53 }
 0x3d8   :  { %2801 = vmatpush.bf16.msrb.mxu1 %v7035_v14  ;;  %2827 = vmatpush.bf16.msrb.mxu3 %v7036_v6 }
 0x3da   :  { %2790 = vmatpush.bf16.msrb.mxu0 %v5681_v63  ;;  %2816 = vmatpush.bf16.msrb.mxu2 %v5687_v50 }
 0x3dc   :  { %2802 = vmatpush.bf16.msrb.mxu1 %v7037_v59  ;;  %2828 = vmatpush.bf16.msrb.mxu3 %v5677_v34 }
 0x3de   :  { %2791 = vmatpush.bf16.msrb.mxu0 %v5693_v7  ;;  %2817 = vmatpush.bf16.msrb.mxu2 %v5699_v37 }
 0x3e0   :  { %2803 = vmatpush.bf16.msrb.mxu1 %v5683_v24  ;;  %2829 = vmatpush.bf16.msrb.mxu3 %v7232_v11 }
 0x3e1   :  { %2792 = vmatmul.bf16.vlgmr.msrb.gmra.mxu0 %v2673_v12  ;;  %2818 = vmatmul.bf16.vlgmr.msrb.gmra.mxu2 %v2673_v12  ;;  %v7254_v12 = vld [vmem:[#allocation40_spill] sm:$0xff] }
 0x3e2   :  { %2962 = vmatpush.bf16.msra.mxu0 %v5395_v56  ;;  %2988 = vmatpush.bf16.msra.mxu2 %v5399_v60 }
 0x3e4   :  { %2804 = vmatpush.bf16.msrb.mxu1 %v7235_v1  ;;  %2830 = vmatpush.bf16.msrb.mxu3 %v7236_v2 }
 0x3e6   :  { %2963 = vmatpush.bf16.msra.mxu0 %v7233_v49  ;;  %2989 = vmatpush.bf16.msra.mxu2 %v7234_v4 }
 0x3e7   :  { %2805 = vmatmul.bf16.vlgmr.msrb.gmra.mxu1 %v2677_v53  ;;  %2831 = vmatmul.bf16.vlgmr.msrb.gmra.mxu3 %v2677_v53  ;;  %v7257_v53 = vld [vmem:[#allocation42_spill] sm:$0xff] }
 0x3e8   :  { %2975 = vmatpush.bf16.msra.mxu1 %v7237_v18  ;;  %3001 = vmatpush.bf16.msra.mxu3 %v7238_v58  ;;  %v7300_v58 = vld [vmem:[#allocation113_spill] sm:$0xff] }
 0x3ea   :  { %2964 = vmatpush.bf16.msra.mxu0 %v7239_v8  ;;  %2990 = vmatpush.bf16.msra.mxu2 %v7240_v10 }
 0x3ec   :  { %2976 = vmatpush.bf16.msra.mxu1 %v7241_v3  ;;  %3002 = vmatpush.bf16.msra.mxu3 %v7242_v55  ;;  %v7299_v55 = vld [vmem:[#allocation118_spill] sm:$0xff] }
 0x3ee   :  { %2965 = vmatpush.bf16.msra.mxu0 %v7243_v33  ;;  %2991 = vmatpush.bf16.msra.mxu2 %v7244_v9  ;;  %v7298_v33 = vld [vmem:[#allocation112_spill] sm:$0xff] }
 0x3f0   :  { %2977 = vmatpush.bf16.msra.mxu1 %v7245_v40  ;;  %3003 = vmatpush.bf16.msra.mxu3 %v7246_v52 }
 0x3f2   :  { %2966 = vmatpush.bf16.msra.mxu0 %v7247_v19  ;;  %2992 = vmatpush.bf16.msra.mxu2 %v7248_v41  ;;  %v7258_v19 = vld [vmem:[#allocation44_spill] sm:$0xff]  ;;  %v7259_v41 = vld [vmem:[#allocation49_spill] sm:$0xff] }
 0x3f4   :  { %2978 = vmatpush.bf16.msra.mxu1 %v7249_v57  ;;  %3004 = vmatpush.bf16.msra.mxu3 %v7250_v28  ;;  %v7260_v57 = vld [vmem:[#allocation52_spill] sm:$0xff]  ;;  %v7261_v28 = vld [vmem:[#allocation55_spill] sm:$0xff] }
 0x3f6   :  { %2967 = vmatpush.bf16.msra.mxu0 %v7251_v23  ;;  %2993 = vmatpush.bf16.msra.mxu2 %v7252_v32  ;;  %v7262_v23 = vld [vmem:[#allocation57_spill] sm:$0xff]  ;;  %v7263_v32 = vld [vmem:[#allocation46_spill] sm:$0xff] }
 0x3f8   :  { %2979 = vmatpush.bf16.msra.mxu1 %v7253_v5  ;;  %3005 = vmatpush.bf16.msra.mxu3 %v7254_v12  ;;  %v7264_v5 = vld [vmem:[#allocation48_spill] sm:$0xff]  ;;  %v7265_v12 = vld [vmem:[#allocation59_spill] sm:$0xff] }
 0x3fa   :  { %2968 = vmatpush.bf16.msra.mxu0 %v7255_v17  ;;  %2994 = vmatpush.bf16.msra.mxu2 %v7256_v45  ;;  %v7266_v17 = vld [vmem:[#allocation61_spill] sm:$0xff]  ;;  %v7267_v45 = vld [vmem:[#allocation50_spill] sm:$0xff] }
 0x3fc   :  { %2980 = vmatpush.bf16.msra.mxu1 %v7257_v53  ;;  %3006 = vmatpush.bf16.msra.mxu3 %v7258_v19  ;;  %v7268_v53 = vld [vmem:[#allocation53_spill] sm:$0xff]  ;;  %v7269_v19 = vld [vmem:[#allocation56_spill] sm:$0xff] }
 0x3fe   :  { %2969 = vmatpush.bf16.msra.mxu0 %v7259_v41  ;;  %2995 = vmatpush.bf16.msra.mxu2 %v7260_v57  ;;  %v7270_v41 = vld [vmem:[#allocation58_spill] sm:$0xff]  ;;  %v7271_v57 = vld [vmem:[#allocation63_spill] sm:$0xff] }
 0x400   :  { %2981 = vmatpush.bf16.msra.mxu1 %v7263_v32  ;;  %3007 = vmatpush.bf16.msra.mxu3 %v7264_v5  ;;  %v7274_v32 = vld [vmem:[#allocation62_spill] sm:$0xff]  ;;  %v7275_v5 = vld [vmem:[#allocation67_spill] sm:$0xff] }
 0x402   :  { %3014 = vmatpush.bf16.msrb.mxu0 %v7261_v28  ;;  %3040 = vmatpush.bf16.msrb.mxu2 %v7262_v23  ;;  %v7272_v28 = vld [vmem:[#allocation65_spill] sm:$0xff]  ;;  %v7273_v23 = vld [vmem:[#allocation60_spill] sm:$0xff] }
 0x404   :  { %2982 = vmatpush.bf16.msra.mxu1 %v7267_v45  ;;  %3008 = vmatpush.bf16.msra.mxu3 %v7268_v53  ;;  %v7278_v45 = vld [vmem:[#allocation66_spill] sm:$0xff]  ;;  %v7279_v53 = vld [vmem:[#allocation71_spill] sm:$0xff] }
 0x406   :  { %3015 = vmatpush.bf16.msrb.mxu0 %v7265_v12  ;;  %3041 = vmatpush.bf16.msrb.mxu2 %v7266_v17  ;;  %v7276_v12 = vld [vmem:[#allocation69_spill] sm:$0xff]  ;;  %v7277_v17 = vld [vmem:[#allocation64_spill] sm:$0xff] }
 0x408   :  { %3027 = vmatpush.bf16.msrb.mxu1 %v7269_v19  ;;  %3053 = vmatpush.bf16.msrb.mxu3 %v7270_v41  ;;  %v7280_v19 = vld [vmem:[#allocation73_spill] sm:$0xff]  ;;  %v7281_v41 = vld [vmem:[#allocation68_spill] sm:$0xff] }
 0x40a   :  { %3016 = vmatpush.bf16.msrb.mxu0 %v7271_v57  ;;  %3042 = vmatpush.bf16.msrb.mxu2 %v7272_v28  ;;  %v7282_v57 = vld [vmem:[#allocation70_spill] sm:$0xff]  ;;  %v7283_v28 = vld [vmem:[#allocation75_spill] sm:$0xff] }
 0x40c   :  { %3028 = vmatpush.bf16.msrb.mxu1 %v7273_v23  ;;  %3054 = vmatpush.bf16.msrb.mxu3 %v7274_v32  ;;  %v7284_v23 = vld [vmem:[#allocation77_spill] sm:$0xff]  ;;  %v7285_v32 = vld [vmem:[#allocation72_spill] sm:$0xff] }
 0x40e   :  { %3017 = vmatpush.bf16.msrb.mxu0 %v7275_v5  ;;  %3043 = vmatpush.bf16.msrb.mxu2 %v7276_v12  ;;  %v7286_v5 = vld [vmem:[#allocation74_spill] sm:$0xff]  ;;  %v7287_v12 = vld [vmem:[#allocation79_spill] sm:$0xff] }
 0x410   :  { %3029 = vmatpush.bf16.msrb.mxu1 %v7277_v17  ;;  %3055 = vmatpush.bf16.msrb.mxu3 %v7278_v45  ;;  %v7288_v17 = vld [vmem:[#allocation81_spill] sm:$0xff]  ;;  %v7289_v45 = vld [vmem:[#allocation76_spill] sm:$0xff] }
 0x412   :  { %3018 = vmatpush.bf16.msrb.mxu0 %v7279_v53  ;;  %3044 = vmatpush.bf16.msrb.mxu2 %v7280_v19  ;;  %v7290_v53 = vld [vmem:[#allocation78_spill] sm:$0xff]  ;;  %v7291_v19 = vld [vmem:[#allocation83_spill] sm:$0xff] }
 0x414   :  { %3030 = vmatpush.bf16.msrb.mxu1 %v7281_v41  ;;  %3056 = vmatpush.bf16.msrb.mxu3 %v7282_v57  ;;  %v7292_v41 = vld [vmem:[#allocation85_spill] sm:$0xff]  ;;  %v7293_v57 = vld [vmem:[#allocation80_spill] sm:$0xff] }
 0x416   :  { %3019 = vmatpush.bf16.msrb.mxu0 %v7283_v28  ;;  %3045 = vmatpush.bf16.msrb.mxu2 %v7284_v23  ;;  %v7294_v28 = vld [vmem:[#allocation82_spill] sm:$0xff]  ;;  %v7295_v23 = vld [vmem:[#allocation84_spill] sm:$0xff] }
 0x418   :  { %3031 = vmatpush.bf16.msrb.mxu1 %v7285_v32  ;;  %3057 = vmatpush.bf16.msrb.mxu3 %v7286_v5  ;;  %v7296_v32 = vld [vmem:[#allocation86_spill] sm:$0xff] }
 0x41a   :  { %3020 = vmatpush.bf16.msrb.mxu0 %v7287_v12  ;;  %3046 = vmatpush.bf16.msrb.mxu2 %v7288_v17  ;;  %v7297_v12 = vld [vmem:[#allocation117_spill] sm:$0xff] }
 0x41c   :  { %3032 = vmatpush.bf16.msrb.mxu1 %v7289_v45  ;;  %3058 = vmatpush.bf16.msrb.mxu3 %v7290_v53 }
 0x41e   :  { %3021 = vmatpush.bf16.msrb.mxu0 %v7291_v19  ;;  %3047 = vmatpush.bf16.msrb.mxu2 %v7292_v41 }
 0x420   :  { %3033 = vmatpush.bf16.msrb.mxu1 %v7293_v57  ;;  %3059 = vmatpush.bf16.msrb.mxu3 %v7294_v28 }
 0x424   :  { %3034 = vmatpush.bf16.msrb.mxu1 %v7295_v23  ;;  %3060 = vmatpush.bf16.msrb.mxu3 %v7296_v32 }
 0x43e   :  { %v2689_v5 = vpop.f32.mrf.mxu0 }
 0x43f   :  { %v2690_v52 = vadd.f32 %v2689_v5, %v7297_v12 }
 0x444   :  { %v2702_v17 = vpop.f32.mrf.mxu1  ;;  %v2715_v40 = vpop.f32.mrf.mxu2 }
 0x445   :  { %v2703_v45 = vadd.f32 %v2702_v17, %v2690_v52  ;;  %v2716_v41 = vadd.f32 %v2715_v40, %v7299_v55 }
 0x446   :  { %v2691_v9 = vpop.f32.mrf.mxu0 }
 0x447   :  { %v2838_v53 = vrot.slane %v2703_v45, 4  ;;  %v7301_v9 = vld [vmem:[#allocation119_spill] sm:$0xff] }
 0x449   :  { %v2842_v19 = vadd.f32 %v2838_v53, %v7298_v33 }
 0x44a   :  { %v2728_v3 = vpop.f32.mrf.mxu3 }
 0x44b   :  { %v4678_v57 = vmul.f32 -1.442695, %v2842_v19  ;;  %v2729_v10 = vadd.f32 %v2728_v3, %v2716_v41 }
 0x44c   :  { %v2704_v28 = vpop.f32.mrf.mxu1  ;;  %v2717_v8 = vpop.f32.mrf.mxu2 }
 0x44d   :  { %4986 = vpow2.f32 %v4678_v57  ;;  %v2839_v23 = vrot.slane %v2729_v10, 4  ;;  %v7302_v8 = vld [vmem:[#allocation114_spill] sm:$0xff]  ;;  %v7303_v10 = vld [vmem:[#allocation120_spill] sm:$0xff] }
 0x44e   :  { %v2741_v32 = vpop.f32.mrf.mxu0 }
 0x44f   :  { %v2843_v18 = vadd.f32 %v2839_v23, %v7300_v58  ;;  %v2742_v52 = vadd.f32 %v2741_v32, %v7301_v9 }
 0x451   :  { %v4679_v5 = vmul.f32 -1.442695, %v2843_v18 }
 0x452   :  { %v2730_v12 = vpop.f32.mrf.mxu3 }
 0x453   :  { %v4987_v2 = vpop.eup %4986  ;;  %4988 = vpow2.f32 %v4679_v5 }
 0x454   :  { %v2850_v17 = vadd.f32 1.0, %v4987_v2  ;;  %v2754_v45 = vpop.f32.mrf.mxu1  ;;  %v2767_v53 = vpop.f32.mrf.mxu2 }
 0x455   :  { %v2755_v40 = vadd.f32 %v2754_v45, %v2742_v52  ;;  %v2768_v28 = vadd.f32 %v2767_v53, %v7303_v10  ;;  %v7304_v45 = vld [vmem:[#allocation115_spill] sm:$0xff] }
 0x456   :  { %4990 = vrcp.f32 %v2850_v17  ;;  %v2743_v19 = vpop.f32.mrf.mxu0  ;;  %v2863_v53 = vand.u32 2147483648, %v2850_v17  ;;  %vm2857_vm5 = vweird.f32 %v2850_v17 }
 0x457   :  { %v2884_v3 = vrot.slane %v2755_v40, 4 }
 0x459   :  { %v4989_v41 = vpop.eup %4988  ;;  %v2888_v57 = vadd.f32 %v2884_v3, %v7302_v8 }
 0x45a   :  { %v2851_v55 = vadd.f32 1.0, %v4989_v41  ;;  %v2780_v23 = vpop.f32.mrf.mxu3 }
 0x45b   :  { %v4680_v18 = vmul.f32 -1.442695, %v2888_v57  ;;  %v2781_v12 = vadd.f32 %v2780_v23, %v2768_v28  ;;  %v7305_v57 = vld [vmem:[#allocation121_spill] sm:$0xff] }
 0x45c   :  { %v4991_v58 = vpop.eup %4990  ;;  %4992 = vrcp.f32 %v2851_v55  ;;  %v2756_v5 = vpop.f32.mrf.mxu1  ;;  %vm2872_vm9 = vweird.f32 %v2851_v55 }
 0x45d   :  { %v2769_v32 = vpop.f32.mrf.mxu2  ;;  %4994 = vpow2.f32 %v4680_v18  ;;  %v2885_v2 = vrot.slane %v2781_v12, 4  ;;  %v2853_v9 = vmul.f32 %v4991_v58, %v2850_v17  ;;  %vm2858_vm4 = vweird.f32 %v4991_v58 }
 0x45e   :  { %v2793_v52 = vpop.f32.mrf.mxu0  ;;  %v2861_v12 = vand.u32 2147483647, %v2850_v17  ;;  %vm2859_vm6 = vmor %vm2857_vm5, %vm2858_vm4  ;;  %vm3813_vm4 = vcmask 1043456  }
 0x45f   :  { %v2889_v19 = vadd.f32 %v2885_v2, %v7304_v45  ;;  %v2854_v40 = vsub.f32 1.0, %v2853_v9  ;;  %v2794_v28 = vadd.f32 %v2793_v52, %v7305_v57  ;;  %v2878_v57 = vand.u32 2147483648, %v2851_v55 }
 0x460   :  { %vm2862_vm7 = vcmp.eq.f32.partialorder %v2861_v12, 8.507059e+37 }
 0x461   :  { %v4681_v33 = vmul.f32 -1.442695, %v2889_v19  ;;  %v2855_v1 = vmul.f32 %v4991_v58, %v2854_v40  ;;  %v2879_v12 = vor.u32 1.1754944e-38, %v2878_v57 }
 0x462   :  { %v4993_v3 = vpop.eup %4992  ;;  %v2782_v8 = vpop.f32.mrf.mxu3 }
 0x463   :  { %v4995_v41 = vpop.eup %4994  ;;  %4996 = vpow2.f32 %v4681_v33  ;;  %v2856_v23 = vadd.f32 %v4991_v58, %v2855_v1  ;;  %v2868_v5 = vmul.f32 %v4993_v3, %v2851_v55  ;;  %v2864_v8 = vor.u32 1.1754944e-38, %v2863_v53 }
 0x464   :  { %v2896_v32 = vadd.f32 1.0, %v4995_v41  ;;  %v2806_v18 = vpop.f32.mrf.mxu1  ;;  %vm2873_vm8 = vweird.f32 %v4993_v3 }
 0x465   :  { %v2819_v10 = vpop.f32.mrf.mxu2  ;;  %v2807_v4 = vadd.f32 %v2806_v18, %v2794_v28  ;;  %v2869_v9 = vsub.f32 1.0, %v2868_v5  ;;  %v2860_v2 = vsel %vm2859_vm6, %v4991_v58, %v2856_v23  ;;  %v2876_v28 = vand.u32 2147483647, %v2851_v55  ;;  %vm2874_vm10 = vmor %vm2872_vm9, %vm2873_vm8 }
 0x466   :  { %4998 = vrcp.f32 %v2896_v32  ;;  %v2795_v19 = vpop.f32.mrf.mxu0  ;;  %v2865_v52 = vsel %vm2862_vm7, %v2864_v8, %v2860_v2  ;;  %v2820_v1 = vadd.f32 %v2819_v10, %v5834_v13  ;;  %v2907_v55 = vand.u32 2147483647, %v2896_v32 }
 0x467   :  { %v2930_v40 = vrot.slane %v2807_v4, 4  ;;  %v2870_v45 = vmul.f32 %v4993_v3, %v2869_v9  ;;  %vm2877_vm11 = vcmp.eq.f32.partialorder %v2876_v28, 8.507059e+37  ;;  %v2909_v19 = vand.u32 2147483648, %v2896_v32 }
 0x468   :  { %vm2903_vm13 = vweird.f32 %v2896_v32  ;;  %vm2908_vm15 = vcmp.eq.f32.partialorder %v2907_v55, 8.507059e+37 }
 0x469   :  { %v4997_v33 = vpop.eup %4996  ;;  %v2871_v41 = vadd.f32 %v4993_v3, %v2870_v45  ;;  %v2934_v17 = vmul.f32 %v2930_v40, %v2865_v52 }
 0x46a   :  { %v2897_v49 = vadd.f32 1.0, %v4997_v33  ;;  %v2832_v11 = vpop.f32.mrf.mxu3 }
 0x46b   :  { %v2833_v5 = vadd.f32 %v2832_v11, %v2820_v1  ;;  %v2875_v53 = vsel %vm2874_vm10, %v4993_v3, %v2871_v41  ;;  %v2936_v9 = vadd.f32 %v2934_v17, %v7086_v29  ;;  %v2910_v1 = vor.u32 1.1754944e-38, %v2909_v19 }
 0x46c   :  { %v4999_v58 = vpop.eup %4998  ;;  %5000 = vrcp.f32 %v2897_v49  ;;  %v2808_v4 = vpop.f32.mrf.mxu1  ;;  %v2880_v2 = vsel %vm2877_vm11, %v2879_v12, %v2875_v53  ;;  %v2924_v28 = vand.u32 2147483648, %v2897_v49  ;;  %v2946_v53 = vrot.slane %v6229_v44, 7 }
 0x46d   :  { %v2821_v23 = vpop.f32.mrf.mxu2  ;;  %v2899_v18 = vmul.f32 %v4999_v58, %v2896_v32  ;;  %v2931_v10 = vrot.slane %v2833_v5, 4  ;;  %vm2904_vm12 = vweird.f32 %v4999_v58  ;;  %5002 = vtanh.f32 %v2936_v9 }
 0x46e   :  { %vm2905_vm14 = vmor %vm2903_vm13, %vm2904_vm12  ;;  %vm2918_vm1 = vweird.f32 %v2897_v49  ;;  %v2947_v44 = vrot.slane %v6238_v61, 7 }
 0x46f   :  { %v2900_v45 = vsub.f32 1.0, %v2899_v18  ;;  %v2935_v8 = vmul.f32 %v2931_v10, %v2880_v2  ;;  %v2922_v18 = vand.u32 2147483647, %v2897_v49 }
 0x471   :  { %v2901_v40 = vmul.f32 %v4999_v58, %v2900_v45  ;;  %v2937_v57 = vadd.f32 %v2935_v8, %v5779_v62  ;;  %v2925_v45 = vor.u32 1.1754944e-38, %v2924_v28  ;;  %vm2923_vm3 = vcmp.eq.f32.partialorder %v2922_v18, 8.507059e+37  ;;  %v7310_v28 = vld [vmem:[#allocation111_spill] sm:$0xff]  ;;  %v7315_v18 = vld [vmem:[#allocation26_spill] sm:$0xff] }
 0x472   :  { %v5001_v11 = vpop.eup %5000  ;;  %v2834_v33 = vpop.f32.mrf.mxu3 }
 0x473   :  { %v2914_v3 = vmul.f32 %v5001_v11, %v2897_v49  ;;  %v2902_v52 = vadd.f32 %v4999_v58, %v2901_v40  ;;  %vm2919_vm0 = vweird.f32 %v5001_v11  ;;  %v5003_v12 = vpop.eup %5002  ;;  %5004 = vtanh.f32 %v2937_v57  ;;  %v7307_v57 = vld [vmem:[#allocation25_spill] sm:$0xff] }
 0x474   :  { %vm2920_vm2 = vmor %vm2918_vm1, %vm2919_vm0 }
 0x475   :  { %v2915_v41 = vsub.f32 1.0, %v2914_v3  ;;  %v2906_v17 = vsel %vm2905_vm14, %v4999_v58, %v2902_v52 }
 0x476   :  { %v2911_v5 = vsel %vm2908_vm15, %v2910_v1, %v2906_v17  ;;  %v7309_v17 = vld [vmem:[#allocation110_spill] sm:$0xff] }
 0x477   :  { %v2916_v4 = vmul.f32 %v5001_v11, %v2915_v41  ;;  %v2940_v23 = vsub.f32 1.0, %v2911_v5  ;;  %v2950_v9 = vmul.f32 %v2946_v53, %v2911_v5  ;;  %v7308_v41 = vld [vmem:[#allocation27_spill] sm:$0xff]  ;;  %v7312_v53 = vld [vmem:[#allocation24_spill] sm:$0xff] }
 0x478   :  { %v7311_v5 = vld [vmem:[#allocation23_spill] sm:$0xff] }
 0x479   :  { %v2942_v32 = vmul.f32 %v5003_v12, %v2940_v23  ;;  %v2917_v10 = vadd.f32 %v5001_v11, %v2916_v4  ;;  %v5005_v55 = vpop.eup %5004  ;;  %v7313_v4 = vld [vmem:[#allocation29_spill] sm:$0xff]  ;;  %v7314_v23 = vld [vmem:[#allocation31_spill] sm:$0xff]  ;;  %v7316_v12 = vld [vmem:[#allocation28_spill] sm:$0xff] }
 0x47b   :  { %v6355_v2 = vadd.f32 %v2950_v9, %v2942_v32  ;;  %v2921_v58 = vsel %vm2920_vm2, %v5001_v11, %v2917_v10  ;;  %v7317_v32 = vld [vmem:[#allocation33_spill] sm:$0xff]  ;;  %v7318_v9 = vld [vmem:[#allocation35_spill] sm:$0xff]  ;;  %v7319_v10 = vld [vmem:[#allocation30_spill] sm:$0xff] }
 0x47c   :  { %v2926_v19 = vsel %vm2923_vm3, %v2925_v45, %v2921_v58  ;;  %v7320_v45 = vld [vmem:[#allocation32_spill] sm:$0xff]  ;;  %v7321_v58 = vld [vmem:[#allocation37_spill] sm:$0xff] }
 0x47d   :  { %v2941_v8 = vsub.f32 1.0, %v2926_v19  ;;  %v2954_v40 = vpack.c.bf16 %v6355_v2, %v6355_v2  ;;  %v6363_v49 = vsel %vm3813_vm4, %v6236_v20, %v6355_v2  ;;  %v2951_v3 = vmul.f32 %v2947_v44, %v2926_v19  ;;  %v7322_v19 = vld [vmem:[#allocation39_spill] sm:$0xff]  ;;  %v7324_v44 = vld [vmem:[#allocation36_spill] sm:$0xff] }
 0x47f   :  { %v2943_v33 = vmul.f32 %v5005_v55, %v2941_v8  ;;  %v2958_v52 = vrot.slane %v2954_v40, 2  ;;  %v7323_v8 = vld [vmem:[#allocation34_spill] sm:$0xff]  ;;  %v7325_v40 = vld [vmem:[#allocation41_spill] sm:$0xff]  ;;  %v7326_v55 = vld [vmem:[#allocation43_spill] sm:$0xff] }
 0x481   :  { %v6365_v1 = vadd.f32 %v2951_v3, %v2943_v33  ;;  %2970 = vmatmul.bf16.vlgmr.msra.gmra.mxu0 %v2958_v52  ;;  %2996 = vmatmul.bf16.vlgmr.msra.gmra.mxu2 %v2958_v52  ;;  %v7327_v33 = vld [vmem:[#allocation38_spill] sm:$0xff]  ;;  %v7328_v3 = vld [vmem:[#allocation40_spill] sm:$0xff] }
 0x482   :  { %3066 = vmatpush.bf16.msra.mxu0 %v7016_v46  ;;  %3092 = vmatpush.bf16.msra.mxu2 %v7017_v27 }
 0x483   :  { %v2955_v61 = vpack.c.bf16 %v6365_v1, %v6365_v1  ;;  %v6374_v11 = vsel %vm3813_vm4, %v6244_v21, %v6365_v1  ;;  %v7306_v21 = vld [vmem:[#allocation109_spill] sm:$0xff] }
 0x485   :  { %v2959_v20 = vrot.slane %v2955_v61, 2  ;;  %v7330_v61 = vld [vmem:[#allocation47_spill] sm:$0xff] }
 0x486   :  { %3067 = vmatpush.bf16.msra.mxu0 %v7018_v48  ;;  %3093 = vmatpush.bf16.msra.mxu2 %v7019_v0 }
 0x487   :  { %2983 = vmatmul.bf16.vlgmr.msra.gmra.mxu1 %v2959_v20  ;;  %3009 = vmatmul.bf16.vlgmr.msra.gmra.mxu3 %v2959_v20 }
 0x488   :  { %3079 = vmatpush.bf16.msra.mxu1 %v7020_v51  ;;  %3105 = vmatpush.bf16.msra.mxu3 %v7021_v43 }
 0x48a   :  { %3068 = vmatpush.bf16.msra.mxu0 %v7022_v47  ;;  %3094 = vmatpush.bf16.msra.mxu2 %v7023_v26 }
 0x48c   :  { %3080 = vmatpush.bf16.msra.mxu1 %v7024_v25  ;;  %3106 = vmatpush.bf16.msra.mxu3 %v7025_v22 }
 0x48e   :  { %3069 = vmatpush.bf16.msra.mxu0 %v7026_v15  ;;  %3095 = vmatpush.bf16.msra.mxu2 %v7027_v54 }
 0x490   :  { %3081 = vmatpush.bf16.msra.mxu1 %v7028_v36  ;;  %3107 = vmatpush.bf16.msra.mxu3 %v7029_v30 }
 0x491   :  { %3022 = vmatmul.bf16.vlgmr.msrb.gmra.mxu0 %v2958_v52  ;;  %3048 = vmatmul.bf16.vlgmr.msrb.gmra.mxu2 %v2958_v52 }
 0x492   :  { %3070 = vmatpush.bf16.msra.mxu0 %v7030_v39  ;;  %3096 = vmatpush.bf16.msra.mxu2 %v7031_v35 }
 0x494   :  { %3082 = vmatpush.bf16.msra.mxu1 %v7032_v38  ;;  %3108 = vmatpush.bf16.msra.mxu3 %v7033_v16 }
 0x496   :  { %3071 = vmatpush.bf16.msra.mxu0 %v7034_v42  ;;  %3097 = vmatpush.bf16.msra.mxu2 %v5675_v31 }
 0x497   :  { %3035 = vmatmul.bf16.vlgmr.msrb.gmra.mxu1 %v2959_v20  ;;  %3061 = vmatmul.bf16.vlgmr.msrb.gmra.mxu3 %v2959_v20 }
 0x498   :  { %3083 = vmatpush.bf16.msra.mxu1 %v7035_v14  ;;  %3109 = vmatpush.bf16.msra.mxu3 %v7036_v6 }
 0x49a   :  { %3072 = vmatpush.bf16.msra.mxu0 %v5681_v63  ;;  %3098 = vmatpush.bf16.msra.mxu2 %v5687_v50 }
 0x49c   :  { %3084 = vmatpush.bf16.msra.mxu1 %v7037_v59  ;;  %3110 = vmatpush.bf16.msra.mxu3 %v5677_v34 }
 0x49e   :  { %3073 = vmatpush.bf16.msra.mxu0 %v5693_v7  ;;  %3099 = vmatpush.bf16.msra.mxu2 %v5699_v37 }
 0x4a0   :  { %3085 = vmatpush.bf16.msra.mxu1 %v5683_v24  ;;  %3111 = vmatpush.bf16.msra.mxu3 %v7306_v21 }
 0x4a1   :  { %3074 = vmatmul.bf16.vlgmr.msra.gmra.mxu0 %v2958_v52  ;;  %3100 = vmatmul.bf16.vlgmr.msra.gmra.mxu2 %v2958_v52  ;;  %v7329_v52 = vld [vmem:[#allocation45_spill] sm:$0xff] }
 0x4a2   :  { %3248 = vmatpush.bf16.msrb.mxu0 %v5395_v56  ;;  %3274 = vmatpush.bf16.msrb.mxu2 %v5399_v60 }
 0x4a4   :  { %3086 = vmatpush.bf16.msra.mxu1 %v7309_v17  ;;  %3112 = vmatpush.bf16.msra.mxu3 %v7310_v28 }
 0x4a6   :  { %3249 = vmatpush.bf16.msrb.mxu0 %v7307_v57  ;;  %3275 = vmatpush.bf16.msrb.mxu2 %v7308_v41 }
 0x4a7   :  { %3087 = vmatmul.bf16.vlgmr.msra.gmra.mxu1 %v2959_v20  ;;  %3113 = vmatmul.bf16.vlgmr.msra.gmra.mxu3 %v2959_v20  ;;  %v7331_v20 = vld [vmem:[#allocation42_spill] sm:$0xff] }
 0x4a8   :  { %3261 = vmatpush.bf16.msrb.mxu1 %v7311_v5  ;;  %3287 = vmatpush.bf16.msrb.mxu3 %v7312_v53  ;;  %v7374_v53 = vld [vmem:[#allocation113_spill] sm:$0xff] }
 0x4aa   :  { %3250 = vmatpush.bf16.msrb.mxu0 %v7313_v4  ;;  %3276 = vmatpush.bf16.msrb.mxu2 %v7314_v23 }
 0x4ac   :  { %3262 = vmatpush.bf16.msrb.mxu1 %v7315_v18  ;;  %3288 = vmatpush.bf16.msrb.mxu3 %v7316_v12  ;;  %v7373_v12 = vld [vmem:[#allocation118_spill] sm:$0xff] }
 0x4ae   :  { %3251 = vmatpush.bf16.msrb.mxu0 %v7317_v32  ;;  %3277 = vmatpush.bf16.msrb.mxu2 %v7318_v9  ;;  %v7372_v32 = vld [vmem:[#allocation112_spill] sm:$0xff] }
 0x4b0   :  { %3263 = vmatpush.bf16.msrb.mxu1 %v7319_v10  ;;  %3289 = vmatpush.bf16.msrb.mxu3 %v7320_v45 }
 0x4b2   :  { %3252 = vmatpush.bf16.msrb.mxu0 %v7321_v58  ;;  %3278 = vmatpush.bf16.msrb.mxu2 %v7322_v19  ;;  %v7332_v58 = vld [vmem:[#allocation44_spill] sm:$0xff]  ;;  %v7333_v19 = vld [vmem:[#allocation49_spill] sm:$0xff] }
 0x4b4   :  { %3264 = vmatpush.bf16.msrb.mxu1 %v7323_v8  ;;  %3290 = vmatpush.bf16.msrb.mxu3 %v7324_v44  ;;  %v7334_v8 = vld [vmem:[#allocation52_spill] sm:$0xff]  ;;  %v7335_v44 = vld [vmem:[#allocation55_spill] sm:$0xff] }
 0x4b6   :  { %3253 = vmatpush.bf16.msrb.mxu0 %v7325_v40  ;;  %3279 = vmatpush.bf16.msrb.mxu2 %v7326_v55  ;;  %v7336_v40 = vld [vmem:[#allocation57_spill] sm:$0xff]  ;;  %v7337_v55 = vld [vmem:[#allocation46_spill] sm:$0xff] }
 0x4b8   :  { %3265 = vmatpush.bf16.msrb.mxu1 %v7327_v33  ;;  %3291 = vmatpush.bf16.msrb.mxu3 %v7328_v3  ;;  %v7338_v33 = vld [vmem:[#allocation48_spill] sm:$0xff]  ;;  %v7339_v3 = vld [vmem:[#allocation59_spill] sm:$0xff] }
 0x4ba   :  { %3254 = vmatpush.bf16.msrb.mxu0 %v7329_v52  ;;  %3280 = vmatpush.bf16.msrb.mxu2 %v7330_v61  ;;  %v7340_v52 = vld [vmem:[#allocation61_spill] sm:$0xff]  ;;  %v7341_v61 = vld [vmem:[#allocation50_spill] sm:$0xff] }
 0x4bc   :  { %3266 = vmatpush.bf16.msrb.mxu1 %v7331_v20  ;;  %3292 = vmatpush.bf16.msrb.mxu3 %v7332_v58  ;;  %v7342_v20 = vld [vmem:[#allocation53_spill] sm:$0xff]  ;;  %v7343_v58 = vld [vmem:[#allocation56_spill] sm:$0xff] }
 0x4be   :  { %3255 = vmatpush.bf16.msrb.mxu0 %v7333_v19  ;;  %3281 = vmatpush.bf16.msrb.mxu2 %v7334_v8  ;;  %v7344_v19 = vld [vmem:[#allocation58_spill] sm:$0xff]  ;;  %v7345_v8 = vld [vmem:[#allocation63_spill] sm:$0xff] }
 0x4c0   :  { %3267 = vmatpush.bf16.msrb.mxu1 %v7337_v55  ;;  %3293 = vmatpush.bf16.msrb.mxu3 %v7338_v33  ;;  %v7348_v55 = vld [vmem:[#allocation62_spill] sm:$0xff]  ;;  %v7349_v33 = vld [vmem:[#allocation67_spill] sm:$0xff] }
 0x4c2   :  { %3300 = vmatpush.bf16.msra.mxu0 %v7335_v44  ;;  %3326 = vmatpush.bf16.msra.mxu2 %v7336_v40  ;;  %v7346_v44 = vld [vmem:[#allocation65_spill] sm:$0xff]  ;;  %v7347_v40 = vld [vmem:[#allocation60_spill] sm:$0xff] }
 0x4c4   :  { %3268 = vmatpush.bf16.msrb.mxu1 %v7341_v61  ;;  %3294 = vmatpush.bf16.msrb.mxu3 %v7342_v20  ;;  %v7352_v61 = vld [vmem:[#allocation66_spill] sm:$0xff]  ;;  %v7353_v20 = vld [vmem:[#allocation71_spill] sm:$0xff] }
 0x4c6   :  { %3301 = vmatpush.bf16.msra.mxu0 %v7339_v3  ;;  %3327 = vmatpush.bf16.msra.mxu2 %v7340_v52  ;;  %v7350_v3 = vld [vmem:[#allocation69_spill] sm:$0xff]  ;;  %v7351_v52 = vld [vmem:[#allocation64_spill] sm:$0xff] }
 0x4c8   :  { %3313 = vmatpush.bf16.msra.mxu1 %v7343_v58  ;;  %3339 = vmatpush.bf16.msra.mxu3 %v7344_v19  ;;  %v7354_v58 = vld [vmem:[#allocation73_spill] sm:$0xff]  ;;  %v7355_v19 = vld [vmem:[#allocation68_spill] sm:$0xff] }
 0x4ca   :  { %3302 = vmatpush.bf16.msra.mxu0 %v7345_v8  ;;  %3328 = vmatpush.bf16.msra.mxu2 %v7346_v44  ;;  %v7356_v8 = vld [vmem:[#allocation70_spill] sm:$0xff]  ;;  %v7357_v44 = vld [vmem:[#allocation75_spill] sm:$0xff] }
 0x4cc   :  { %3314 = vmatpush.bf16.msra.mxu1 %v7347_v40  ;;  %3340 = vmatpush.bf16.msra.mxu3 %v7348_v55  ;;  %v7358_v40 = vld [vmem:[#allocation77_spill] sm:$0xff]  ;;  %v7359_v55 = vld [vmem:[#allocation72_spill] sm:$0xff] }
 0x4ce   :  { %3303 = vmatpush.bf16.msra.mxu0 %v7349_v33  ;;  %3329 = vmatpush.bf16.msra.mxu2 %v7350_v3  ;;  %v7360_v33 = vld [vmem:[#allocation74_spill] sm:$0xff]  ;;  %v7361_v3 = vld [vmem:[#allocation79_spill] sm:$0xff] }
 0x4d0   :  { %3315 = vmatpush.bf16.msra.mxu1 %v7351_v52  ;;  %3341 = vmatpush.bf16.msra.mxu3 %v7352_v61  ;;  %v7362_v52 = vld [vmem:[#allocation81_spill] sm:$0xff]  ;;  %v7363_v61 = vld [vmem:[#allocation76_spill] sm:$0xff] }
 0x4d2   :  { %3304 = vmatpush.bf16.msra.mxu0 %v7353_v20  ;;  %3330 = vmatpush.bf16.msra.mxu2 %v7354_v58  ;;  %v7364_v20 = vld [vmem:[#allocation78_spill] sm:$0xff]  ;;  %v7365_v58 = vld [vmem:[#allocation83_spill] sm:$0xff] }
 0x4d4   :  { %3316 = vmatpush.bf16.msra.mxu1 %v7355_v19  ;;  %3342 = vmatpush.bf16.msra.mxu3 %v7356_v8  ;;  %v7366_v19 = vld [vmem:[#allocation85_spill] sm:$0xff]  ;;  %v7367_v8 = vld [vmem:[#allocation80_spill] sm:$0xff] }
 0x4d6   :  { %3305 = vmatpush.bf16.msra.mxu0 %v7357_v44  ;;  %3331 = vmatpush.bf16.msra.mxu2 %v7358_v40  ;;  %v7368_v44 = vld [vmem:[#allocation82_spill] sm:$0xff]  ;;  %v7369_v40 = vld [vmem:[#allocation84_spill] sm:$0xff] }
 0x4d8   :  { %3317 = vmatpush.bf16.msra.mxu1 %v7359_v55  ;;  %3343 = vmatpush.bf16.msra.mxu3 %v7360_v33  ;;  %v7370_v55 = vld [vmem:[#allocation86_spill] sm:$0xff] }
 0x4da   :  { %3306 = vmatpush.bf16.msra.mxu0 %v7361_v3  ;;  %3332 = vmatpush.bf16.msra.mxu2 %v7362_v52  ;;  %v7371_v3 = vld [vmem:[#allocation117_spill] sm:$0xff] }
 0x4dc   :  { %3318 = vmatpush.bf16.msra.mxu1 %v7363_v61  ;;  %3344 = vmatpush.bf16.msra.mxu3 %v7364_v20 }
 0x4de   :  { %3307 = vmatpush.bf16.msra.mxu0 %v7365_v58  ;;  %3333 = vmatpush.bf16.msra.mxu2 %v7366_v19 }
 0x4e0   :  { %3319 = vmatpush.bf16.msra.mxu1 %v7367_v8  ;;  %3345 = vmatpush.bf16.msra.mxu3 %v7368_v44 }
 0x4e4   :  { %3320 = vmatpush.bf16.msra.mxu1 %v7369_v40  ;;  %3346 = vmatpush.bf16.msra.mxu3 %v7370_v55 }
 0x4fe   :  { %v2971_v33 = vpop.f32.mrf.mxu0 }
 0x4ff   :  { %v2972_v45 = vadd.f32 %v2971_v33, %v7371_v3 }
 0x504   :  { %v2984_v52 = vpop.f32.mrf.mxu1  ;;  %v2997_v10 = vpop.f32.mrf.mxu2 }
 0x505   :  { %v2985_v61 = vadd.f32 %v2984_v52, %v2972_v45  ;;  %v2998_v19 = vadd.f32 %v2997_v10, %v7373_v12 }
 0x506   :  { %v2973_v9 = vpop.f32.mrf.mxu0 }
 0x507   :  { %v3120_v20 = vrot.slane %v2985_v61, 3  ;;  %v7375_v9 = vld [vmem:[#allocation119_spill] sm:$0xff] }
 0x509   :  { %v3124_v58 = vadd.f32 %v3120_v20, %v7372_v32 }
 0x50a   :  { %v3010_v18 = vpop.f32.mrf.mxu3 }
 0x50b   :  { %v4682_v8 = vmul.f32 -1.442695, %v3124_v58  ;;  %v3011_v23 = vadd.f32 %v3010_v18, %v2998_v19 }
 0x50c   :  { %v2986_v44 = vpop.f32.mrf.mxu1  ;;  %v2999_v4 = vpop.f32.mrf.mxu2 }
 0x50d   :  { %5006 = vpow2.f32 %v4682_v8  ;;  %v3121_v40 = vrot.slane %v3011_v23, 3  ;;  %v7376_v4 = vld [vmem:[#allocation114_spill] sm:$0xff]  ;;  %v7377_v23 = vld [vmem:[#allocation120_spill] sm:$0xff] }
 0x50e   :  { %v3023_v55 = vpop.f32.mrf.mxu0 }
 0x50f   :  { %v3125_v5 = vadd.f32 %v3121_v40, %v7374_v53  ;;  %v3024_v45 = vadd.f32 %v3023_v55, %v7375_v9 }
 0x511   :  { %v4683_v33 = vmul.f32 -1.442695, %v3125_v5 }
 0x512   :  { %v3012_v3 = vpop.f32.mrf.mxu3 }
 0x513   :  { %v5007_v28 = vpop.eup %5006  ;;  %5008 = vpow2.f32 %v4683_v33 }
 0x514   :  { %v3132_v52 = vadd.f32 1.0, %v5007_v28  ;;  %v3036_v61 = vpop.f32.mrf.mxu1  ;;  %v3049_v20 = vpop.f32.mrf.mxu2 }
 0x515   :  { %v3037_v10 = vadd.f32 %v3036_v61, %v3024_v45  ;;  %v3050_v44 = vadd.f32 %v3049_v20, %v7377_v23  ;;  %v7378_v61 = vld [vmem:[#allocation115_spill] sm:$0xff] }
 0x516   :  { %5010 = vrcp.f32 %v3132_v52  ;;  %v3025_v58 = vpop.f32.mrf.mxu0  ;;  %v3145_v20 = vand.u32 2147483648, %v3132_v52  ;;  %vm3139_vm6 = vweird.f32 %v3132_v52 }
 0x517   :  { %v3166_v18 = vrot.slane %v3037_v10, 3 }
 0x519   :  { %v5009_v19 = vpop.eup %5008  ;;  %v3170_v8 = vadd.f32 %v3166_v18, %v7376_v4 }
 0x51a   :  { %v3133_v12 = vadd.f32 1.0, %v5009_v19  ;;  %v3062_v40 = vpop.f32.mrf.mxu3 }
 0x51b   :  { %v4684_v5 = vmul.f32 -1.442695, %v3170_v8  ;;  %v3063_v3 = vadd.f32 %v3062_v40, %v3050_v44  ;;  %v7379_v8 = vld [vmem:[#allocation121_spill] sm:$0xff] }
 0x51c   :  { %v5011_v53 = vpop.eup %5010  ;;  %5012 = vrcp.f32 %v3133_v12  ;;  %v3038_v33 = vpop.f32.mrf.mxu1  ;;  %vm3154_vm10 = vweird.f32 %v3133_v12 }
 0x51d   :  { %v3051_v55 = vpop.f32.mrf.mxu2  ;;  %5014 = vpow2.f32 %v4684_v5  ;;  %v3167_v28 = vrot.slane %v3063_v3, 3  ;;  %v3135_v9 = vmul.f32 %v5011_v53, %v3132_v52  ;;  %vm3140_vm5 = vweird.f32 %v5011_v53 }
 0x51e   :  { %v3075_v45 = vpop.f32.mrf.mxu0  ;;  %v3143_v3 = vand.u32 2147483647, %v3132_v52  ;;  %vm3141_vm7 = vmor %vm3139_vm6, %vm3140_vm5  ;;  %vm3816_vm5 = vcmask 1044480  }
 0x51f   :  { %v3171_v58 = vadd.f32 %v3167_v28, %v7378_v61  ;;  %v3136_v10 = vsub.f32 1.0, %v3135_v9  ;;  %v3076_v44 = vadd.f32 %v3075_v45, %v7379_v8  ;;  %v3160_v8 = vand.u32 2147483648, %v3133_v12 }
 0x520   :  { %vm3144_vm8 = vcmp.eq.f32.partialorder %v3143_v3, 8.507059e+37 }
 0x521   :  { %v4685_v32 = vmul.f32 -1.442695, %v3171_v58  ;;  %v3137_v17 = vmul.f32 %v5011_v53, %v3136_v10  ;;  %v3161_v3 = vor.u32 1.1754944e-38, %v3160_v8 }
 0x522   :  { %v5013_v18 = vpop.eup %5012  ;;  %v3064_v4 = vpop.f32.mrf.mxu3 }
 0x523   :  { %v5015_v19 = vpop.eup %5014  ;;  %5016 = vpow2.f32 %v4685_v32  ;;  %v3138_v40 = vadd.f32 %v5011_v53, %v3137_v17  ;;  %v3150_v33 = vmul.f32 %v5013_v18, %v3133_v12  ;;  %v3146_v4 = vor.u32 1.1754944e-38, %v3145_v20 }
 0x524   :  { %v3178_v55 = vadd.f32 1.0, %v5015_v19  ;;  %v3088_v5 = vpop.f32.mrf.mxu1  ;;  %vm3155_vm9 = vweird.f32 %v5013_v18 }
 0x525   :  { %v3101_v23 = vpop.f32.mrf.mxu2  ;;  %v3089_v41 = vadd.f32 %v3088_v5, %v3076_v44  ;;  %v3151_v9 = vsub.f32 1.0, %v3150_v33  ;;  %v3142_v28 = vsel %vm3141_vm7, %v5011_v53, %v3138_v40  ;;  %v3158_v44 = vand.u32 2147483647, %v3133_v12  ;;  %vm3156_vm11 = vmor %vm3154_vm10, %vm3155_vm9 }
 0x526   :  { %5018 = vrcp.f32 %v3178_v55  ;;  %v3077_v58 = vpop.f32.mrf.mxu0  ;;  %v3147_v45 = vsel %vm3144_vm8, %v3146_v4, %v3142_v28  ;;  %v3102_v17 = vadd.f32 %v3101_v23, %v5834_v13  ;;  %v3189_v12 = vand.u32 2147483647, %v3178_v55 }
 0x527   :  { %v3212_v10 = vrot.slane %v3089_v41, 3  ;;  %v3152_v61 = vmul.f32 %v5013_v18, %v3151_v9  ;;  %vm3159_vm12 = vcmp.eq.f32.partialorder %v3158_v44, 8.507059e+37  ;;  %v3191_v58 = vand.u32 2147483648, %v3178_v55 }
 0x528   :  { %vm3185_vm14 = vweird.f32 %v3178_v55  ;;  %vm3190_vm0 = vcmp.eq.f32.partialorder %v3189_v12, 8.507059e+37 }
 0x529   :  { %v5017_v32 = vpop.eup %5016  ;;  %v3153_v19 = vadd.f32 %v5013_v18, %v3152_v61  ;;  %v3216_v52 = vmul.f32 %v3212_v10, %v3147_v45 }
 0x52a   :  { %v3179_v57 = vadd.f32 1.0, %v5017_v32  ;;  %v3114_v21 = vpop.f32.mrf.mxu3 }
 0x52b   :  { %v3115_v33 = vadd.f32 %v3114_v21, %v3102_v17  ;;  %v3157_v20 = vsel %vm3156_vm11, %v5013_v18, %v3153_v19  ;;  %v3218_v9 = vadd.f32 %v3216_v52, %v7086_v29  ;;  %v3192_v17 = vor.u32 1.1754944e-38, %v3191_v58 }
 0x52c   :  { %v5019_v53 = vpop.eup %5018  ;;  %5020 = vrcp.f32 %v3179_v57  ;;  %v3090_v41 = vpop.f32.mrf.mxu1  ;;  %v3162_v28 = vsel %vm3159_vm12, %v3161_v3, %v3157_v20  ;;  %v3206_v44 = vand.u32 2147483648, %v3179_v57  ;;  %v3228_v20 = vrot.slane %v6355_v2, 7 }
 0x52d   :  { %v3103_v40 = vpop.f32.mrf.mxu2  ;;  %v3181_v5 = vmul.f32 %v5019_v53, %v3178_v55  ;;  %v3213_v23 = vrot.slane %v3115_v33, 3  ;;  %vm3186_vm13 = vweird.f32 %v5019_v53  ;;  %5022 = vtanh.f32 %v3218_v9 }
 0x52e   :  { %vm3187_vm15 = vmor %vm3185_vm14, %vm3186_vm13  ;;  %vm3200_vm2 = vweird.f32 %v3179_v57  ;;  %v3229_v2 = vrot.slane %v6365_v1, 7 }
 0x52f   :  { %v3182_v61 = vsub.f32 1.0, %v3181_v5  ;;  %v3217_v4 = vmul.f32 %v3213_v23, %v3162_v28  ;;  %v3204_v5 = vand.u32 2147483647, %v3179_v57 }
 0x531   :  { %v3183_v10 = vmul.f32 %v5019_v53, %v3182_v61  ;;  %v3219_v8 = vadd.f32 %v3217_v4, %v5779_v62  ;;  %v3207_v61 = vor.u32 1.1754944e-38, %v3206_v44  ;;  %vm3205_vm4 = vcmp.eq.f32.partialorder %v3204_v5, 8.507059e+37  ;;  %v7382_v44 = vld [vmem:[#allocation27_spill] sm:$0xff]  ;;  %v7389_v5 = vld [vmem:[#allocation26_spill] sm:$0xff] }
 0x532   :  { %v5021_v21 = vpop.eup %5020  ;;  %v3116_v32 = vpop.f32.mrf.mxu3 }
 0x533   :  { %v3196_v18 = vmul.f32 %v5021_v21, %v3179_v57  ;;  %v3184_v45 = vadd.f32 %v5019_v53, %v3183_v10  ;;  %vm3201_vm1 = vweird.f32 %v5021_v21  ;;  %v5023_v3 = vpop.eup %5022  ;;  %5024 = vtanh.f32 %v3219_v8 }
 0x534   :  { %vm3202_vm3 = vmor %vm3200_vm2, %vm3201_vm1 }
 0x535   :  { %v3197_v19 = vsub.f32 1.0, %v3196_v18  ;;  %v3188_v52 = vsel %vm3187_vm15, %v5019_v53, %v3184_v45 }
 0x536   :  { %v3193_v33 = vsel %vm3190_vm0, %v3192_v17, %v3188_v52  ;;  %v7381_v52 = vld [vmem:[#allocation25_spill] sm:$0xff] }
 0x537   :  { %v3198_v41 = vmul.f32 %v5021_v21, %v3197_v19  ;;  %v3222_v40 = vsub.f32 1.0, %v3193_v33  ;;  %v3232_v9 = vmul.f32 %v3228_v20, %v3193_v33  ;;  %v7383_v33 = vld [vmem:[#allocation110_spill] sm:$0xff]  ;;  %v7384_v20 = vld [vmem:[#allocation111_spill] sm:$0xff] }
 0x539   :  { %v3224_v55 = vmul.f32 %v5023_v3, %v3222_v40  ;;  %v3199_v23 = vadd.f32 %v5021_v21, %v3198_v41  ;;  %v5025_v12 = vpop.eup %5024  ;;  %v7385_v41 = vld [vmem:[#allocation23_spill] sm:$0xff]  ;;  %v7386_v40 = vld [vmem:[#allocation24_spill] sm:$0xff] }
 0x53a   :  { %v7390_v3 = vld [vmem:[#allocation28_spill] sm:$0xff] }
 0x53b   :  { %v6483_v28 = vadd.f32 %v3232_v9, %v3224_v55  ;;  %v3203_v53 = vsel %vm3202_vm3, %v5021_v21, %v3199_v23  ;;  %v7391_v55 = vld [vmem:[#allocation33_spill] sm:$0xff]  ;;  %v7392_v9 = vld [vmem:[#allocation35_spill] sm:$0xff]  ;;  %v7393_v23 = vld [vmem:[#allocation30_spill] sm:$0xff] }
 0x53c   :  { %v3208_v58 = vsel %vm3205_vm4, %v3207_v61, %v3203_v53  ;;  %v7394_v61 = vld [vmem:[#allocation32_spill] sm:$0xff]  ;;  %v7395_v53 = vld [vmem:[#allocation37_spill] sm:$0xff] }
 0x53d   :  { %v3223_v4 = vsub.f32 1.0, %v3208_v58  ;;  %v3236_v10 = vpack.c.bf16 %v6483_v28, %v6483_v28  ;;  %v6490_v57 = vsel %vm3816_vm5, %v6363_v49, %v6483_v28  ;;  %v3233_v18 = vmul.f32 %v3229_v2, %v3208_v58  ;;  %v7396_v58 = vld [vmem:[#allocation39_spill] sm:$0xff]  ;;  %v7398_v2 = vld [vmem:[#allocation36_spill] sm:$0xff] }
 0x53f   :  { %v3225_v32 = vmul.f32 %v5025_v12, %v3223_v4  ;;  %v3239_v45 = vshrl.u32 %v3236_v10, 16  ;;  %v7397_v4 = vld [vmem:[#allocation34_spill] sm:$0xff]  ;;  %v7399_v10 = vld [vmem:[#allocation41_spill] sm:$0xff]  ;;  %v7400_v12 = vld [vmem:[#allocation43_spill] sm:$0xff] }
 0x541   :  { %v6492_v17 = vadd.f32 %v3233_v18, %v3225_v32  ;;  %v3241_v21 = vrot.slane %v3239_v45, 2  ;;  %v7401_v32 = vld [vmem:[#allocation38_spill] sm:$0xff]  ;;  %v7402_v18 = vld [vmem:[#allocation40_spill] sm:$0xff]  ;;  %v7403_v45 = vld [vmem:[#allocation45_spill] sm:$0xff] }
 0x543   :  { %3256 = vmatmul.bf16.vlgmr.msrb.gmra.mxu0 %v3241_v21  ;;  %3282 = vmatmul.bf16.vlgmr.msrb.gmra.mxu2 %v3241_v21  ;;  %v3237_v8 = vpack.c.bf16 %v6492_v17, %v6492_v17  ;;  %v6498_v1 = vsel %vm3816_vm5, %v6374_v11, %v6492_v17  ;;  %v7380_v11 = vld [vmem:[#allocation109_spill] sm:$0xff] }
 0x544   :  { %3352 = vmatpush.bf16.msrb.mxu0 %v7016_v46  ;;  %3378 = vmatpush.bf16.msrb.mxu2 %v7017_v27 }
 0x545   :  { %v3243_v49 = vshrl.u32 %v3237_v8, 16  ;;  %v7405_v8 = vld [vmem:[#allocation42_spill] sm:$0xff] }
 0x547   :  { %v3245_v19 = vrot.slane %v3243_v49, 2  ;;  %v7406_v49 = vld [vmem:[#allocation44_spill] sm:$0xff] }
 0x548   :  { %3353 = vmatpush.bf16.msrb.mxu0 %v7018_v48  ;;  %3379 = vmatpush.bf16.msrb.mxu2 %v7019_v0 }
 0x549   :  { %3269 = vmatmul.bf16.vlgmr.msrb.gmra.mxu1 %v3245_v19  ;;  %3295 = vmatmul.bf16.vlgmr.msrb.gmra.mxu3 %v3245_v19 }
 0x54a   :  { %3365 = vmatpush.bf16.msrb.mxu1 %v7020_v51  ;;  %3391 = vmatpush.bf16.msrb.mxu3 %v7021_v43 }
 0x54c   :  { %3354 = vmatpush.bf16.msrb.mxu0 %v7022_v47  ;;  %3380 = vmatpush.bf16.msrb.mxu2 %v7023_v26 }
 0x54e   :  { %3366 = vmatpush.bf16.msrb.mxu1 %v7024_v25  ;;  %3392 = vmatpush.bf16.msrb.mxu3 %v7025_v22 }
 0x550   :  { %3355 = vmatpush.bf16.msrb.mxu0 %v7026_v15  ;;  %3381 = vmatpush.bf16.msrb.mxu2 %v7027_v54 }
 0x552   :  { %3367 = vmatpush.bf16.msrb.mxu1 %v7028_v36  ;;  %3393 = vmatpush.bf16.msrb.mxu3 %v7029_v30 }
 0x553   :  { %3308 = vmatmul.bf16.vlgmr.msra.gmra.mxu0 %v3241_v21  ;;  %3334 = vmatmul.bf16.vlgmr.msra.gmra.mxu2 %v3241_v21 }
 0x554   :  { %3356 = vmatpush.bf16.msrb.mxu0 %v7030_v39  ;;  %3382 = vmatpush.bf16.msrb.mxu2 %v7031_v35 }
 0x556   :  { %3368 = vmatpush.bf16.msrb.mxu1 %v7032_v38  ;;  %3394 = vmatpush.bf16.msrb.mxu3 %v7033_v16 }
 0x558   :  { %3357 = vmatpush.bf16.msrb.mxu0 %v7034_v42  ;;  %3383 = vmatpush.bf16.msrb.mxu2 %v5675_v31 }
 0x559   :  { %3321 = vmatmul.bf16.vlgmr.msra.gmra.mxu1 %v3245_v19  ;;  %3347 = vmatmul.bf16.vlgmr.msra.gmra.mxu3 %v3245_v19 }
 0x55a   :  { %3369 = vmatpush.bf16.msrb.mxu1 %v7035_v14  ;;  %3395 = vmatpush.bf16.msrb.mxu3 %v7036_v6 }
 0x55c   :  { %3358 = vmatpush.bf16.msrb.mxu0 %v5681_v63  ;;  %3384 = vmatpush.bf16.msrb.mxu2 %v5687_v50 }
 0x55e   :  { %3370 = vmatpush.bf16.msrb.mxu1 %v7037_v59  ;;  %3396 = vmatpush.bf16.msrb.mxu3 %v5677_v34 }
 0x560   :  { %3359 = vmatpush.bf16.msrb.mxu0 %v5693_v7  ;;  %3385 = vmatpush.bf16.msrb.mxu2 %v5699_v37 }
 0x562   :  { %3371 = vmatpush.bf16.msrb.mxu1 %v5683_v24  ;;  %3397 = vmatpush.bf16.msrb.mxu3 %v7380_v11 }
 0x563   :  { %3360 = vmatmul.bf16.vlgmr.msrb.gmra.mxu0 %v3241_v21  ;;  %3386 = vmatmul.bf16.vlgmr.msrb.gmra.mxu2 %v3241_v21  ;;  %v7404_v21 = vld [vmem:[#allocation47_spill] sm:$0xff] }
 0x564   :  { %3530 = vmatpush.bf16.msra.mxu0 %v5395_v56  ;;  %3556 = vmatpush.bf16.msra.mxu2 %v5399_v60  ;;  %v7387_v56 = vld [vmem:[#allocation29_spill] sm:$0xff]  ;;  %v7388_v60 = vld [vmem:[#allocation31_spill] sm:$0xff] }
 0x566   :  { %3372 = vmatpush.bf16.msrb.mxu1 %v7383_v33  ;;  %3398 = vmatpush.bf16.msrb.mxu3 %v7384_v20 }
 0x568   :  { %3531 = vmatpush.bf16.msra.mxu0 %v7381_v52  ;;  %3557 = vmatpush.bf16.msra.mxu2 %v7382_v44  ;;  %v7408_v52 = vld [vmem:[#allocation52_spill] sm:$0xff]  ;;  %v7409_v44 = vld [vmem:[#allocation55_spill] sm:$0xff] }
 0x569   :  { %3373 = vmatmul.bf16.vlgmr.msrb.gmra.mxu1 %v3245_v19  ;;  %3399 = vmatmul.bf16.vlgmr.msrb.gmra.mxu3 %v3245_v19  ;;  %v7407_v19 = vld [vmem:[#allocation49_spill] sm:$0xff] }
 0x56a   :  { %3543 = vmatpush.bf16.msra.mxu1 %v7385_v41  ;;  %3569 = vmatpush.bf16.msra.mxu3 %v7386_v40  ;;  %v7410_v41 = vld [vmem:[#allocation57_spill] sm:$0xff]  ;;  %v7411_v40 = vld [vmem:[#allocation46_spill] sm:$0xff] }
 0x56c   :  { %3532 = vmatpush.bf16.msra.mxu0 %v7387_v56  ;;  %3558 = vmatpush.bf16.msra.mxu2 %v7388_v60  ;;  %v7412_v56 = vld [vmem:[#allocation48_spill] sm:$0xff]  ;;  %v7413_v60 = vld [vmem:[#allocation59_spill] sm:$0xff] }
 0x56e   :  { %3544 = vmatpush.bf16.msra.mxu1 %v7389_v5  ;;  %3570 = vmatpush.bf16.msra.mxu3 %v7390_v3  ;;  %v7414_v5 = vld [vmem:[#allocation61_spill] sm:$0xff]  ;;  %v7415_v3 = vld [vmem:[#allocation50_spill] sm:$0xff] }
 0x570   :  { %3533 = vmatpush.bf16.msra.mxu0 %v7391_v55  ;;  %3559 = vmatpush.bf16.msra.mxu2 %v7392_v9  ;;  %v7416_v55 = vld [vmem:[#allocation53_spill] sm:$0xff]  ;;  %v7417_v9 = vld [vmem:[#allocation56_spill] sm:$0xff] }
 0x572   :  { %3545 = vmatpush.bf16.msra.mxu1 %v7393_v23  ;;  %3571 = vmatpush.bf16.msra.mxu3 %v7394_v61  ;;  %v7418_v23 = vld [vmem:[#allocation58_spill] sm:$0xff]  ;;  %v7419_v61 = vld [vmem:[#allocation63_spill] sm:$0xff] }
 0x574   :  { %3534 = vmatpush.bf16.msra.mxu0 %v7395_v53  ;;  %3560 = vmatpush.bf16.msra.mxu2 %v7396_v58  ;;  %v7420_v53 = vld [vmem:[#allocation65_spill] sm:$0xff]  ;;  %v7421_v58 = vld [vmem:[#allocation60_spill] sm:$0xff] }
 0x576   :  { %3546 = vmatpush.bf16.msra.mxu1 %v7397_v4  ;;  %3572 = vmatpush.bf16.msra.mxu3 %v7398_v2  ;;  %v7422_v4 = vld [vmem:[#allocation62_spill] sm:$0xff]  ;;  %v7423_v2 = vld [vmem:[#allocation67_spill] sm:$0xff] }
 0x578   :  { %3535 = vmatpush.bf16.msra.mxu0 %v7399_v10  ;;  %3561 = vmatpush.bf16.msra.mxu2 %v7400_v12  ;;  %v7424_v10 = vld [vmem:[#allocation69_spill] sm:$0xff]  ;;  %v7425_v12 = vld [vmem:[#allocation64_spill] sm:$0xff] }
 0x57a   :  { %3547 = vmatpush.bf16.msra.mxu1 %v7401_v32  ;;  %3573 = vmatpush.bf16.msra.mxu3 %v7402_v18  ;;  %v7426_v32 = vld [vmem:[#allocation66_spill] sm:$0xff]  ;;  %v7427_v18 = vld [vmem:[#allocation71_spill] sm:$0xff] }
 0x57c   :  { %3536 = vmatpush.bf16.msra.mxu0 %v7403_v45  ;;  %3562 = vmatpush.bf16.msra.mxu2 %v7404_v21  ;;  %v7428_v45 = vld [vmem:[#allocation73_spill] sm:$0xff]  ;;  %v7429_v21 = vld [vmem:[#allocation68_spill] sm:$0xff] }
 0x57e   :  { %3548 = vmatpush.bf16.msra.mxu1 %v7405_v8  ;;  %3574 = vmatpush.bf16.msra.mxu3 %v7406_v49  ;;  %v7430_v8 = vld [vmem:[#allocation70_spill] sm:$0xff]  ;;  %v7431_v49 = vld [vmem:[#allocation75_spill] sm:$0xff] }
 0x580   :  { %3537 = vmatpush.bf16.msra.mxu0 %v7407_v19  ;;  %3563 = vmatpush.bf16.msra.mxu2 %v7408_v52  ;;  %v7432_v19 = vld [vmem:[#allocation77_spill] sm:$0xff]  ;;  %v7433_v52 = vld [vmem:[#allocation72_spill] sm:$0xff] }
 0x582   :  { %3549 = vmatpush.bf16.msra.mxu1 %v7411_v40  ;;  %3575 = vmatpush.bf16.msra.mxu3 %v7412_v56  ;;  %v7436_v40 = vld [vmem:[#allocation81_spill] sm:$0xff]  ;;  %v7437_v56 = vld [vmem:[#allocation76_spill] sm:$0xff] }
 0x584   :  { %3582 = vmatpush.bf16.msrb.mxu0 %v7409_v44  ;;  %3608 = vmatpush.bf16.msrb.mxu2 %v7410_v41  ;;  %v7434_v44 = vld [vmem:[#allocation74_spill] sm:$0xff]  ;;  %v7435_v41 = vld [vmem:[#allocation79_spill] sm:$0xff] }
 0x586   :  { %3550 = vmatpush.bf16.msra.mxu1 %v7415_v3  ;;  %3576 = vmatpush.bf16.msra.mxu3 %v7416_v55  ;;  %v7440_v3 = vld [vmem:[#allocation85_spill] sm:$0xff]  ;;  %v7441_v55 = vld [vmem:[#allocation80_spill] sm:$0xff] }
 0x588   :  { %3583 = vmatpush.bf16.msrb.mxu0 %v7413_v60  ;;  %3609 = vmatpush.bf16.msrb.mxu2 %v7414_v5  ;;  %v7438_v60 = vld [vmem:[#allocation78_spill] sm:$0xff]  ;;  %v7439_v5 = vld [vmem:[#allocation83_spill] sm:$0xff] }
 0x58a   :  { %3595 = vmatpush.bf16.msrb.mxu1 %v7417_v9  ;;  %3621 = vmatpush.bf16.msrb.mxu3 %v7418_v23  ;;  %v7442_v9 = vld [vmem:[#allocation82_spill] sm:$0xff]  ;;  %v7443_v23 = vld [vmem:[#allocation84_spill] sm:$0xff] }
 0x58c   :  { %3584 = vmatpush.bf16.msrb.mxu0 %v7419_v61  ;;  %3610 = vmatpush.bf16.msrb.mxu2 %v7420_v53  ;;  %v7444_v61 = vld [vmem:[#allocation86_spill] sm:$0xff] }
 0x58e   :  { %3596 = vmatpush.bf16.msrb.mxu1 %v7421_v58  ;;  %3622 = vmatpush.bf16.msrb.mxu3 %v7422_v4  ;;  %v7445_v58 = vld [vmem:[#allocation117_spill] sm:$0xff] }
 0x590   :  { %3585 = vmatpush.bf16.msrb.mxu0 %v7423_v2  ;;  %3611 = vmatpush.bf16.msrb.mxu2 %v7424_v10 }
 0x592   :  { %3597 = vmatpush.bf16.msrb.mxu1 %v7425_v12  ;;  %3623 = vmatpush.bf16.msrb.mxu3 %v7426_v32 }
 0x594   :  { %3586 = vmatpush.bf16.msrb.mxu0 %v7427_v18  ;;  %3612 = vmatpush.bf16.msrb.mxu2 %v7428_v45  ;;  %v7446_v45 = vld [vmem:[#allocation112_spill] sm:$0xff] }
 0x596   :  { %3598 = vmatpush.bf16.msrb.mxu1 %v7429_v21  ;;  %3624 = vmatpush.bf16.msrb.mxu3 %v7430_v8  ;;  %v7447_v8 = vld [vmem:[#allocation118_spill] sm:$0xff] }
 0x598   :  { %3587 = vmatpush.bf16.msrb.mxu0 %v7431_v49  ;;  %3613 = vmatpush.bf16.msrb.mxu2 %v7432_v19 }
 0x59a   :  { %3599 = vmatpush.bf16.msrb.mxu1 %v7433_v52  ;;  %3625 = vmatpush.bf16.msrb.mxu3 %v7434_v44 }
 0x59c   :  { %3588 = vmatpush.bf16.msrb.mxu0 %v7435_v41  ;;  %3614 = vmatpush.bf16.msrb.mxu2 %v7436_v40 }
 0x59e   :  { %3600 = vmatpush.bf16.msrb.mxu1 %v7437_v56  ;;  %3626 = vmatpush.bf16.msrb.mxu3 %v7438_v60 }
 0x5a0   :  { %3589 = vmatpush.bf16.msrb.mxu0 %v7439_v5  ;;  %3615 = vmatpush.bf16.msrb.mxu2 %v7440_v3  ;;  %v7448_v5 = vld [vmem:[#allocation113_spill] sm:$0xff] }
 0x5a2   :  { %3601 = vmatpush.bf16.msrb.mxu1 %v7441_v55  ;;  %3627 = vmatpush.bf16.msrb.mxu3 %v7442_v9 }
 0x5a6   :  { %3602 = vmatpush.bf16.msrb.mxu1 %v7443_v23  ;;  %3628 = vmatpush.bf16.msrb.mxu3 %v7444_v61  ;;  %v7449_v61 = vld [vmem:[#allocation119_spill] sm:$0xff] }
 0x5c0   :  { %v3257_v53 = vpop.f32.mrf.mxu0 }
 0x5c1   :  { %v3258_v4 = vadd.f32 %v3257_v53, %v7445_v58 }
 0x5c6   :  { %v3270_v2 = vpop.f32.mrf.mxu1  ;;  %v3283_v10 = vpop.f32.mrf.mxu2 }
 0x5c7   :  { %v3271_v12 = vadd.f32 %v3270_v2, %v3258_v4  ;;  %v3284_v49 = vadd.f32 %v3283_v10, %v7447_v8 }
 0x5c8   :  { %v3259_v32 = vpop.f32.mrf.mxu0 }
 0x5c9   :  { %v3406_v18 = vrot.slane %v3271_v12, 2 }
 0x5cb   :  { %v3410_v21 = vadd.f32 %v3406_v18, %v7446_v45 }
 0x5cc   :  { %v3296_v19 = vpop.f32.mrf.mxu3 }
 0x5cd   :  { %v4686_v52 = vmul.f32 -1.442695, %v3410_v21  ;;  %v3297_v44 = vadd.f32 %v3296_v19, %v3284_v49  ;;  %v7450_v49 = vld [vmem:[#allocation114_spill] sm:$0xff] }
 0x5ce   :  { %v3272_v41 = vpop.f32.mrf.mxu1  ;;  %v3285_v40 = vpop.f32.mrf.mxu2 }
 0x5cf   :  { %5026 = vpow2.f32 %v4686_v52  ;;  %v3407_v56 = vrot.slane %v3297_v44, 2  ;;  %v7451_v52 = vld [vmem:[#allocation120_spill] sm:$0xff] }
 0x5d0   :  { %v3309_v60 = vpop.f32.mrf.mxu0 }
 0x5d1   :  { %v3411_v3 = vadd.f32 %v3407_v56, %v7448_v5  ;;  %v3310_v53 = vadd.f32 %v3309_v60, %v7449_v61 }
 0x5d3   :  { %v4687_v55 = vmul.f32 -1.442695, %v3411_v3 }
 0x5d4   :  { %v3298_v9 = vpop.f32.mrf.mxu3 }
 0x5d5   :  { %v5027_v23 = vpop.eup %5026  ;;  %5028 = vpow2.f32 %v4687_v55 }
 0x5d6   :  { %v3418_v4 = vadd.f32 1.0, %v5027_v23  ;;  %v3322_v2 = vpop.f32.mrf.mxu1  ;;  %v3335_v12 = vpop.f32.mrf.mxu2 }
 0x5d7   :  { %v3323_v10 = vadd.f32 %v3322_v2, %v3310_v53  ;;  %v3336_v44 = vadd.f32 %v3335_v12, %v7451_v52  ;;  %v7452_v2 = vld [vmem:[#allocation115_spill] sm:$0xff] }
 0x5d8   :  { %5030 = vrcp.f32 %v3418_v4  ;;  %v3311_v32 = vpop.f32.mrf.mxu0  ;;  %v3431_v12 = vand.u32 2147483648, %v3418_v4  ;;  %vm3425_vm7 = vweird.f32 %v3418_v4 }
 0x5d9   :  { %v3452_v18 = vrot.slane %v3323_v10, 2 }
 0x5db   :  { %v5029_v21 = vpop.eup %5028  ;;  %v3456_v19 = vadd.f32 %v3452_v18, %v7450_v49 }
 0x5dc   :  { %v3419_v41 = vadd.f32 1.0, %v5029_v21  ;;  %v3348_v40 = vpop.f32.mrf.mxu3 }
 0x5dd   :  { %v4688_v56 = vmul.f32 -1.442695, %v3456_v19  ;;  %v3349_v3 = vadd.f32 %v3348_v40, %v3336_v44  ;;  %v7453_v19 = vld [vmem:[#allocation121_spill] sm:$0xff] }
 0x5de   :  { %v5031_v9 = vpop.eup %5030  ;;  %5032 = vrcp.f32 %v3419_v41  ;;  %v3324_v55 = vpop.f32.mrf.mxu1  ;;  %vm3440_vm11 = vweird.f32 %v3419_v41 }
 0x5df   :  { %v3337_v60 = vpop.f32.mrf.mxu2  ;;  %5034 = vpow2.f32 %v4688_v56  ;;  %v3453_v23 = vrot.slane %v3349_v3, 2  ;;  %v3421_v61 = vmul.f32 %v5031_v9, %v3418_v4  ;;  %vm3426_vm6 = vweird.f32 %v5031_v9 }
 0x5e0   :  { %v3361_v53 = vpop.f32.mrf.mxu0  ;;  %v3429_v3 = vand.u32 2147483647, %v3418_v4  ;;  %vm3427_vm8 = vmor %vm3425_vm7, %vm3426_vm6  ;;  %vm3819_vm6 = vcmask 1045504  }
 0x5e1   :  { %v3457_v32 = vadd.f32 %v3453_v23, %v7452_v2  ;;  %v3422_v10 = vsub.f32 1.0, %v3421_v61  ;;  %v3362_v44 = vadd.f32 %v3361_v53, %v7453_v19  ;;  %v3446_v19 = vand.u32 2147483648, %v3419_v41 }
 0x5e2   :  { %vm3430_vm9 = vcmp.eq.f32.partialorder %v3429_v3, 8.507059e+37 }
 0x5e3   :  { %v4689_v5 = vmul.f32 -1.442695, %v3457_v32  ;;  %v3423_v8 = vmul.f32 %v5031_v9, %v3422_v10  ;;  %v3447_v3 = vor.u32 1.1754944e-38, %v3446_v19 }
 0x5e4   :  { %v5033_v18 = vpop.eup %5032  ;;  %v3350_v49 = vpop.f32.mrf.mxu3 }
 0x5e5   :  { %v5035_v21 = vpop.eup %5034  ;;  %5036 = vpow2.f32 %v4689_v5  ;;  %v3424_v40 = vadd.f32 %v5031_v9, %v3423_v8  ;;  %v3436_v55 = vmul.f32 %v5033_v18, %v3419_v41  ;;  %v3432_v49 = vor.u32 1.1754944e-38, %v3431_v12 }
 0x5e6   :  { %v3464_v60 = vadd.f32 1.0, %v5035_v21  ;;  %v3374_v56 = vpop.f32.mrf.mxu1  ;;  %vm3441_vm10 = vweird.f32 %v5033_v18 }
 0x5e7   :  { %v3387_v52 = vpop.f32.mrf.mxu2  ;;  %v3375_v45 = vadd.f32 %v3374_v56, %v3362_v44  ;;  %v3437_v61 = vsub.f32 1.0, %v3436_v55  ;;  %v3428_v23 = vsel %vm3427_vm8, %v5031_v9, %v3424_v40  ;;  %v3444_v44 = vand.u32 2147483647, %v3419_v41  ;;  %vm3442_vm12 = vmor %vm3440_vm11, %vm3441_vm10 }
 0x5e8   :  { %5038 = vrcp.f32 %v3464_v60  ;;  %v3363_v32 = vpop.f32.mrf.mxu0  ;;  %v3433_v53 = vsel %vm3430_vm9, %v3432_v49, %v3428_v23  ;;  %v3388_v8 = vadd.f32 %v3387_v52, %v5834_v13  ;;  %v3475_v41 = vand.u32 2147483647, %v3464_v60 }
 0x5e9   :  { %v3498_v10 = vrot.slane %v3375_v45, 2  ;;  %v3438_v2 = vmul.f32 %v5033_v18, %v3437_v61  ;;  %vm3445_vm13 = vcmp.eq.f32.partialorder %v3444_v44, 8.507059e+37  ;;  %v3477_v32 = vand.u32 2147483648, %v3464_v60 }
 0x5ea   :  { %vm3471_vm15 = vweird.f32 %v3464_v60  ;;  %vm3476_vm1 = vcmp.eq.f32.partialorder %v3475_v41, 8.507059e+37 }
 0x5eb   :  { %v5037_v5 = vpop.eup %5036  ;;  %v3439_v21 = vadd.f32 %v5033_v18, %v3438_v2  ;;  %v3502_v4 = vmul.f32 %v3498_v10, %v3433_v53 }
 0x5ec   :  { %v3465_v58 = vadd.f32 1.0, %v5037_v5  ;;  %v3400_v20 = vpop.f32.mrf.mxu3 }
 0x5ed   :  { %v3401_v55 = vadd.f32 %v3400_v20, %v3388_v8  ;;  %v3443_v12 = vsel %vm3442_vm12, %v5033_v18, %v3439_v21  ;;  %v3504_v61 = vadd.f32 %v3502_v4, %v7086_v29  ;;  %v3478_v8 = vor.u32 1.1754944e-38, %v3477_v32 }
 0x5ee   :  { %v5039_v9 = vpop.eup %5038  ;;  %5040 = vrcp.f32 %v3465_v58  ;;  %v3376_v45 = vpop.f32.mrf.mxu1  ;;  %v3448_v23 = vsel %vm3445_vm13, %v3447_v3, %v3443_v12  ;;  %v3492_v44 = vand.u32 2147483648, %v3465_v58  ;;  %v3514_v12 = vrot.slane %v6483_v28, 7 }
 0x5ef   :  { %v3389_v40 = vpop.f32.mrf.mxu2  ;;  %v3467_v56 = vmul.f32 %v5039_v9, %v3464_v60  ;;  %v3499_v52 = vrot.slane %v3401_v55, 2  ;;  %vm3472_vm14 = vweird.f32 %v5039_v9  ;;  %5042 = vtanh.f32 %v3504_v61 }
 0x5f0   :  { %vm3473_vm0 = vmor %vm3471_vm15, %vm3472_vm14  ;;  %vm3486_vm3 = vweird.f32 %v3465_v58  ;;  %v3515_v28 = vrot.slane %v6492_v17, 7 }
 0x5f1   :  { %v3468_v2 = vsub.f32 1.0, %v3467_v56  ;;  %v3503_v49 = vmul.f32 %v3499_v52, %v3448_v23  ;;  %v3490_v56 = vand.u32 2147483647, %v3465_v58 }
 0x5f3   :  { %v3469_v10 = vmul.f32 %v5039_v9, %v3468_v2  ;;  %v3505_v19 = vadd.f32 %v3503_v49, %v5779_v62  ;;  %v3493_v2 = vor.u32 1.1754944e-38, %v3492_v44  ;;  %vm3491_vm5 = vcmp.eq.f32.partialorder %v3490_v56, 8.507059e+37 }
 0x5f4   :  { %v5041_v20 = vpop.eup %5040  ;;  %v3402_v5 = vpop.f32.mrf.mxu3 }
 0x5f5   :  { %v3482_v18 = vmul.f32 %v5041_v20, %v3465_v58  ;;  %v3470_v53 = vadd.f32 %v5039_v9, %v3469_v10  ;;  %vm3487_vm2 = vweird.f32 %v5041_v20  ;;  %v5043_v3 = vpop.eup %5042  ;;  %5044 = vtanh.f32 %v3505_v19 }
 0x5f6   :  { %vm3488_vm4 = vmor %vm3486_vm3, %vm3487_vm2 }
 0x5f7   :  { %v3483_v21 = vsub.f32 1.0, %v3482_v18  ;;  %v3474_v4 = vsel %vm3473_vm0, %v5039_v9, %v3470_v53 }
 0x5f8   :  { %v3479_v55 = vsel %vm3476_vm1, %v3478_v8, %v3474_v4  ;;  %v7460_v4 = vld [vmem:[#allocation114_spill] sm:$0xff] }
 0x5f9   :  { %v3484_v45 = vmul.f32 %v5041_v20, %v3483_v21  ;;  %v3508_v40 = vsub.f32 1.0, %v3479_v55  ;;  %v3518_v61 = vmul.f32 %v3514_v12, %v3479_v55  ;;  %v7461_v55 = vld [vmem:[#allocation120_spill] sm:$0xff] }
 0x5fb   :  { %v3510_v60 = vmul.f32 %v5043_v3, %v3508_v40  ;;  %v3485_v52 = vadd.f32 %v5041_v20, %v3484_v45  ;;  %v5045_v41 = vpop.eup %5044 }
 0x5fd   :  { %v6609_v23 = vadd.f32 %v3518_v61, %v3510_v60  ;;  %v3489_v9 = vsel %vm3488_vm4, %v5041_v20, %v3485_v52 }
 0x5fe   :  { %v3494_v32 = vsel %vm3491_vm5, %v3493_v2, %v3489_v9 }
 0x5ff   :  { %v3509_v49 = vsub.f32 1.0, %v3494_v32  ;;  %v3522_v10 = vpack.c.bf16 %v6609_v23, %v6609_v23  ;;  %v6617_v58 = vsel %vm3819_vm6, %v6490_v57, %v6609_v23  ;;  %v3519_v18 = vmul.f32 %v3515_v28, %v3494_v32 }
 0x601   :  { %v3511_v5 = vmul.f32 %v5045_v41, %v3509_v49  ;;  %v3526_v53 = vrot.slane %v3522_v10, 3  ;;  %v7462_v49 = vld [vmem:[#allocation115_spill] sm:$0xff] }
 0x603   :  { %v6619_v8 = vadd.f32 %v3519_v18, %v3511_v5  ;;  %3538 = vmatmul.bf16.vlgmr.msra.gmra.mxu0 %v3526_v53  ;;  %3564 = vmatmul.bf16.vlgmr.msra.gmra.mxu2 %v3526_v53 }
 0x604   :  { %3634 = vmatpush.bf16.msra.mxu0 %v7016_v46  ;;  %3660 = vmatpush.bf16.msra.mxu2 %v7017_v27 }
 0x605   :  { %v3523_v17 = vpack.c.bf16 %v6619_v8, %v6619_v8  ;;  %v6628_v20 = vsel %vm3819_vm6, %v6498_v1, %v6619_v8  ;;  %vm3822_vm6 = vcmask 1046528  }
 0x607   :  { %v3527_v57 = vrot.slane %v3523_v17, 3 }
 0x608   :  { %3635 = vmatpush.bf16.msra.mxu0 %v7018_v48  ;;  %3661 = vmatpush.bf16.msra.mxu2 %v7019_v0  ;;  %v7456_v0 = vld [vmem:[#allocation112_spill] sm:$0xff] }
 0x609   :  { %3551 = vmatmul.bf16.vlgmr.msra.gmra.mxu1 %v3527_v57  ;;  %3577 = vmatmul.bf16.vlgmr.msra.gmra.mxu3 %v3527_v57 }
 0x60a   :  { %3647 = vmatpush.bf16.msra.mxu1 %v7020_v51  ;;  %3673 = vmatpush.bf16.msra.mxu3 %v7021_v43  ;;  %v7457_v51 = vld [vmem:[#allocation118_spill] sm:$0xff] }
 0x60c   :  { %3636 = vmatpush.bf16.msra.mxu0 %v7022_v47  ;;  %3662 = vmatpush.bf16.msra.mxu2 %v7023_v26 }
 0x60e   :  { %3648 = vmatpush.bf16.msra.mxu1 %v7024_v25  ;;  %3674 = vmatpush.bf16.msra.mxu3 %v7025_v22 }
 0x610   :  { %3637 = vmatpush.bf16.msra.mxu0 %v7026_v15  ;;  %3663 = vmatpush.bf16.msra.mxu2 %v7027_v54 }
 0x612   :  { %3649 = vmatpush.bf16.msra.mxu1 %v7028_v36  ;;  %3675 = vmatpush.bf16.msra.mxu3 %v7029_v30  ;;  %v7458_v30 = vld [vmem:[#allocation113_spill] sm:$0xff] }
 0x613   :  { %3590 = vmatmul.bf16.vlgmr.msrb.gmra.mxu0 %v3526_v53  ;;  %3616 = vmatmul.bf16.vlgmr.msrb.gmra.mxu2 %v3526_v53 }
 0x614   :  { %3638 = vmatpush.bf16.msra.mxu0 %v7030_v39  ;;  %3664 = vmatpush.bf16.msra.mxu2 %v7031_v35 }
 0x616   :  { %3650 = vmatpush.bf16.msra.mxu1 %v7032_v38  ;;  %3676 = vmatpush.bf16.msra.mxu3 %v7033_v16 }
 0x618   :  { %3639 = vmatpush.bf16.msra.mxu0 %v7034_v42  ;;  %3665 = vmatpush.bf16.msra.mxu2 %v5675_v31  ;;  %v7454_v31 = vld [vmem:[#allocation111_spill] sm:$0xff] }
 0x619   :  { %3603 = vmatmul.bf16.vlgmr.msrb.gmra.mxu1 %v3527_v57  ;;  %3629 = vmatmul.bf16.vlgmr.msrb.gmra.mxu3 %v3527_v57  ;;  %v7459_v42 = vld [vmem:[#allocation119_spill] sm:$0xff] }
 0x61a   :  { %3651 = vmatpush.bf16.msra.mxu1 %v7035_v14  ;;  %3677 = vmatpush.bf16.msra.mxu3 %v7036_v6 }
 0x61c   :  { %3640 = vmatpush.bf16.msra.mxu0 %v5681_v63  ;;  %3666 = vmatpush.bf16.msra.mxu2 %v5687_v50  ;;  %v7455_v50 = vld [vmem:[#allocation117_spill] sm:$0xff] }
 0x61e   :  { %3652 = vmatpush.bf16.msra.mxu1 %v7037_v59  ;;  %3678 = vmatpush.bf16.msra.mxu3 %v5677_v34 }
 0x620   :  { %3641 = vmatpush.bf16.msra.mxu0 %v5693_v7  ;;  %3667 = vmatpush.bf16.msra.mxu2 %v5699_v37 }
 0x622   :  { %3653 = vmatpush.bf16.msra.mxu1 %v5683_v24  ;;  %3679 = vmatpush.bf16.msra.mxu3 %v7380_v11 }
 0x623   :  { %3642 = vmatmul.bf16.vlgmr.msra.gmra.mxu0 %v3526_v53  ;;  %3668 = vmatmul.bf16.vlgmr.msra.gmra.mxu2 %v3526_v53 }
 0x626   :  { %3654 = vmatpush.bf16.msra.mxu1 %v7383_v33  ;;  %3680 = vmatpush.bf16.msra.mxu3 %v7454_v31  ;;  %v7463_v31 = vld [vmem:[#allocation121_spill] sm:$0xff] }
 0x629   :  { %3655 = vmatmul.bf16.vlgmr.msra.gmra.mxu1 %v3527_v57  ;;  %3681 = vmatmul.bf16.vlgmr.msra.gmra.mxu3 %v3527_v57 }
 0x680   :  { %v3539_v63 = vpop.f32.mrf.mxu0 }
 0x681   :  { %v3540_v46 = vadd.f32 %v3539_v63, %v7455_v50 }
 0x686   :  { %v3552_v34 = vpop.f32.mrf.mxu1  ;;  %v3565_v27 = vpop.f32.mrf.mxu2 }
 0x687   :  { %v3553_v7 = vadd.f32 %v3552_v34, %v3540_v46  ;;  %v3566_v43 = vadd.f32 %v3565_v27, %v7457_v51 }
 0x688   :  { %v3541_v48 = vpop.f32.mrf.mxu0 }
 0x689   :  { %v3688_v37 = vrot.slane %v3553_v7, 1 }
 0x68b   :  { %v3692_v24 = vadd.f32 %v3688_v37, %v7456_v0 }
 0x68c   :  { %v3578_v47 = vpop.f32.mrf.mxu3 }
 0x68d   :  { %v4690_v26 = vmul.f32 -1.442695, %v3692_v24  ;;  %v3579_v25 = vadd.f32 %v3578_v47, %v3566_v43 }
 0x68e   :  { %v3554_v22 = vpop.f32.mrf.mxu1  ;;  %v3567_v15 = vpop.f32.mrf.mxu2 }
 0x68f   :  { %5046 = vpow2.f32 %v4690_v26  ;;  %v3689_v54 = vrot.slane %v3579_v25, 1 }
 0x690   :  { %v3591_v36 = vpop.f32.mrf.mxu0 }
 0x691   :  { %v3693_v39 = vadd.f32 %v3689_v54, %v7458_v30  ;;  %v3592_v14 = vadd.f32 %v3591_v36, %v7459_v42 }
 0x693   :  { %v4691_v35 = vmul.f32 -1.442695, %v3693_v39 }
 0x694   :  { %v3580_v38 = vpop.f32.mrf.mxu3 }
 0x695   :  { %v5047_v16 = vpop.eup %5046  ;;  %5048 = vpow2.f32 %v4691_v35 }
 0x696   :  { %v3700_v6 = vadd.f32 1.0, %v5047_v16  ;;  %v3604_v59 = vpop.f32.mrf.mxu1  ;;  %v3617_v1 = vpop.f32.mrf.mxu2 }
 0x697   :  { %v3605_v11 = vadd.f32 %v3604_v59, %v3592_v14  ;;  %v3618_v12 = vadd.f32 %v3617_v1, %v7461_v55 }
 0x698   :  { %5050 = vrcp.f32 %v3700_v6  ;;  %v3593_v33 = vpop.f32.mrf.mxu0  ;;  %v3713_v17 = vand.u32 2147483648, %v3700_v6  ;;  %vm3707_vm8 = vweird.f32 %v3700_v6  ;;  %v3711_v7 = vand.u32 2147483647, %v3700_v6 }
 0x699   :  { %v3734_v19 = vrot.slane %v3605_v11, 1 }
 0x69a   :  { %v3714_v43 = vor.u32 1.1754944e-38, %v3713_v17  ;;  %vm3712_vm10 = vcmp.eq.f32.partialorder %v3711_v7, 8.507059e+37 }
 0x69b   :  { %v5049_v21 = vpop.eup %5048  ;;  %v3738_v44 = vadd.f32 %v3734_v19, %v7460_v4 }
 0x69c   :  { %v3701_v45 = vadd.f32 1.0, %v5049_v21  ;;  %v3630_v40 = vpop.f32.mrf.mxu3 }
 0x69d   :  { %v4692_v56 = vmul.f32 -1.442695, %v3738_v44  ;;  %v3631_v3 = vadd.f32 %v3630_v40, %v3618_v12 }
 0x69e   :  { %v5051_v60 = vpop.eup %5050  ;;  %5052 = vrcp.f32 %v3701_v45  ;;  %v3606_v61 = vpop.f32.mrf.mxu1  ;;  %v3728_v36 = vand.u32 2147483648, %v3701_v45  ;;  %vm3722_vm12 = vweird.f32 %v3701_v45  ;;  %v3726_v38 = vand.u32 2147483647, %v3701_v45 }
 0x69f   :  { %v3619_v52 = vpop.f32.mrf.mxu2  ;;  %5054 = vpow2.f32 %v4692_v56  ;;  %v3735_v2 = vrot.slane %v3631_v3, 1  ;;  %v3703_v9 = vmul.f32 %v5051_v60, %v3700_v6  ;;  %vm3708_vm7 = vweird.f32 %v5051_v60 }
 0x6a0   :  { %v3643_v32 = vpop.f32.mrf.mxu0  ;;  %vm3709_vm9 = vmor %vm3707_vm8, %vm3708_vm7  ;;  %v3729_v11 = vor.u32 1.1754944e-38, %v3728_v36  ;;  %vm3727_vm14 = vcmp.eq.f32.partialorder %v3726_v38, 8.507059e+37 }
 0x6a1   :  { %v3739_v28 = vadd.f32 %v3735_v2, %v7462_v49  ;;  %v3704_v10 = vsub.f32 1.0, %v3703_v9  ;;  %v3644_v63 = vadd.f32 %v3643_v32, %v7463_v31  ;;  %v3796_v32 = vrot.slane %v6609_v23, 7 }
 0x6a2   :  { %v3797_v23 = vrot.slane %v6619_v8, 7 }
 0x6a3   :  { %v4693_v41 = vmul.f32 -1.442695, %v3739_v28  ;;  %v3705_v5 = vmul.f32 %v5051_v60, %v3704_v10 }
 0x6a4   :  { %v5053_v18 = vpop.eup %5052  ;;  %v3632_v53 = vpop.f32.mrf.mxu3 }
 0x6a5   :  { %v5055_v57 = vpop.eup %5054  ;;  %5056 = vpow2.f32 %v4693_v41  ;;  %v3706_v50 = vadd.f32 %v5051_v60, %v3705_v5  ;;  %v3718_v46 = vmul.f32 %v5053_v18, %v3701_v45  ;;  %vm3723_vm11 = vweird.f32 %v5053_v18 }
 0x6a6   :  { %v3746_v34 = vadd.f32 1.0, %v5055_v57  ;;  %v3656_v27 = vpop.f32.mrf.mxu1  ;;  %vm3724_vm13 = vmor %vm3722_vm12, %vm3723_vm11 }
 0x6a7   :  { %v3669_v48 = vpop.f32.mrf.mxu2  ;;  %v3657_v37 = vadd.f32 %v3656_v27, %v3644_v63  ;;  %v3719_v0 = vsub.f32 1.0, %v3718_v46  ;;  %v3710_v24 = vsel %vm3709_vm9, %v5051_v60, %v3706_v50 }
 0x6a8   :  { %5058 = vrcp.f32 %v3746_v34  ;;  %v3645_v51 = vpop.f32.mrf.mxu0  ;;  %v3715_v22 = vsel %vm3712_vm10, %v3714_v43, %v3710_v24  ;;  %v3670_v15 = vadd.f32 %v3669_v48, %v5834_v13  ;;  %v3759_v4 = vand.u32 2147483648, %v3746_v34 }
 0x6a9   :  { %v3780_v47 = vrot.slane %v3657_v37, 1  ;;  %v3720_v26 = vmul.f32 %v5053_v18, %v3719_v0  ;;  %v3757_v12 = vand.u32 2147483647, %v3746_v34  ;;  %vm3753_vm0 = vweird.f32 %v3746_v34 }
 0x6aa   :  { %v3760_v60 = vor.u32 1.1754944e-38, %v3759_v4 }
 0x6ab   :  { %v5057_v25 = vpop.eup %5056  ;;  %v3721_v54 = vadd.f32 %v5053_v18, %v3720_v26  ;;  %v3784_v39 = vmul.f32 %v3780_v47, %v3715_v22  ;;  %vm3758_vm2 = vcmp.eq.f32.partialorder %v3757_v12, 8.507059e+37 }
 0x6ac   :  { %v3747_v30 = vadd.f32 1.0, %v5057_v25  ;;  %v3682_v35 = vpop.f32.mrf.mxu3 }
 0x6ad   :  { %v3683_v16 = vadd.f32 %v3682_v35, %v3670_v15  ;;  %v3725_v14 = vsel %vm3724_vm13, %v5053_v18, %v3721_v54  ;;  %v3786_v33 = vadd.f32 %v3784_v39, %v7086_v29 }
 0x6ae   :  { %v5059_v42 = vpop.eup %5058  ;;  %5060 = vrcp.f32 %v3747_v30  ;;  %v3658_v6 = vpop.f32.mrf.mxu1  ;;  %v3730_v21 = vsel %vm3727_vm14, %v3729_v11, %v3725_v14  ;;  %v3774_v2 = vand.u32 2147483648, %v3747_v30  ;;  %v3772_v10 = vand.u32 2147483647, %v3747_v30 }
 0x6af   :  { %v3671_v59 = vpop.f32.mrf.mxu2  ;;  %v3749_v1 = vmul.f32 %v5059_v42, %v3746_v34  ;;  %v3781_v13 = vrot.slane %v3683_v16, 1  ;;  %vm3754_vm15 = vweird.f32 %v5059_v42  ;;  %5062 = vtanh.f32 %v3786_v33 }
 0x6b0   :  { %vm3755_vm1 = vmor %vm3753_vm0, %vm3754_vm15  ;;  %vm3768_vm4 = vweird.f32 %v3747_v30  ;;  %v3775_v17 = vor.u32 1.1754944e-38, %v3774_v2  ;;  %vm3773_vm7 = vcmp.eq.f32.partialorder %v3772_v10, 8.507059e+37 }
 0x6b1   :  { %v3750_v19 = vsub.f32 1.0, %v3749_v1  ;;  %v3785_v44 = vmul.f32 %v3781_v13, %v3730_v21 }
 0x6b3   :  { %v3751_v55 = vmul.f32 %v5059_v42, %v3750_v19  ;;  %v3787_v61 = vadd.f32 %v3785_v44, %v5779_v62 }
 0x6b4   :  { %v5061_v45 = vpop.eup %5060  ;;  %v3684_v40 = vpop.f32.mrf.mxu3 }
 0x6b5   :  { %v3764_v56 = vmul.f32 %v5061_v45, %v3747_v30  ;;  %v3752_v3 = vadd.f32 %v5059_v42, %v3751_v55  ;;  %vm3769_vm3 = vweird.f32 %v5061_v45  ;;  %v5063_v41 = vpop.eup %5062  ;;  %5064 = vtanh.f32 %v3787_v61 }
 0x6b6   :  { %vm3770_vm5 = vmor %vm3768_vm4, %vm3769_vm3 }
 0x6b7   :  { %v3765_v29 = vsub.f32 1.0, %v3764_v56  ;;  %v3756_v52 = vsel %vm3755_vm1, %v5059_v42, %v3752_v3 }
 0x6b8   :  { %v3761_v9 = vsel %vm3758_vm2, %v3760_v60, %v3756_v52 }
 0x6b9   :  { %v3766_v49 = vmul.f32 %v5061_v45, %v3765_v29  ;;  %v3790_v28 = vsub.f32 1.0, %v3761_v9  ;;  %v3800_v53 = vmul.f32 %v3796_v32, %v3761_v9 }
 0x6bb   :  { %v3792_v5 = vmul.f32 %v5063_v41, %v3790_v28  ;;  %v3767_v18 = vadd.f32 %v5061_v45, %v3766_v49  ;;  %v5065_v46 = vpop.eup %5064 }
 0x6bd   :  { %v3771_v62 = vsel %vm3770_vm5, %v5061_v45, %v3767_v18  ;;  %v3802_v57 = vadd.f32 %v3800_v53, %v3792_v5 }
 0x6be   :  { %v3776_v31 = vsel %vm3773_vm7, %v3775_v17, %v3771_v62 }
 0x6bf   :  { %v3791_v63 = vsub.f32 1.0, %v3776_v31  ;;  %v3823_v50 = vsel %vm3822_vm6, %v6617_v58, %v3802_v57  ;;  %v3801_v27 = vmul.f32 %v3797_v23, %v3776_v31 }
 0x6c0   :  { %3825 = vst [vmem:[#allocation16] sm:$0xff] %v3823_v50 }
 0x6c1   :  { %v3793_v34 = vmul.f32 %v5065_v46, %v3791_v63 }
 0x6c3   :  { %v3803_v7 = vadd.f32 %v3801_v27, %v3793_v34 }
 0x6c5   :  { %v3824_v48 = vsel %vm3822_vm6, %v6628_v20, %v3803_v7 }
 0x6c6   :  { %3826 = vst [vmem:[#allocation16 + $0x8] sm:$0xff] %v3824_v48 }
 0x6c7   :  { %3837 = dma.vmem_to_hbm [thread:$0]  %s3833_s25, 256, %s3835_s27, [#allocation7]  }
 0x6c8   :  { %5256 = dma.done.wait [#allocation7], 256  }
 0x6c9   :  { %5257 = vsyncadd [#allocation7], 4294967040 }
 0x6ca   :  { %3842 = vsyncpa [#allocation6], 1 }
 0x6cb   :  { %3843 = vsyncpa [#allocation9], 1 }
 0x6cc   :  { %3844 = vsyncpa [#allocation12], 1 }
 0x6cd   :  { %3845 = vsyncpa [#allocation15], 1 }
 0x6ce   :  { %3846 = vsyncpa [#allocation7], 1 }

</bundles_post_ra>
